<compile_context>
chip_gen: v5e
topology: v5e:2x2
jax: 0.10.0
libtpu: 0.0.40
codegen_flags: <defaults>
</compile_context>

<pallas_src>
import math

import jax
import jax.numpy as jnp
import numpy as np
from jax.experimental import pallas as pl
from jax.experimental.pallas import tpu as pltpu


# Network geometry implied by the module: 1x16x16 input, 4 conv blocks halving H,W.
_CINS = (1, 16, 32, 64)
_COUTS = (16, 32, 64, 128)
_HS = (16, 8, 4, 2)            # spatial size (H == W) seen by conv block l


def _npad(h, w):
    """Rows of the flat zero-padded buffer a conv block reads from."""
    return (h + 2) * w + 2


# ----------------------------------------------------------------------------
# In-kernel building blocks
# ----------------------------------------------------------------------------
def _conv3x3(load_tap, w_ref, b_ref, H, W, Cin):
    """3x3 'same' conv on a flat zero-padded buffer + folded-BN bias + LeakyReLU.

    load_tap(start, n) returns rows [start, start+n) of the padded buffer, (n, Cin).
    Returns the (H*W, Cout) activation value.
    """
    HW = H * W
    # W is guaranteed a power of two by the wrapper assert, so & is an exact modulo.
    col = jax.lax.broadcasted_iota(jnp.int32, (HW, 1), 0) & (W - 1)
    mask_l = col != 0            # left tap wraps at w == 0
    mask_r = col != (W - 1)      # right tap wraps at w == W-1

    taps = []
    for kh in range(3):
        for kw in range(3):
            p = load_tap(kh * W + kw, HW)                      # (HW, Cin)
            if kw == 0:
                p = jnp.where(mask_l, p, 0.0)
            elif kw == 2:
                p = jnp.where(mask_r, p, 0.0)
            taps.append(p)

    if Cin == 1:
        # conv1: K=9 is MXU-degenerate; broadcast MAC on the VPU is cheaper.
        y = b_ref[...]                                         # (1, Cout) broadcasts
        for k, p in enumerate(taps):
            y = y + p * w_ref[pl.ds(k, 1), :]                  # (HW,1)*(1,Cout)
    else:
        patches = jnp.concatenate(taps, axis=1)                # (HW, 9*Cin) im2col
        y = jnp.dot(patches, w_ref[...],
                    preferred_element_type=jnp.float32) + b_ref[...]
    return jnp.where(y >= 0.0, y, 0.01 * y)                    # LeakyReLU(0.01)


def _pool_into_pad(y, H, W, C, ybuf_ref, sel_ref, pad_next_ref):
    """Vectorized 2x2/2 max-pool of y (H*W, C), written into the next layer's
    zero-padded buffer with ONE matmul + ONE full-block store.

    v[n] = max over the 2x2 window whose top-left flat index is n; sel_ref is a
    constant 0/1 matrix whose data rows pick the (even h, even w) windows and whose
    padding rows are all-zero, so `sel @ v` directly produces the padded layout.
    """
    HW = H * W
    ybuf_ref[pl.ds(0, HW), :] = y
    ybuf_ref[pl.ds(HW, W + 1), :] = jnp.zeros((W + 1, C), jnp.float32)  # guard rows
    v = jnp.maximum(jnp.maximum(y, ybuf_ref[pl.ds(1, HW), :]),
                    jnp.maximum(ybuf_ref[pl.ds(W, HW), :],
                                ybuf_ref[pl.ds(W + 1, HW), :]))
    pad_next_ref[...] = jnp.dot(sel_ref[...], v,
                                preferred_element_type=jnp.float32)


def tcnet32_kernel(x_ref, a_ref,
                   cw1, cb1, cw2, cb2, cw3, cb3, cw4, cb4,
                   s1, s2, s3,
                   w1, b1, wa, ba, w2x, w2a, b2, w3, b3,
                   o_ref,
                   pad2_ref, pad3_ref, pad4_ref, yb1, yb2, yb3):
    # conv block 1: 16x16x1 -> 8x8x16 (pooled map lands, pre-padded, in pad2_ref)
    y = _conv3x3(lambda s, n: x_ref[0, pl.ds(s, n), :], cw1, cb1, 16, 16, 1)
    _pool_into_pad(y, 16, 16, 16, yb1, s1, pad2_ref)
    # conv block 2: 8x8x16 -> 4x4x32
    y = _conv3x3(lambda s, n: pad2_ref[pl.ds(s, n), :], cw2, cb2, 8, 8, 16)
    _pool_into_pad(y, 8, 8, 32, yb2, s2, pad3_ref)
    # conv block 3: 4x4x32 -> 2x2x64
    y = _conv3x3(lambda s, n: pad3_ref[pl.ds(s, n), :], cw3, cb3, 4, 4, 32)
    _pool_into_pad(y, 4, 4, 64, yb3, s3, pad4_ref)
    # conv block 4: 2x2x64 -> 1x1x128 (the pool is just a max over the 4 pixels)
    y = _conv3x3(lambda s, n: pad4_ref[pl.ds(s, n), :], cw4, cb4, 2, 2, 64)
    feat = jnp.max(y, axis=0, keepdims=True)                   # (1, 128), NCHW-flatten ok

    # FC head (Dropout layers are identity in eval mode).
    h1 = jnp.maximum(jnp.dot(feat, w1[...],
                             preferred_element_type=jnp.float32) + b1[...], 0.0)
    ha = jnp.maximum(a_ref[0] * wa[...] + ba[...], 0.0)        # K=1 matmul -> VPU bcast
    h2 = jnp.maximum(jnp.dot(h1, w2x[...], preferred_element_type=jnp.float32)
                     + jnp.dot(ha, w2a[...], preferred_element_type=jnp.float32)
                     + b2[...], 0.0)
    out = jnp.dot(h2, w3[...], preferred_element_type=jnp.float32) + b3[...]
    o_ref[...] = out.reshape(1, 1, 1)


# ----------------------------------------------------------------------------
# Wrapper: layout plumbing, constant matrices, pallas_call
# ----------------------------------------------------------------------------
def _pool_select_matrix(H, W):
    """(Npad_next, H*W) 0/1 matrix: selects the 2x2-window maxima (held at each
    window's top-left flat index) and scatters them into the zero-padded flat
    layout of the next conv block (its pad rows are all-zero rows here)."""
    Ho, Wo = H // 2, W // 2
    S = np.zeros((_npad(Ho, Wo), H * W), np.float32)
    for i in range(Ho):
        for j in range(Wo):
            S[Wo + 1 + i * Wo + j, (2 * i) * W + 2 * j] = 1.0
    return jnp.asarray(S)


def _pad_input(x_bnc, H, W):
    """(B, H*W, C) -> zero-padded flat (B, (H+2)*W + 2, C)."""
    B, _, C = x_bnc.shape
    x_img = x_bnc.reshape(B, H, W, C)
    x_p = jnp.pad(x_img, ((0, 0), (1, 1), (0, 0), (0, 0)))     # pad H by 1
    x_flat = x_p.reshape(B, (H + 2) * W, C)
    return jnp.pad(x_flat, ((0, 0), (1, 1), (0, 0)))           # +1 row front/back


def _const_spec(shape):
    """Whole-array block with a constant index map (stays resident across steps)."""
    return pl.BlockSpec(shape, lambda b: (0,) * len(shape))


def tcnet32_forward(x_nchw, action, params):
    B, C, H, W = x_nchw.shape
    # fc1 = Linear(128*1*1, ...) and 4 pools force 1x16x16 inputs; W power of two
    # is also what the in-kernel `& (W-1)` column masks rely on.
    assert C == 1 and H == 16 and W == 16, "TCNet32 expects 1x16x16 NCHW inputs"

    x = jnp.transpose(x_nchw, (0, 2, 3, 1)).reshape(B, H * W, C)   # NCHW -> flat NHWC
    x_pad = _pad_input(x, H, W)                                    # (B, 290, 1)
    a = action.reshape(B, 1, 1).astype(jnp.float32)

    # Fold the BN scale into the conv weights (bias is already the folded affine bias).
    conv_w, conv_b = [], []
    for (w, scale, bias), cin, cout in zip(params["conv"], _CINS, _COUTS):
        conv_w.append((w.reshape(9 * cin, cout) * scale).astype(jnp.float32))
        conv_b.append(bias)
    sel = [_pool_select_matrix(h, h) for h in _HS[:3]]

    weights = (conv_w[0], conv_b[0], conv_w[1], conv_b[1],
               conv_w[2], conv_b[2], conv_w[3], conv_b[3],
               sel[0], sel[1], sel[2],
               params["w1"], params["b1"], params["wa"], params["ba"],
               params["w2x"], params["w2a"], params["b2"],
               params["w3"], params["b3"])

    npad0 = _npad(H, W)
    in_specs = [
        pl.BlockSpec((1, npad0, 1), lambda b: (b, 0, 0)),          # padded image
        pl.BlockSpec((1, 1, 1), lambda b: (b, 0, 0)),              # action scalar
    ] + [_const_spec(w.shape) for w in weights]

    scratch = [
        pltpu.VMEM((_npad(8, 8), 16), jnp.float32),    # padded input to conv2
        pltpu.VMEM((_npad(4, 4), 32), jnp.float32),    # padded input to conv3
        pltpu.VMEM((_npad(2, 2), 64), jnp.float32),    # padded input to conv4
        pltpu.VMEM((16 * 16 + 16 + 1, 16), jnp.float32),   # pool staging, block 1
        pltpu.VMEM((8 * 8 + 8 + 1, 32), jnp.float32),      # pool staging, block 2
        pltpu.VMEM((4 * 4 + 4 + 1, 64), jnp.float32),      # pool staging, block 3
    ]

    out = pl.pallas_call(
        tcnet32_kernel,
        out_shape=jax.ShapeDtypeStruct((B, 1, 1), jnp.float32),
        grid_spec=pltpu.PrefetchScalarGridSpec(
            num_scalar_prefetch=0,
            grid=(B,),
            in_specs=in_specs,
            out_specs=pl.BlockSpec((1, 1, 1), lambda b: (b, 0, 0)),
            scratch_shapes=scratch,
        ),
        compiler_params=pltpu.CompilerParams(
            dimension_semantics=("parallel",)),
    )(x_pad, a, *weights)
    return out.reshape(B, 1)


# ----------------------------------------------------------------------------
# Parameters + pure-JAX reference for verification
# ----------------------------------------------------------------------------
def init_params(key):
    eps = 1e-5
    keys = iter(jax.random.split(key, 40))
    convs = []
    for cin, cout in zip(_CINS, _COUTS):
        # Equivalent to torch Conv2d weight (Cout, Cin, 3, 3) transposed to HWIO, k=kh*3+kw.
        w = jax.random.normal(next(keys), (9, cin, cout), jnp.float32) \
            * (1.0 / (3.0 * math.sqrt(cin)))
        gamma = jax.random.uniform(next(keys), (cout,), jnp.float32, 0.5, 1.5)
        beta = jax.random.normal(next(keys), (cout,), jnp.float32) * 0.1
        rmean = jax.random.normal(next(keys), (cout,), jnp.float32) * 0.1
        rvar = jax.random.uniform(next(keys), (cout,), jnp.float32, 0.5, 1.5)
        scale = gamma / jnp.sqrt(rvar + eps)
        bias = beta - rmean * scale
        convs.append((w, scale.reshape(1, cout), bias.reshape(1, cout)))

    def lin(kw, kb, fin, fout):   # (in, out) layout == torch weight.T
        w = jax.random.normal(kw, (fin, fout), jnp.float32) / math.sqrt(fin)
        b = jax.random.normal(kb, (1, fout), jnp.float32) * 0.1
        return w, b

    w1, b1 = lin(next(keys), next(keys), 128, 128)
    wa, ba = lin(next(keys), next(keys), 1, 16)
    w2, b2 = lin(next(keys), next(keys), 144, 64)
    w3, b3 = lin(next(keys), next(keys), 64, 1)
    return dict(conv=convs, w1=w1, b1=b1, wa=wa, ba=ba,
                w2x=w2[:128], w2a=w2[128:], b2=b2, w3=w3, b3=b3)


def reference_forward(x_nchw, action, params):
    """Pure-JAX reference (XLA conv / reduce_window) for numeric verification."""
    x = jnp.transpose(x_nchw, (0, 2, 3, 1))
    for (w, scale, bias) in params["conv"]:
        cin, cout = w.shape[1], w.shape[2]
        y = jax.lax.conv_general_dilated(
            x, w.reshape(3, 3, cin, cout), (1, 1), "SAME",
            dimension_numbers=("NHWC", "HWIO", "NHWC"))
        y = y * scale.reshape(1, 1, 1, cout) + bias.reshape(1, 1, 1, cout)
        y = jnp.where(y >= 0, y, 0.01 * y)
        x = jax.lax.reduce_window(y, -jnp.inf, jax.lax.max,
                                  (1, 2, 2, 1), (1, 2, 2, 1), "VALID")
    x = x.reshape(x.shape[0], -1)
    h1 = jnp.maximum(x @ params["w1"] + params["b1"], 0.0)
    ha = jnp.maximum(action.reshape(-1, 1) @ params["wa"] + params["ba"], 0.0)
    h2 = jnp.maximum(h1 @ params["w2x"] + ha @ params["w2a"] + params["b2"], 0.0)
    return h2 @ params["w3"] + params["b3"]


if __name__ == "__main__":
    key = jax.random.PRNGKey(0)
    kp, kx, ka = jax.random.split(key, 3)
    params = init_params(kp)

    # fc1 = Linear(128*1*1, ...) implies 1x16x16 inputs (16 / 2**4 == 1).
    x = jax.random.normal(kx, (2, 1, 16, 16), jnp.float32)      # NCHW
    action = jax.random.uniform(ka, (2,), jnp.float32)

    out = jax.block_until_ready(tcnet32_forward(x, action, params))
    assert out.shape == (2, 1) and out.dtype == jnp.float32

    ref = reference_forward(x, action, params)
    err = float(jnp.max(jnp.abs(out - ref)))
    assert err < 1e-2, f"kernel/reference mismatch: {err}"
    print("KERNEL_OK")
</pallas_src>

<mosaic_0001>
module attributes {stable_mosaic.version = 11 : i64} {
  func.func @tcnet32_kernel(%arg0: i32, %arg1: memref<1x290x1xf32, #tpu.memory_space<vmem>>, %arg2: memref<1x1x1xf32, #tpu.memory_space<vmem>>, %arg3: memref<9x16xf32, #tpu.memory_space<vmem>>, %arg4: memref<1x16xf32, #tpu.memory_space<vmem>>, %arg5: memref<144x32xf32, #tpu.memory_space<vmem>>, %arg6: memref<1x32xf32, #tpu.memory_space<vmem>>, %arg7: memref<288x64xf32, #tpu.memory_space<vmem>>, %arg8: memref<1x64xf32, #tpu.memory_space<vmem>>, %arg9: memref<576x128xf32, #tpu.memory_space<vmem>>, %arg10: memref<1x128xf32, #tpu.memory_space<vmem>>, %arg11: memref<82x256xf32, #tpu.memory_space<vmem>>, %arg12: memref<26x64xf32, #tpu.memory_space<vmem>>, %arg13: memref<10x16xf32, #tpu.memory_space<vmem>>, %arg14: memref<128x128xf32, #tpu.memory_space<vmem>>, %arg15: memref<1x128xf32, #tpu.memory_space<vmem>>, %arg16: memref<1x16xf32, #tpu.memory_space<vmem>>, %arg17: memref<1x16xf32, #tpu.memory_space<vmem>>, %arg18: memref<128x64xf32, #tpu.memory_space<vmem>>, %arg19: memref<16x64xf32, #tpu.memory_space<vmem>>, %arg20: memref<1x64xf32, #tpu.memory_space<vmem>>, %arg21: memref<64x1xf32, #tpu.memory_space<vmem>>, %arg22: memref<1x1xf32, #tpu.memory_space<vmem>>, %arg23: memref<1x1x1xf32, #tpu.memory_space<vmem>>, %arg24: memref<82x16xf32, #tpu.memory_space<vmem>>, %arg25: memref<26x32xf32, #tpu.memory_space<vmem>>, %arg26: memref<10x64xf32, #tpu.memory_space<vmem>>, %arg27: memref<273x16xf32, #tpu.memory_space<vmem>>, %arg28: memref<73x32xf32, #tpu.memory_space<vmem>>, %arg29: memref<21x64xf32, #tpu.memory_space<vmem>>) attributes {dimension_semantics = [#tpu.dimension_semantics<parallel>], iteration_bounds = array<i64: 2>, scalar_prefetch = 0 : i64, scratch_operands = 6 : i64, tpu.core_type = #tpu.core_type<tc>, window_params = [{transform_indices = @transform_0, window_bounds = array<i64: 1, 290, 1>}, {transform_indices = @transform_1, window_bounds = array<i64: 1, 1, 1>}, {pipeline_mode = #tpu.pipeline_mode<synchronous>, transform_indices = @transform_2, window_bounds = array<i64: 9, 16>}, {pipeline_mode = #tpu.pipeline_mode<synchronous>, transform_indices = @transform_3, window_bounds = array<i64: 1, 16>}, {pipeline_mode = #tpu.pipeline_mode<synchronous>, transform_indices = @transform_4, window_bounds = array<i64: 144, 32>}, {pipeline_mode = #tpu.pipeline_mode<synchronous>, transform_indices = @transform_5, window_bounds = array<i64: 1, 32>}, {pipeline_mode = #tpu.pipeline_mode<synchronous>, transform_indices = @transform_6, window_bounds = array<i64: 288, 64>}, {pipeline_mode = #tpu.pipeline_mode<synchronous>, transform_indices = @transform_7, window_bounds = array<i64: 1, 64>}, {pipeline_mode = #tpu.pipeline_mode<synchronous>, transform_indices = @transform_8, window_bounds = array<i64: 576, 128>}, {pipeline_mode = #tpu.pipeline_mode<synchronous>, transform_indices = @transform_9, window_bounds = array<i64: 1, 128>}, {pipeline_mode = #tpu.pipeline_mode<synchronous>, transform_indices = @transform_10, window_bounds = array<i64: 82, 256>}, {pipeline_mode = #tpu.pipeline_mode<synchronous>, transform_indices = @transform_11, window_bounds = array<i64: 26, 64>}, {pipeline_mode = #tpu.pipeline_mode<synchronous>, transform_indices = @transform_12, window_bounds = array<i64: 10, 16>}, {pipeline_mode = #tpu.pipeline_mode<synchronous>, transform_indices = @transform_13, window_bounds = array<i64: 128, 128>}, {pipeline_mode = #tpu.pipeline_mode<synchronous>, transform_indices = @transform_14, window_bounds = array<i64: 1, 128>}, {pipeline_mode = #tpu.pipeline_mode<synchronous>, transform_indices = @transform_15, window_bounds = array<i64: 1, 16>}, {pipeline_mode = #tpu.pipeline_mode<synchronous>, transform_indices = @transform_16, window_bounds = array<i64: 1, 16>}, {pipeline_mode = #tpu.pipeline_mode<synchronous>, transform_indices = @transform_17, window_bounds = array<i64: 128, 64>}, {pipeline_mode = #tpu.pipeline_mode<synchronous>, transform_indices = @transform_18, window_bounds = array<i64: 16, 64>}, {pipeline_mode = #tpu.pipeline_mode<synchronous>, transform_indices = @transform_19, window_bounds = array<i64: 1, 64>}, {pipeline_mode = #tpu.pipeline_mode<synchronous>, transform_indices = @transform_20, window_bounds = array<i64: 64, 1>}, {pipeline_mode = #tpu.pipeline_mode<synchronous>, transform_indices = @transform_21, window_bounds = array<i64: 1, 1>}, {transform_indices = @transform_22, window_bounds = array<i64: 1, 1, 1>}]} {
    %0 = tpu.iota {dimensions = array<i32: 0>} : vector<256x1xi32>
    %c15_i32 = arith.constant 15 : i32
    %1 = vector.broadcast %c15_i32 : i32 to vector<256x1xi32>
    %2 = arith.andi %0, %1 : vector<256x1xi32>
    %c0_i32 = arith.constant 0 : i32
    %3 = vector.broadcast %c0_i32 : i32 to vector<256x1xi32>
    %4 = arith.cmpi ne, %2, %3 : vector<256x1xi32>
    %c15_i32_0 = arith.constant 15 : i32
    %5 = vector.broadcast %c15_i32_0 : i32 to vector<256x1xi32>
    %6 = arith.cmpi ne, %2, %5 : vector<256x1xi32>
    %c0 = arith.constant 0 : index
    %c0_1 = arith.constant 0 : index
    %c0_2 = arith.constant 0 : index
    %7 = vector.load %arg1[%c0, %c0_1, %c0_2] : memref<1x290x1xf32, #tpu.memory_space<vmem>>, vector<1x256x1xf32>
    %8 = vector.shape_cast %7 : vector<1x256x1xf32> to vector<256x1xf32>
    %cst = arith.constant 0.000000e+00 : f32
    %9 = vector.broadcast %cst : f32 to vector<256x1xf32>
    %10 = arith.select %4, %8, %9 : vector<256x1xi1>, vector<256x1xf32>
    %c0_3 = arith.constant 0 : index
    %c1 = arith.constant 1 : index
    %c0_4 = arith.constant 0 : index
    %11 = vector.load %arg1[%c0_3, %c1, %c0_4] : memref<1x290x1xf32, #tpu.memory_space<vmem>>, vector<1x256x1xf32>
    %12 = vector.shape_cast %11 : vector<1x256x1xf32> to vector<256x1xf32>
    %c0_5 = arith.constant 0 : index
    %c2 = arith.constant 2 : index
    %c0_6 = arith.constant 0 : index
    %13 = vector.load %arg1[%c0_5, %c2, %c0_6] : memref<1x290x1xf32, #tpu.memory_space<vmem>>, vector<1x256x1xf32>
    %14 = vector.shape_cast %13 : vector<1x256x1xf32> to vector<256x1xf32>
    %cst_7 = arith.constant 0.000000e+00 : f32
    %15 = vector.broadcast %cst_7 : f32 to vector<256x1xf32>
    %16 = arith.select %6, %14, %15 : vector<256x1xi1>, vector<256x1xf32>
    %c0_8 = arith.constant 0 : index
    %c16 = arith.constant 16 : index
    %c0_9 = arith.constant 0 : index
    %17 = vector.load %arg1[%c0_8, %c16, %c0_9] : memref<1x290x1xf32, #tpu.memory_space<vmem>>, vector<1x256x1xf32>
    %18 = vector.shape_cast %17 : vector<1x256x1xf32> to vector<256x1xf32>
    %cst_10 = arith.constant 0.000000e+00 : f32
    %19 = vector.broadcast %cst_10 : f32 to vector<256x1xf32>
    %20 = arith.select %4, %18, %19 : vector<256x1xi1>, vector<256x1xf32>
    %c0_11 = arith.constant 0 : index
    %c17 = arith.constant 17 : index
    %c0_12 = arith.constant 0 : index
    %21 = vector.load %arg1[%c0_11, %c17, %c0_12] : memref<1x290x1xf32, #tpu.memory_space<vmem>>, vector<1x256x1xf32>
    %22 = vector.shape_cast %21 : vector<1x256x1xf32> to vector<256x1xf32>
    %c0_13 = arith.constant 0 : index
    %c18 = arith.constant 18 : index
    %c0_14 = arith.constant 0 : index
    %23 = vector.load %arg1[%c0_13, %c18, %c0_14] : memref<1x290x1xf32, #tpu.memory_space<vmem>>, vector<1x256x1xf32>
    %24 = vector.shape_cast %23 : vector<1x256x1xf32> to vector<256x1xf32>
    %cst_15 = arith.constant 0.000000e+00 : f32
    %25 = vector.broadcast %cst_15 : f32 to vector<256x1xf32>
    %26 = arith.select %6, %24, %25 : vector<256x1xi1>, vector<256x1xf32>
    %c0_16 = arith.constant 0 : index
    %c32 = arith.constant 32 : index
    %c0_17 = arith.constant 0 : index
    %27 = vector.load %arg1[%c0_16, %c32, %c0_17] : memref<1x290x1xf32, #tpu.memory_space<vmem>>, vector<1x256x1xf32>
    %28 = vector.shape_cast %27 : vector<1x256x1xf32> to vector<256x1xf32>
    %cst_18 = arith.constant 0.000000e+00 : f32
    %29 = vector.broadcast %cst_18 : f32 to vector<256x1xf32>
    %30 = arith.select %4, %28, %29 : vector<256x1xi1>, vector<256x1xf32>
    %c0_19 = arith.constant 0 : index
    %c33 = arith.constant 33 : index
    %c0_20 = arith.constant 0 : index
    %31 = vector.load %arg1[%c0_19, %c33, %c0_20] : memref<1x290x1xf32, #tpu.memory_space<vmem>>, vector<1x256x1xf32>
    %32 = vector.shape_cast %31 : vector<1x256x1xf32> to vector<256x1xf32>
    %c0_21 = arith.constant 0 : index
    %c34 = arith.constant 34 : index
    %c0_22 = arith.constant 0 : index
    %33 = vector.load %arg1[%c0_21, %c34, %c0_22] : memref<1x290x1xf32, #tpu.memory_space<vmem>>, vector<1x256x1xf32>
    %34 = vector.shape_cast %33 : vector<1x256x1xf32> to vector<256x1xf32>
    %cst_23 = arith.constant 0.000000e+00 : f32
    %35 = vector.broadcast %cst_23 : f32 to vector<256x1xf32>
    %36 = arith.select %6, %34, %35 : vector<256x1xi1>, vector<256x1xf32>
    %c0_24 = arith.constant 0 : index
    %c0_25 = arith.constant 0 : index
    %37 = vector.load %arg4[%c0_24, %c0_25] : memref<1x16xf32, #tpu.memory_space<vmem>>, vector<1x16xf32>
    %c0_26 = arith.constant 0 : index
    %c0_27 = arith.constant 0 : index
    %38 = vector.load %arg3[%c0_26, %c0_27] : memref<9x16xf32, #tpu.memory_space<vmem>>, vector<1x16xf32>
    %39 = vector.broadcast %10 : vector<256x1xf32> to vector<256x16xf32>
    %40 = vector.broadcast %38 : vector<1x16xf32> to vector<256x16xf32>
    %41 = arith.mulf %39, %40 : vector<256x16xf32>
    %42 = vector.broadcast %37 : vector<1x16xf32> to vector<256x16xf32>
    %43 = arith.addf %42, %41 : vector<256x16xf32>
    %c1_28 = arith.constant 1 : index
    %c0_29 = arith.constant 0 : index
    %44 = vector.load %arg3[%c1_28, %c0_29] : memref<9x16xf32, #tpu.memory_space<vmem>>, vector<1x16xf32>
    %45 = vector.broadcast %12 : vector<256x1xf32> to vector<256x16xf32>
    %46 = vector.broadcast %44 : vector<1x16xf32> to vector<256x16xf32>
    %47 = arith.mulf %45, %46 : vector<256x16xf32>
    %48 = arith.addf %43, %47 : vector<256x16xf32>
    %c2_30 = arith.constant 2 : index
    %c0_31 = arith.constant 0 : index
    %49 = vector.load %arg3[%c2_30, %c0_31] : memref<9x16xf32, #tpu.memory_space<vmem>>, vector<1x16xf32>
    %50 = vector.broadcast %16 : vector<256x1xf32> to vector<256x16xf32>
    %51 = vector.broadcast %49 : vector<1x16xf32> to vector<256x16xf32>
    %52 = arith.mulf %50, %51 : vector<256x16xf32>
    %53 = arith.addf %48, %52 : vector<256x16xf32>
    %c3 = arith.constant 3 : index
    %c0_32 = arith.constant 0 : index
    %54 = vector.load %arg3[%c3, %c0_32] : memref<9x16xf32, #tpu.memory_space<vmem>>, vector<1x16xf32>
    %55 = vector.broadcast %20 : vector<256x1xf32> to vector<256x16xf32>
    %56 = vector.broadcast %54 : vector<1x16xf32> to vector<256x16xf32>
    %57 = arith.mulf %55, %56 : vector<256x16xf32>
    %58 = arith.addf %53, %57 : vector<256x16xf32>
    %c4 = arith.constant 4 : index
    %c0_33 = arith.constant 0 : index
    %59 = vector.load %arg3[%c4, %c0_33] : memref<9x16xf32, #tpu.memory_space<vmem>>, vector<1x16xf32>
    %60 = vector.broadcast %22 : vector<256x1xf32> to vector<256x16xf32>
    %61 = vector.broadcast %59 : vector<1x16xf32> to vector<256x16xf32>
    %62 = arith.mulf %60, %61 : vector<256x16xf32>
    %63 = arith.addf %58, %62 : vector<256x16xf32>
    %c5 = arith.constant 5 : index
    %c0_34 = arith.constant 0 : index
    %64 = vector.load %arg3[%c5, %c0_34] : memref<9x16xf32, #tpu.memory_space<vmem>>, vector<1x16xf32>
    %65 = vector.broadcast %26 : vector<256x1xf32> to vector<256x16xf32>
    %66 = vector.broadcast %64 : vector<1x16xf32> to vector<256x16xf32>
    %67 = arith.mulf %65, %66 : vector<256x16xf32>
    %68 = arith.addf %63, %67 : vector<256x16xf32>
    %c6 = arith.constant 6 : index
    %c0_35 = arith.constant 0 : index
    %69 = vector.load %arg3[%c6, %c0_35] : memref<9x16xf32, #tpu.memory_space<vmem>>, vector<1x16xf32>
    %70 = vector.broadcast %30 : vector<256x1xf32> to vector<256x16xf32>
    %71 = vector.broadcast %69 : vector<1x16xf32> to vector<256x16xf32>
    %72 = arith.mulf %70, %71 : vector<256x16xf32>
    %73 = arith.addf %68, %72 : vector<256x16xf32>
    %c7 = arith.constant 7 : index
    %c0_36 = arith.constant 0 : index
    %74 = vector.load %arg3[%c7, %c0_36] : memref<9x16xf32, #tpu.memory_space<vmem>>, vector<1x16xf32>
    %75 = vector.broadcast %32 : vector<256x1xf32> to vector<256x16xf32>
    %76 = vector.broadcast %74 : vector<1x16xf32> to vector<256x16xf32>
    %77 = arith.mulf %75, %76 : vector<256x16xf32>
    %78 = arith.addf %73, %77 : vector<256x16xf32>
    %c8 = arith.constant 8 : index
    %c0_37 = arith.constant 0 : index
    %79 = vector.load %arg3[%c8, %c0_37] : memref<9x16xf32, #tpu.memory_space<vmem>>, vector<1x16xf32>
    %80 = vector.broadcast %36 : vector<256x1xf32> to vector<256x16xf32>
    %81 = vector.broadcast %79 : vector<1x16xf32> to vector<256x16xf32>
    %82 = arith.mulf %80, %81 : vector<256x16xf32>
    %83 = arith.addf %78, %82 : vector<256x16xf32>
    %cst_38 = arith.constant 0.000000e+00 : f32
    %84 = vector.broadcast %cst_38 : f32 to vector<256x16xf32>
    %85 = arith.cmpf oge, %83, %84 : vector<256x16xf32>
    %cst_39 = arith.constant 0.00999999977 : f32
    %86 = vector.broadcast %cst_39 : f32 to vector<256x16xf32>
    %87 = arith.mulf %86, %83 : vector<256x16xf32>
    %88 = arith.select %85, %83, %87 : vector<256x16xi1>, vector<256x16xf32>
    %c0_40 = arith.constant 0 : index
    %c0_41 = arith.constant 0 : index
    %89 = vector.load %arg27[%c0_40, %c0_41] : memref<273x16xf32, #tpu.memory_space<vmem>>, vector<256x16xf32>
    tpu.vector_store %arg27[%c0_40, %c0_41], %88 {strides = array<i32>} : memref<273x16xf32, #tpu.memory_space<vmem>>, vector<256x16xf32>,
    %cst_42 = arith.constant 0.000000e+00 : f32
    %90 = vector.broadcast %cst_42 : f32 to vector<17x16xf32>
    %c256 = arith.constant 256 : index
    %c0_43 = arith.constant 0 : index
    %91 = vector.load %arg27[%c256, %c0_43] : memref<273x16xf32, #tpu.memory_space<vmem>>, vector<17x16xf32>
    tpu.vector_store %arg27[%c256, %c0_43], %90 {strides = array<i32>} : memref<273x16xf32, #tpu.memory_space<vmem>>, vector<17x16xf32>,
    %c1_44 = arith.constant 1 : index
    %c0_45 = arith.constant 0 : index
    %92 = vector.load %arg27[%c1_44, %c0_45] : memref<273x16xf32, #tpu.memory_space<vmem>>, vector<256x16xf32>
    %93 = arith.maximumf %88, %92 : vector<256x16xf32>
    %c16_46 = arith.constant 16 : index
    %c0_47 = arith.constant 0 : index
    %94 = vector.load %arg27[%c16_46, %c0_47] : memref<273x16xf32, #tpu.memory_space<vmem>>, vector<256x16xf32>
    %c17_48 = arith.constant 17 : index
    %c0_49 = arith.constant 0 : index
    %95 = vector.load %arg27[%c17_48, %c0_49] : memref<273x16xf32, #tpu.memory_space<vmem>>, vector<256x16xf32>
    %96 = arith.maximumf %94, %95 : vector<256x16xf32>
    %97 = arith.maximumf %93, %96 : vector<256x16xf32>
    %c0_50 = arith.constant 0 : index
    %c0_51 = arith.constant 0 : index
    %98 = vector.load %arg11[%c0_50, %c0_51] : memref<82x256xf32, #tpu.memory_space<vmem>>, vector<82x256xf32>
    %cst_52 = arith.constant dense<0.000000e+00> : vector<82x16xf32>
    %99 = tpu.matmul %98, %97, %cst_52 {dimension_numbers = #tpu.dot_dimension_numbers<[1], [0], [0], [1], [0, 0, 1, 1], [], []>} : vector<82x256xf32>, vector<256x16xf32>, vector<82x16xf32> -> vector<82x16xf32>
    %c0_53 = arith.constant 0 : index
    %c0_54 = arith.constant 0 : index
    %100 = vector.load %arg24[%c0_53, %c0_54] : memref<82x16xf32, #tpu.memory_space<vmem>>, vector<82x16xf32>
    tpu.vector_store %arg24[%c0_53, %c0_54], %99 {strides = array<i32>} : memref<82x16xf32, #tpu.memory_space<vmem>>, vector<82x16xf32>,
    %101 = tpu.iota {dimensions = array<i32: 0>} : vector<64x1xi32>
    %c7_i32 = arith.constant 7 : i32
    %102 = vector.broadcast %c7_i32 : i32 to vector<64x1xi32>
    %103 = arith.andi %101, %102 : vector<64x1xi32>
    %c0_i32_55 = arith.constant 0 : i32
    %104 = vector.broadcast %c0_i32_55 : i32 to vector<64x1xi32>
    %105 = arith.cmpi ne, %103, %104 : vector<64x1xi32>
    %c7_i32_56 = arith.constant 7 : i32
    %106 = vector.broadcast %c7_i32_56 : i32 to vector<64x1xi32>
    %107 = arith.cmpi ne, %103, %106 : vector<64x1xi32>
    %c0_57 = arith.constant 0 : index
    %c0_58 = arith.constant 0 : index
    %108 = vector.load %arg24[%c0_57, %c0_58] : memref<82x16xf32, #tpu.memory_space<vmem>>, vector<64x16xf32>
    %cst_59 = arith.constant 0.000000e+00 : f32
    %109 = vector.shape_cast %105 : vector<64x1xi1> to vector<64x1xi1>
    %110 = vector.broadcast %109 : vector<64x1xi1> to vector<64x16xi1>
    %111 = vector.broadcast %cst_59 : f32 to vector<64x16xf32>
    %112 = arith.select %110, %108, %111 : vector<64x16xi1>, vector<64x16xf32>
    %c1_60 = arith.constant 1 : index
    %c0_61 = arith.constant 0 : index
    %113 = vector.load %arg24[%c1_60, %c0_61] : memref<82x16xf32, #tpu.memory_space<vmem>>, vector<64x16xf32>
    %c2_62 = arith.constant 2 : index
    %c0_63 = arith.constant 0 : index
    %114 = vector.load %arg24[%c2_62, %c0_63] : memref<82x16xf32, #tpu.memory_space<vmem>>, vector<64x16xf32>
    %cst_64 = arith.constant 0.000000e+00 : f32
    %115 = vector.shape_cast %107 : vector<64x1xi1> to vector<64x1xi1>
    %116 = vector.broadcast %115 : vector<64x1xi1> to vector<64x16xi1>
    %117 = vector.broadcast %cst_64 : f32 to vector<64x16xf32>
    %118 = arith.select %116, %114, %117 : vector<64x16xi1>, vector<64x16xf32>
    %c8_65 = arith.constant 8 : index
    %c0_66 = arith.constant 0 : index
    %119 = vector.load %arg24[%c8_65, %c0_66] : memref<82x16xf32, #tpu.memory_space<vmem>>, vector<64x16xf32>
    %cst_67 = arith.constant 0.000000e+00 : f32
    %120 = vector.shape_cast %105 : vector<64x1xi1> to vector<64x1xi1>
    %121 = vector.broadcast %120 : vector<64x1xi1> to vector<64x16xi1>
    %122 = vector.broadcast %cst_67 : f32 to vector<64x16xf32>
    %123 = arith.select %121, %119, %122 : vector<64x16xi1>, vector<64x16xf32>
    %c9 = arith.constant 9 : index
    %c0_68 = arith.constant 0 : index
    %124 = vector.load %arg24[%c9, %c0_68] : memref<82x16xf32, #tpu.memory_space<vmem>>, vector<64x16xf32>
    %c10 = arith.constant 10 : index
    %c0_69 = arith.constant 0 : index
    %125 = vector.load %arg24[%c10, %c0_69] : memref<82x16xf32, #tpu.memory_space<vmem>>, vector<64x16xf32>
    %cst_70 = arith.constant 0.000000e+00 : f32
    %126 = vector.shape_cast %107 : vector<64x1xi1> to vector<64x1xi1>
    %127 = vector.broadcast %126 : vector<64x1xi1> to vector<64x16xi1>
    %128 = vector.broadcast %cst_70 : f32 to vector<64x16xf32>
    %129 = arith.select %127, %125, %128 : vector<64x16xi1>, vector<64x16xf32>
    %c16_71 = arith.constant 16 : index
    %c0_72 = arith.constant 0 : index
    %130 = vector.load %arg24[%c16_71, %c0_72] : memref<82x16xf32, #tpu.memory_space<vmem>>, vector<64x16xf32>
    %cst_73 = arith.constant 0.000000e+00 : f32
    %131 = vector.shape_cast %105 : vector<64x1xi1> to vector<64x1xi1>
    %132 = vector.broadcast %131 : vector<64x1xi1> to vector<64x16xi1>
    %133 = vector.broadcast %cst_73 : f32 to vector<64x16xf32>
    %134 = arith.select %132, %130, %133 : vector<64x16xi1>, vector<64x16xf32>
    %c17_74 = arith.constant 17 : index
    %c0_75 = arith.constant 0 : index
    %135 = vector.load %arg24[%c17_74, %c0_75] : memref<82x16xf32, #tpu.memory_space<vmem>>, vector<64x16xf32>
    %c18_76 = arith.constant 18 : index
    %c0_77 = arith.constant 0 : index
    %136 = vector.load %arg24[%c18_76, %c0_77] : memref<82x16xf32, #tpu.memory_space<vmem>>, vector<64x16xf32>
    %cst_78 = arith.constant 0.000000e+00 : f32
    %137 = vector.shape_cast %107 : vector<64x1xi1> to vector<64x1xi1>
    %138 = vector.broadcast %137 : vector<64x1xi1> to vector<64x16xi1>
    %139 = vector.broadcast %cst_78 : f32 to vector<64x16xf32>
    %140 = arith.select %138, %136, %139 : vector<64x16xi1>, vector<64x16xf32>
    %141 = tpu.concatenate %112, %113, %118, %123, %124, %129, %134, %135, %140 in 1 : vector<64x16xf32>, vector<64x16xf32>, vector<64x16xf32>, vector<64x16xf32>, vector<64x16xf32>, vector<64x16xf32>, vector<64x16xf32>, vector<64x16xf32>, vector<64x16xf32> -> vector<64x144xf32>
    %c0_79 = arith.constant 0 : index
    %c0_80 = arith.constant 0 : index
    %142 = vector.load %arg5[%c0_79, %c0_80] : memref<144x32xf32, #tpu.memory_space<vmem>>, vector<144x32xf32>
    %cst_81 = arith.constant dense<0.000000e+00> : vector<64x32xf32>
    %143 = tpu.matmul %141, %142, %cst_81 {dimension_numbers = #tpu.dot_dimension_numbers<[1], [0], [0], [1], [0, 0, 1, 1], [], []>} : vector<64x144xf32>, vector<144x32xf32>, vector<64x32xf32> -> vector<64x32xf32>
    %c0_82 = arith.constant 0 : index
    %c0_83 = arith.constant 0 : index
    %144 = vector.load %arg6[%c0_82, %c0_83] : memref<1x32xf32, #tpu.memory_space<vmem>>, vector<1x32xf32>
    %145 = vector.broadcast %144 : vector<1x32xf32> to vector<64x32xf32>
    %146 = arith.addf %143, %145 : vector<64x32xf32>
    %cst_84 = arith.constant 0.000000e+00 : f32
    %147 = vector.broadcast %cst_84 : f32 to vector<64x32xf32>
    %148 = arith.cmpf oge, %146, %147 : vector<64x32xf32>
    %cst_85 = arith.constant 0.00999999977 : f32
    %149 = vector.broadcast %cst_85 : f32 to vector<64x32xf32>
    %150 = arith.mulf %149, %146 : vector<64x32xf32>
    %151 = arith.select %148, %146, %150 : vector<64x32xi1>, vector<64x32xf32>
    %c0_86 = arith.constant 0 : index
    %c0_87 = arith.constant 0 : index
    %152 = vector.load %arg28[%c0_86, %c0_87] : memref<73x32xf32, #tpu.memory_space<vmem>>, vector<64x32xf32>
    tpu.vector_store %arg28[%c0_86, %c0_87], %151 {strides = array<i32>} : memref<73x32xf32, #tpu.memory_space<vmem>>, vector<64x32xf32>,
    %cst_88 = arith.constant 0.000000e+00 : f32
    %153 = vector.broadcast %cst_88 : f32 to vector<9x32xf32>
    %c64 = arith.constant 64 : index
    %c0_89 = arith.constant 0 : index
    %154 = vector.load %arg28[%c64, %c0_89] : memref<73x32xf32, #tpu.memory_space<vmem>>, vector<9x32xf32>
    tpu.vector_store %arg28[%c64, %c0_89], %153 {strides = array<i32>} : memref<73x32xf32, #tpu.memory_space<vmem>>, vector<9x32xf32>,
    %c1_90 = arith.constant 1 : index
    %c0_91 = arith.constant 0 : index
    %155 = vector.load %arg28[%c1_90, %c0_91] : memref<73x32xf32, #tpu.memory_space<vmem>>, vector<64x32xf32>
    %156 = arith.maximumf %151, %155 : vector<64x32xf32>
    %c8_92 = arith.constant 8 : index
    %c0_93 = arith.constant 0 : index
    %157 = vector.load %arg28[%c8_92, %c0_93] : memref<73x32xf32, #tpu.memory_space<vmem>>, vector<64x32xf32>
    %c9_94 = arith.constant 9 : index
    %c0_95 = arith.constant 0 : index
    %158 = vector.load %arg28[%c9_94, %c0_95] : memref<73x32xf32, #tpu.memory_space<vmem>>, vector<64x32xf32>
    %159 = arith.maximumf %157, %158 : vector<64x32xf32>
    %160 = arith.maximumf %156, %159 : vector<64x32xf32>
    %c0_96 = arith.constant 0 : index
    %c0_97 = arith.constant 0 : index
    %161 = vector.load %arg12[%c0_96, %c0_97] : memref<26x64xf32, #tpu.memory_space<vmem>>, vector<26x64xf32>
    %cst_98 = arith.constant dense<0.000000e+00> : vector<26x32xf32>
    %162 = tpu.matmul %161, %160, %cst_98 {dimension_numbers = #tpu.dot_dimension_numbers<[1], [0], [0], [1], [0, 0, 1, 1], [], []>} : vector<26x64xf32>, vector<64x32xf32>, vector<26x32xf32> -> vector<26x32xf32>
    %c0_99 = arith.constant 0 : index
    %c0_100 = arith.constant 0 : index
    %163 = vector.load %arg25[%c0_99, %c0_100] : memref<26x32xf32, #tpu.memory_space<vmem>>, vector<26x32xf32>
    tpu.vector_store %arg25[%c0_99, %c0_100], %162 {strides = array<i32>} : memref<26x32xf32, #tpu.memory_space<vmem>>, vector<26x32xf32>,
    %164 = tpu.iota {dimensions = array<i32: 0>} : vector<16x1xi32>
    %c3_i32 = arith.constant 3 : i32
    %165 = vector.broadcast %c3_i32 : i32 to vector<16x1xi32>
    %166 = arith.andi %164, %165 : vector<16x1xi32>
    %c0_i32_101 = arith.constant 0 : i32
    %167 = vector.broadcast %c0_i32_101 : i32 to vector<16x1xi32>
    %168 = arith.cmpi ne, %166, %167 : vector<16x1xi32>
    %c3_i32_102 = arith.constant 3 : i32
    %169 = vector.broadcast %c3_i32_102 : i32 to vector<16x1xi32>
    %170 = arith.cmpi ne, %166, %169 : vector<16x1xi32>
    %c0_103 = arith.constant 0 : index
    %c0_104 = arith.constant 0 : index
    %171 = vector.load %arg25[%c0_103, %c0_104] : memref<26x32xf32, #tpu.memory_space<vmem>>, vector<16x32xf32>
    %cst_105 = arith.constant 0.000000e+00 : f32
    %172 = vector.shape_cast %168 : vector<16x1xi1> to vector<16x1xi1>
    %173 = vector.broadcast %172 : vector<16x1xi1> to vector<16x32xi1>
    %174 = vector.broadcast %cst_105 : f32 to vector<16x32xf32>
    %175 = arith.select %173, %171, %174 : vector<16x32xi1>, vector<16x32xf32>
    %c1_106 = arith.constant 1 : index
    %c0_107 = arith.constant 0 : index
    %176 = vector.load %arg25[%c1_106, %c0_107] : memref<26x32xf32, #tpu.memory_space<vmem>>, vector<16x32xf32>
    %c2_108 = arith.constant 2 : index
    %c0_109 = arith.constant 0 : index
    %177 = vector.load %arg25[%c2_108, %c0_109] : memref<26x32xf32, #tpu.memory_space<vmem>>, vector<16x32xf32>
    %cst_110 = arith.constant 0.000000e+00 : f32
    %178 = vector.shape_cast %170 : vector<16x1xi1> to vector<16x1xi1>
    %179 = vector.broadcast %178 : vector<16x1xi1> to vector<16x32xi1>
    %180 = vector.broadcast %cst_110 : f32 to vector<16x32xf32>
    %181 = arith.select %179, %177, %180 : vector<16x32xi1>, vector<16x32xf32>
    %c4_111 = arith.constant 4 : index
    %c0_112 = arith.constant 0 : index
    %182 = vector.load %arg25[%c4_111, %c0_112] : memref<26x32xf32, #tpu.memory_space<vmem>>, vector<16x32xf32>
    %cst_113 = arith.constant 0.000000e+00 : f32
    %183 = vector.shape_cast %168 : vector<16x1xi1> to vector<16x1xi1>
    %184 = vector.broadcast %183 : vector<16x1xi1> to vector<16x32xi1>
    %185 = vector.broadcast %cst_113 : f32 to vector<16x32xf32>
    %186 = arith.select %184, %182, %185 : vector<16x32xi1>, vector<16x32xf32>
    %c5_114 = arith.constant 5 : index
    %c0_115 = arith.constant 0 : index
    %187 = vector.load %arg25[%c5_114, %c0_115] : memref<26x32xf32, #tpu.memory_space<vmem>>, vector<16x32xf32>
    %c6_116 = arith.constant 6 : index
    %c0_117 = arith.constant 0 : index
    %188 = vector.load %arg25[%c6_116, %c0_117] : memref<26x32xf32, #tpu.memory_space<vmem>>, vector<16x32xf32>
    %cst_118 = arith.constant 0.000000e+00 : f32
    %189 = vector.shape_cast %170 : vector<16x1xi1> to vector<16x1xi1>
    %190 = vector.broadcast %189 : vector<16x1xi1> to vector<16x32xi1>
    %191 = vector.broadcast %cst_118 : f32 to vector<16x32xf32>
    %192 = arith.select %190, %188, %191 : vector<16x32xi1>, vector<16x32xf32>
    %c8_119 = arith.constant 8 : index
    %c0_120 = arith.constant 0 : index
    %193 = vector.load %arg25[%c8_119, %c0_120] : memref<26x32xf32, #tpu.memory_space<vmem>>, vector<16x32xf32>
    %cst_121 = arith.constant 0.000000e+00 : f32
    %194 = vector.shape_cast %168 : vector<16x1xi1> to vector<16x1xi1>
    %195 = vector.broadcast %194 : vector<16x1xi1> to vector<16x32xi1>
    %196 = vector.broadcast %cst_121 : f32 to vector<16x32xf32>
    %197 = arith.select %195, %193, %196 : vector<16x32xi1>, vector<16x32xf32>
    %c9_122 = arith.constant 9 : index
    %c0_123 = arith.constant 0 : index
    %198 = vector.load %arg25[%c9_122, %c0_123] : memref<26x32xf32, #tpu.memory_space<vmem>>, vector<16x32xf32>
    %c10_124 = arith.constant 10 : index
    %c0_125 = arith.constant 0 : index
    %199 = vector.load %arg25[%c10_124, %c0_125] : memref<26x32xf32, #tpu.memory_space<vmem>>, vector<16x32xf32>
    %cst_126 = arith.constant 0.000000e+00 : f32
    %200 = vector.shape_cast %170 : vector<16x1xi1> to vector<16x1xi1>
    %201 = vector.broadcast %200 : vector<16x1xi1> to vector<16x32xi1>
    %202 = vector.broadcast %cst_126 : f32 to vector<16x32xf32>
    %203 = arith.select %201, %199, %202 : vector<16x32xi1>, vector<16x32xf32>
    %204 = tpu.concatenate %175, %176, %181, %186, %187, %192, %197, %198, %203 in 1 : vector<16x32xf32>, vector<16x32xf32>, vector<16x32xf32>, vector<16x32xf32>, vector<16x32xf32>, vector<16x32xf32>, vector<16x32xf32>, vector<16x32xf32>, vector<16x32xf32> -> vector<16x288xf32>
    %c0_127 = arith.constant 0 : index
    %c0_128 = arith.constant 0 : index
    %205 = vector.load %arg7[%c0_127, %c0_128] : memref<288x64xf32, #tpu.memory_space<vmem>>, vector<288x64xf32>
    %cst_129 = arith.constant dense<0.000000e+00> : vector<16x64xf32>
    %206 = tpu.matmul %204, %205, %cst_129 {dimension_numbers = #tpu.dot_dimension_numbers<[1], [0], [0], [1], [0, 0, 1, 1], [], []>} : vector<16x288xf32>, vector<288x64xf32>, vector<16x64xf32> -> vector<16x64xf32>
    %c0_130 = arith.constant 0 : index
    %c0_131 = arith.constant 0 : index
    %207 = vector.load %arg8[%c0_130, %c0_131] : memref<1x64xf32, #tpu.memory_space<vmem>>, vector<1x64xf32>
    %208 = vector.broadcast %207 : vector<1x64xf32> to vector<16x64xf32>
    %209 = arith.addf %206, %208 : vector<16x64xf32>
    %cst_132 = arith.constant 0.000000e+00 : f32
    %210 = vector.broadcast %cst_132 : f32 to vector<16x64xf32>
    %211 = arith.cmpf oge, %209, %210 : vector<16x64xf32>
    %cst_133 = arith.constant 0.00999999977 : f32
    %212 = vector.broadcast %cst_133 : f32 to vector<16x64xf32>
    %213 = arith.mulf %212, %209 : vector<16x64xf32>
    %214 = arith.select %211, %209, %213 : vector<16x64xi1>, vector<16x64xf32>
    %c0_134 = arith.constant 0 : index
    %c0_135 = arith.constant 0 : index
    %215 = vector.load %arg29[%c0_134, %c0_135] : memref<21x64xf32, #tpu.memory_space<vmem>>, vector<16x64xf32>
    tpu.vector_store %arg29[%c0_134, %c0_135], %214 {strides = array<i32>} : memref<21x64xf32, #tpu.memory_space<vmem>>, vector<16x64xf32>,
    %cst_136 = arith.constant 0.000000e+00 : f32
    %216 = vector.broadcast %cst_136 : f32 to vector<5x64xf32>
    %c16_137 = arith.constant 16 : index
    %c0_138 = arith.constant 0 : index
    %217 = vector.load %arg29[%c16_137, %c0_138] : memref<21x64xf32, #tpu.memory_space<vmem>>, vector<5x64xf32>
    tpu.vector_store %arg29[%c16_137, %c0_138], %216 {strides = array<i32>} : memref<21x64xf32, #tpu.memory_space<vmem>>, vector<5x64xf32>,
    %c1_139 = arith.constant 1 : index
    %c0_140 = arith.constant 0 : index
    %218 = vector.load %arg29[%c1_139, %c0_140] : memref<21x64xf32, #tpu.memory_space<vmem>>, vector<16x64xf32>
    %219 = arith.maximumf %214, %218 : vector<16x64xf32>
    %c4_141 = arith.constant 4 : index
    %c0_142 = arith.constant 0 : index
    %220 = vector.load %arg29[%c4_141, %c0_142] : memref<21x64xf32, #tpu.memory_space<vmem>>, vector<16x64xf32>
    %c5_143 = arith.constant 5 : index
    %c0_144 = arith.constant 0 : index
    %221 = vector.load %arg29[%c5_143, %c0_144] : memref<21x64xf32, #tpu.memory_space<vmem>>, vector<16x64xf32>
    %222 = arith.maximumf %220, %221 : vector<16x64xf32>
    %223 = arith.maximumf %219, %222 : vector<16x64xf32>
    %c0_145 = arith.constant 0 : index
    %c0_146 = arith.constant 0 : index
    %224 = vector.load %arg13[%c0_145, %c0_146] : memref<10x16xf32, #tpu.memory_space<vmem>>, vector<10x16xf32>
    %cst_147 = arith.constant dense<0.000000e+00> : vector<10x64xf32>
    %225 = tpu.matmul %224, %223, %cst_147 {dimension_numbers = #tpu.dot_dimension_numbers<[1], [0], [0], [1], [0, 0, 1, 1], [], []>} : vector<10x16xf32>, vector<16x64xf32>, vector<10x64xf32> -> vector<10x64xf32>
    %c0_148 = arith.constant 0 : index
    %c0_149 = arith.constant 0 : index
    %226 = vector.load %arg26[%c0_148, %c0_149] : memref<10x64xf32, #tpu.memory_space<vmem>>, vector<10x64xf32>
    tpu.vector_store %arg26[%c0_148, %c0_149], %225 {strides = array<i32>} : memref<10x64xf32, #tpu.memory_space<vmem>>, vector<10x64xf32>,
    %227 = tpu.iota {dimensions = array<i32: 0>} : vector<4x1xi32>
    %c1_i32 = arith.constant 1 : i32
    %228 = vector.broadcast %c1_i32 : i32 to vector<4x1xi32>
    %229 = arith.andi %227, %228 : vector<4x1xi32>
    %c0_i32_150 = arith.constant 0 : i32
    %230 = vector.broadcast %c0_i32_150 : i32 to vector<4x1xi32>
    %231 = arith.cmpi ne, %229, %230 : vector<4x1xi32>
    %c1_i32_151 = arith.constant 1 : i32
    %232 = vector.broadcast %c1_i32_151 : i32 to vector<4x1xi32>
    %233 = arith.cmpi ne, %229, %232 : vector<4x1xi32>
    %c0_152 = arith.constant 0 : index
    %c0_153 = arith.constant 0 : index
    %234 = vector.load %arg26[%c0_152, %c0_153] : memref<10x64xf32, #tpu.memory_space<vmem>>, vector<4x64xf32>
    %cst_154 = arith.constant 0.000000e+00 : f32
    %235 = vector.shape_cast %231 : vector<4x1xi1> to vector<4x1xi1>
    %236 = vector.broadcast %235 : vector<4x1xi1> to vector<4x64xi1>
    %237 = vector.broadcast %cst_154 : f32 to vector<4x64xf32>
    %238 = arith.select %236, %234, %237 : vector<4x64xi1>, vector<4x64xf32>
    %c1_155 = arith.constant 1 : index
    %c0_156 = arith.constant 0 : index
    %239 = vector.load %arg26[%c1_155, %c0_156] : memref<10x64xf32, #tpu.memory_space<vmem>>, vector<4x64xf32>
    %c2_157 = arith.constant 2 : index
    %c0_158 = arith.constant 0 : index
    %240 = vector.load %arg26[%c2_157, %c0_158] : memref<10x64xf32, #tpu.memory_space<vmem>>, vector<4x64xf32>
    %cst_159 = arith.constant 0.000000e+00 : f32
    %241 = vector.shape_cast %233 : vector<4x1xi1> to vector<4x1xi1>
    %242 = vector.broadcast %241 : vector<4x1xi1> to vector<4x64xi1>
    %243 = vector.broadcast %cst_159 : f32 to vector<4x64xf32>
    %244 = arith.select %242, %240, %243 : vector<4x64xi1>, vector<4x64xf32>
    %c2_160 = arith.constant 2 : index
    %c0_161 = arith.constant 0 : index
    %245 = vector.load %arg26[%c2_160, %c0_161] : memref<10x64xf32, #tpu.memory_space<vmem>>, vector<4x64xf32>
    %cst_162 = arith.constant 0.000000e+00 : f32
    %246 = vector.shape_cast %231 : vector<4x1xi1> to vector<4x1xi1>
    %247 = vector.broadcast %246 : vector<4x1xi1> to vector<4x64xi1>
    %248 = vector.broadcast %cst_162 : f32 to vector<4x64xf32>
    %249 = arith.select %247, %245, %248 : vector<4x64xi1>, vector<4x64xf32>
    %c3_163 = arith.constant 3 : index
    %c0_164 = arith.constant 0 : index
    %250 = vector.load %arg26[%c3_163, %c0_164] : memref<10x64xf32, #tpu.memory_space<vmem>>, vector<4x64xf32>
    %c4_165 = arith.constant 4 : index
    %c0_166 = arith.constant 0 : index
    %251 = vector.load %arg26[%c4_165, %c0_166] : memref<10x64xf32, #tpu.memory_space<vmem>>, vector<4x64xf32>
    %cst_167 = arith.constant 0.000000e+00 : f32
    %252 = vector.shape_cast %233 : vector<4x1xi1> to vector<4x1xi1>
    %253 = vector.broadcast %252 : vector<4x1xi1> to vector<4x64xi1>
    %254 = vector.broadcast %cst_167 : f32 to vector<4x64xf32>
    %255 = arith.select %253, %251, %254 : vector<4x64xi1>, vector<4x64xf32>
    %c4_168 = arith.constant 4 : index
    %c0_169 = arith.constant 0 : index
    %256 = vector.load %arg26[%c4_168, %c0_169] : memref<10x64xf32, #tpu.memory_space<vmem>>, vector<4x64xf32>
    %cst_170 = arith.constant 0.000000e+00 : f32
    %257 = vector.shape_cast %231 : vector<4x1xi1> to vector<4x1xi1>
    %258 = vector.broadcast %257 : vector<4x1xi1> to vector<4x64xi1>
    %259 = vector.broadcast %cst_170 : f32 to vector<4x64xf32>
    %260 = arith.select %258, %256, %259 : vector<4x64xi1>, vector<4x64xf32>
    %c5_171 = arith.constant 5 : index
    %c0_172 = arith.constant 0 : index
    %261 = vector.load %arg26[%c5_171, %c0_172] : memref<10x64xf32, #tpu.memory_space<vmem>>, vector<4x64xf32>
    %c6_173 = arith.constant 6 : index
    %c0_174 = arith.constant 0 : index
    %262 = vector.load %arg26[%c6_173, %c0_174] : memref<10x64xf32, #tpu.memory_space<vmem>>, vector<4x64xf32>
    %cst_175 = arith.constant 0.000000e+00 : f32
    %263 = vector.shape_cast %233 : vector<4x1xi1> to vector<4x1xi1>
    %264 = vector.broadcast %263 : vector<4x1xi1> to vector<4x64xi1>
    %265 = vector.broadcast %cst_175 : f32 to vector<4x64xf32>
    %266 = arith.select %264, %262, %265 : vector<4x64xi1>, vector<4x64xf32>
    %267 = tpu.concatenate %238, %239, %244, %249, %250, %255, %260, %261, %266 in 1 : vector<4x64xf32>, vector<4x64xf32>, vector<4x64xf32>, vector<4x64xf32>, vector<4x64xf32>, vector<4x64xf32>, vector<4x64xf32>, vector<4x64xf32>, vector<4x64xf32> -> vector<4x576xf32>
    %c0_176 = arith.constant 0 : index
    %c0_177 = arith.constant 0 : index
    %268 = vector.load %arg9[%c0_176, %c0_177] : memref<576x128xf32, #tpu.memory_space<vmem>>, vector<576x128xf32>
    %cst_178 = arith.constant dense<0.000000e+00> : vector<4x128xf32>
    %269 = tpu.matmul %267, %268, %cst_178 {dimension_numbers = #tpu.dot_dimension_numbers<[1], [0], [0], [1], [0, 0, 1, 1], [], []>} : vector<4x576xf32>, vector<576x128xf32>, vector<4x128xf32> -> vector<4x128xf32>
    %c0_179 = arith.constant 0 : index
    %c0_180 = arith.constant 0 : index
    %270 = vector.load %arg10[%c0_179, %c0_180] : memref<1x128xf32, #tpu.memory_space<vmem>>, vector<1x128xf32>
    %271 = vector.broadcast %270 : vector<1x128xf32> to vector<4x128xf32>
    %272 = arith.addf %269, %271 : vector<4x128xf32>
    %cst_181 = arith.constant 0.000000e+00 : f32
    %273 = vector.broadcast %cst_181 : f32 to vector<4x128xf32>
    %274 = arith.cmpf oge, %272, %273 : vector<4x128xf32>
    %cst_182 = arith.constant 0.00999999977 : f32
    %275 = vector.broadcast %cst_182 : f32 to vector<4x128xf32>
    %276 = arith.mulf %275, %272 : vector<4x128xf32>
    %277 = arith.select %274, %272, %276 : vector<4x128xi1>, vector<4x128xf32>
    %cst_183 = arith.constant dense<0xFF800000> : vector<128xf32>
    %278 = vector.multi_reduction <maximumf>, %277, %cst_183 [0] : vector<4x128xf32> to vector<128xf32>
    %279 = vector.shape_cast %278 : vector<128xf32> to vector<1x128xf32>
    %c0_184 = arith.constant 0 : index
    %c0_185 = arith.constant 0 : index
    %280 = vector.load %arg14[%c0_184, %c0_185] : memref<128x128xf32, #tpu.memory_space<vmem>>, vector<128x128xf32>
    %cst_186 = arith.constant dense<0.000000e+00> : vector<1x128xf32>
    %281 = tpu.matmul %279, %280, %cst_186 {dimension_numbers = #tpu.dot_dimension_numbers<[1], [0], [0], [1], [0, 0, 1, 1], [], []>} : vector<1x128xf32>, vector<128x128xf32>, vector<1x128xf32> -> vector<1x128xf32>
    %c0_187 = arith.constant 0 : index
    %c0_188 = arith.constant 0 : index
    %282 = vector.load %arg15[%c0_187, %c0_188] : memref<1x128xf32, #tpu.memory_space<vmem>>, vector<1x128xf32>
    %283 = arith.addf %281, %282 : vector<1x128xf32>
    %cst_189 = arith.constant 0.000000e+00 : f32
    %284 = vector.broadcast %cst_189 : f32 to vector<1x128xf32>
    %285 = arith.maximumf %283, %284 : vector<1x128xf32>
    %c0_190 = arith.constant 0 : index
    %c0_191 = arith.constant 0 : index
    %c0_192 = arith.constant 0 : index
    %286 = vector.load %arg2[%c0_190, %c0_191, %c0_192] : memref<1x1x1xf32, #tpu.memory_space<vmem>>, vector<1x1x1xf32>
    %287 = vector.shape_cast %286 : vector<1x1x1xf32> to vector<1x1xf32>
    %c0_193 = arith.constant 0 : index
    %c0_194 = arith.constant 0 : index
    %288 = vector.load %arg16[%c0_193, %c0_194] : memref<1x16xf32, #tpu.memory_space<vmem>>, vector<1x16xf32>
    %289 = vector.broadcast %287 : vector<1x1xf32> to vector<1x16xf32>
    %290 = arith.mulf %289, %288 : vector<1x16xf32>
    %c0_195 = arith.constant 0 : index
    %c0_196 = arith.constant 0 : index
    %291 = vector.load %arg17[%c0_195, %c0_196] : memref<1x16xf32, #tpu.memory_space<vmem>>, vector<1x16xf32>
    %292 = arith.addf %290, %291 : vector<1x16xf32>
    %cst_197 = arith.constant 0.000000e+00 : f32
    %293 = vector.broadcast %cst_197 : f32 to vector<1x16xf32>
    %294 = arith.maximumf %292, %293 : vector<1x16xf32>
    %c0_198 = arith.constant 0 : index
    %c0_199 = arith.constant 0 : index
    %295 = vector.load %arg18[%c0_198, %c0_199] : memref<128x64xf32, #tpu.memory_space<vmem>>, vector<128x64xf32>
    %cst_200 = arith.constant dense<0.000000e+00> : vector<1x64xf32>
    %296 = tpu.matmul %285, %295, %cst_200 {dimension_numbers = #tpu.dot_dimension_numbers<[1], [0], [0], [1], [0, 0, 1, 1], [], []>} : vector<1x128xf32>, vector<128x64xf32>, vector<1x64xf32> -> vector<1x64xf32>
    %c0_201 = arith.constant 0 : index
    %c0_202 = arith.constant 0 : index
    %297 = vector.load %arg19[%c0_201, %c0_202] : memref<16x64xf32, #tpu.memory_space<vmem>>, vector<16x64xf32>
    %cst_203 = arith.constant dense<0.000000e+00> : vector<1x64xf32>
    %298 = tpu.matmul %294, %297, %cst_203 {dimension_numbers = #tpu.dot_dimension_numbers<[1], [0], [0], [1], [0, 0, 1, 1], [], []>} : vector<1x16xf32>, vector<16x64xf32>, vector<1x64xf32> -> vector<1x64xf32>
    %299 = arith.addf %296, %298 : vector<1x64xf32>
    %c0_204 = arith.constant 0 : index
    %c0_205 = arith.constant 0 : index
    %300 = vector.load %arg20[%c0_204, %c0_205] : memref<1x64xf32, #tpu.memory_space<vmem>>, vector<1x64xf32>
    %301 = arith.addf %299, %300 : vector<1x64xf32>
    %cst_206 = arith.constant 0.000000e+00 : f32
    %302 = vector.broadcast %cst_206 : f32 to vector<1x64xf32>
    %303 = arith.maximumf %301, %302 : vector<1x64xf32>
    %c0_207 = arith.constant 0 : index
    %c0_208 = arith.constant 0 : index
    %304 = vector.load %arg21[%c0_207, %c0_208] : memref<64x1xf32, #tpu.memory_space<vmem>>, vector<64x1xf32>
    %cst_209 = arith.constant dense<0.000000e+00> : vector<1x1xf32>
    %305 = tpu.matmul %303, %304, %cst_209 {dimension_numbers = #tpu.dot_dimension_numbers<[1], [0], [0], [1], [0, 0, 1, 1], [], []>} : vector<1x64xf32>, vector<64x1xf32>, vector<1x1xf32> -> vector<1x1xf32>
    %c0_210 = arith.constant 0 : index
    %c0_211 = arith.constant 0 : index
    %306 = vector.load %arg22[%c0_210, %c0_211] : memref<1x1xf32, #tpu.memory_space<vmem>>, vector<1x1xf32>
    %307 = arith.addf %305, %306 : vector<1x1xf32>
    %308 = vector.shape_cast %307 : vector<1x1xf32> to vector<1x1x1xf32>
    %c0_212 = arith.constant 0 : index
    %c0_213 = arith.constant 0 : index
    %c0_214 = arith.constant 0 : index
    %309 = vector.load %arg23[%c0_212, %c0_213, %c0_214] : memref<1x1x1xf32, #tpu.memory_space<vmem>>, vector<1x1x1xf32>
    tpu.vector_store %arg23[%c0_212, %c0_213, %c0_214], %308 {strides = array<i32>} : memref<1x1x1xf32, #tpu.memory_space<vmem>>, vector<1x1x1xf32>,
    return
  }
  func.func @transform_0(%arg0: i32) -> (i32, i32, i32) {
    %c0_i32 = arith.constant 0 : i32
    %c0_i32_0 = arith.constant 0 : i32
    %c0_i32_1 = arith.constant 0 : i32
    return %arg0, %c0_i32, %c0_i32_0 : i32, i32, i32
  }
  func.func @transform_1(%arg0: i32) -> (i32, i32, i32) {
    %c0_i32 = arith.constant 0 : i32
    %c0_i32_0 = arith.constant 0 : i32
    %c0_i32_1 = arith.constant 0 : i32
    return %arg0, %c0_i32, %c0_i32_0 : i32, i32, i32
  }
  func.func @transform_2(%arg0: i32) -> (i32, i32) {
    %c0_i32 = arith.constant 0 : i32
    %c0_i32_0 = arith.constant 0 : i32
    %c0_i32_1 = arith.constant 0 : i32
    return %c0_i32, %c0_i32_0 : i32, i32
  }
  func.func @transform_3(%arg0: i32) -> (i32, i32) {
    %c0_i32 = arith.constant 0 : i32
    %c0_i32_0 = arith.constant 0 : i32
    %c0_i32_1 = arith.constant 0 : i32
    return %c0_i32, %c0_i32_0 : i32, i32
  }
  func.func @transform_4(%arg0: i32) -> (i32, i32) {
    %c0_i32 = arith.constant 0 : i32
    %c0_i32_0 = arith.constant 0 : i32
    %c0_i32_1 = arith.constant 0 : i32
    return %c0_i32, %c0_i32_0 : i32, i32
  }
  func.func @transform_5(%arg0: i32) -> (i32, i32) {
    %c0_i32 = arith.constant 0 : i32
    %c0_i32_0 = arith.constant 0 : i32
    %c0_i32_1 = arith.constant 0 : i32
    return %c0_i32, %c0_i32_0 : i32, i32
  }
  func.func @transform_6(%arg0: i32) -> (i32, i32) {
    %c0_i32 = arith.constant 0 : i32
    %c0_i32_0 = arith.constant 0 : i32
    %c0_i32_1 = arith.constant 0 : i32
    return %c0_i32, %c0_i32_0 : i32, i32
  }
  func.func @transform_7(%arg0: i32) -> (i32, i32) {
    %c0_i32 = arith.constant 0 : i32
    %c0_i32_0 = arith.constant 0 : i32
    %c0_i32_1 = arith.constant 0 : i32
    return %c0_i32, %c0_i32_0 : i32, i32
  }
  func.func @transform_8(%arg0: i32) -> (i32, i32) {
    %c0_i32 = arith.constant 0 : i32
    %c0_i32_0 = arith.constant 0 : i32
    %c0_i32_1 = arith.constant 0 : i32
    return %c0_i32, %c0_i32_0 : i32, i32
  }
  func.func @transform_9(%arg0: i32) -> (i32, i32) {
    %c0_i32 = arith.constant 0 : i32
    %c0_i32_0 = arith.constant 0 : i32
    %c0_i32_1 = arith.constant 0 : i32
    return %c0_i32, %c0_i32_0 : i32, i32
  }
  func.func @transform_10(%arg0: i32) -> (i32, i32) {
    %c0_i32 = arith.constant 0 : i32
    %c0_i32_0 = arith.constant 0 : i32
    %c0_i32_1 = arith.constant 0 : i32
    return %c0_i32, %c0_i32_0 : i32, i32
  }
  func.func @transform_11(%arg0: i32) -> (i32, i32) {
    %c0_i32 = arith.constant 0 : i32
    %c0_i32_0 = arith.constant 0 : i32
    %c0_i32_1 = arith.constant 0 : i32
    return %c0_i32, %c0_i32_0 : i32, i32
  }
  func.func @transform_12(%arg0: i32) -> (i32, i32) {
    %c0_i32 = arith.constant 0 : i32
    %c0_i32_0 = arith.constant 0 : i32
    %c0_i32_1 = arith.constant 0 : i32
    return %c0_i32, %c0_i32_0 : i32, i32
  }
  func.func @transform_13(%arg0: i32) -> (i32, i32) {
    %c0_i32 = arith.constant 0 : i32
    %c0_i32_0 = arith.constant 0 : i32
    %c0_i32_1 = arith.constant 0 : i32
    return %c0_i32, %c0_i32_0 : i32, i32
  }
  func.func @transform_14(%arg0: i32) -> (i32, i32) {
    %c0_i32 = arith.constant 0 : i32
    %c0_i32_0 = arith.constant 0 : i32
    %c0_i32_1 = arith.constant 0 : i32
    return %c0_i32, %c0_i32_0 : i32, i32
  }
  func.func @transform_15(%arg0: i32) -> (i32, i32) {
    %c0_i32 = arith.constant 0 : i32
    %c0_i32_0 = arith.constant 0 : i32
    %c0_i32_1 = arith.constant 0 : i32
    return %c0_i32, %c0_i32_0 : i32, i32
  }
  func.func @transform_16(%arg0: i32) -> (i32, i32) {
    %c0_i32 = arith.constant 0 : i32
    %c0_i32_0 = arith.constant 0 : i32
    %c0_i32_1 = arith.constant 0 : i32
    return %c0_i32, %c0_i32_0 : i32, i32
  }
  func.func @transform_17(%arg0: i32) -> (i32, i32) {
    %c0_i32 = arith.constant 0 : i32
    %c0_i32_0 = arith.constant 0 : i32
    %c0_i32_1 = arith.constant 0 : i32
    return %c0_i32, %c0_i32_0 : i32, i32
  }
  func.func @transform_18(%arg0: i32) -> (i32, i32) {
    %c0_i32 = arith.constant 0 : i32
    %c0_i32_0 = arith.constant 0 : i32
    %c0_i32_1 = arith.constant 0 : i32
    return %c0_i32, %c0_i32_0 : i32, i32
  }
  func.func @transform_19(%arg0: i32) -> (i32, i32) {
    %c0_i32 = arith.constant 0 : i32
    %c0_i32_0 = arith.constant 0 : i32
    %c0_i32_1 = arith.constant 0 : i32
    return %c0_i32, %c0_i32_0 : i32, i32
  }
  func.func @transform_20(%arg0: i32) -> (i32, i32) {
    %c0_i32 = arith.constant 0 : i32
    %c0_i32_0 = arith.constant 0 : i32
    %c0_i32_1 = arith.constant 0 : i32
    return %c0_i32, %c0_i32_0 : i32, i32
  }
  func.func @transform_21(%arg0: i32) -> (i32, i32) {
    %c0_i32 = arith.constant 0 : i32
    %c0_i32_0 = arith.constant 0 : i32
    %c0_i32_1 = arith.constant 0 : i32
    return %c0_i32, %c0_i32_0 : i32, i32
  }
  func.func @transform_22(%arg0: i32) -> (i32, i32, i32) {
    %c0_i32 = arith.constant 0 : i32
    %c0_i32_0 = arith.constant 0 : i32
    %c0_i32_1 = arith.constant 0 : i32
    return %arg0, %c0_i32, %c0_i32_0 : i32, i32, i32
  }
}

</mosaic_0001>

<bundles_post_ra>
// kernel: tpu_custom_call.1
= control target key start
LH: loop header
LB: loop body
LE: loop exit
PB: predicated region body
PF: predicated region fallthrough
CT: control target
= control target key end

     0   :  { %s5340_s29 = smov 0   ;;  %s8680_s0 = inlined_call_operand.vmem [shape: f32[2,290,1], index: 0, kind: input, shape index: {}]   ;;  %s8681_s1 = inlined_call_operand.vmem [shape: f32[2,1,1], index: 1, kind: input, shape index: {}]   ;;  %s8682_s2 = inlined_call_operand.vmem [shape: f32[9,16], index: 2, kind: input, shape index: {}]   ;;  %s8683_s3 = inlined_call_operand.vmem [shape: f32[1,16], index: 3, kind: input, shape index: {}]   ;;  %s8684_s4 = inlined_call_operand.vmem [shape: f32[144,32], index: 4, kind: input, shape index: {}]   ;;  %s8685_s5 = inlined_call_operand.vmem [shape: f32[1,32], index: 5, kind: input, shape index: {}]   ;;  %s8686_s6 = inlined_call_operand.vmem [shape: f32[288,64], index: 6, kind: input, shape index: {}]   ;;  %s8687_s7 = inlined_call_operand.vmem [shape: f32[1,64], index: 7, kind: input, shape index: {}]   ;;  %s8688_s8 = inlined_call_operand.vmem [shape: f32[576,128], index: 8, kind: input, shape index: {}]   ;;  %s8689_s9 = inlined_call_operand.vmem [shape: f32[1,128], index: 9, kind: input, shape index: {}]   ;;  %s8690_s10 = inlined_call_operand.vmem [shape: f32[82,256], index: 10, kind: input, shape index: {}]   ;;  %s8691_s11 = inlined_call_operand.vmem [shape: f32[26,64], index: 11, kind: input, shape index: {}]   ;;  %s8692_s12 = inlined_call_operand.vmem [shape: f32[10,16], index: 12, kind: input, shape index: {}]   ;;  %s8693_s13 = inlined_call_operand.vmem [shape: f32[128,128], index: 13, kind: input, shape index: {}]   ;;  %s8694_s14 = inlined_call_operand.vmem [shape: f32[1,128], index: 14, kind: input, shape index: {}]   ;;  %s8695_s15 = inlined_call_operand.vmem [shape: f32[1,16], index: 15, kind: input, shape index: {}]   ;;  %s8696_s16 = inlined_call_operand.vmem [shape: f32[1,16], index: 16, kind: input, shape index: {}]   ;;  %s8697_s17 = inlined_call_operand.vmem [shape: f32[128,64], index: 17, kind: input, shape index: {}]   ;;  %s8698_s18 = inlined_call_operand.vmem [shape: f32[16,64], index: 18, kind: input, shape index: {}]   ;;  %s8699_s19 = inlined_call_operand.vmem [shape: f32[1,64], index: 19, kind: input, shape index: {}]   ;;  %s8700_s20 = inlined_call_operand.vmem [shape: f32[64,1], index: 20, kind: input, shape index: {}]   ;;  %s8701_s21 = inlined_call_operand.<no memory space> [shape: f32[1,1], index: 21, kind: input, shape index: {}]   ;;  %s8702_s22 = inlined_call_operand.vmem [shape: f32[2,1,1], index: 22, kind: output, shape index: {}]  }
   0x1   :  { %8810 = sst [smem:[#allocation141_spill]] %s8680_s0  ;;  %v27_v0 = vstv %s8701_s21 }
   0x2   :  { %8811 = sst [smem:[#allocation142_spill]] %s8681_s1  ;;  %28 = vst [vmem:[#allocation8] sm:$0x1] %v27_v0 }
   0x3   :  { %8812 = sst [smem:[#allocation143_spill]] %s8682_s2 }
   0x4   :  { %8813 = sst [smem:[#allocation144_spill]] %s8683_s3 }
   0x5   :  { %8814 = sst [smem:[#allocation145_spill]] %s8684_s4 }
   0x6   :  { %8815 = sst [smem:[#allocation146_spill]] %s8685_s5 }
   0x7   :  { %8816 = sst [smem:[#allocation147_spill]] %s8686_s6 }
   0x8   :  { %8817 = sst [smem:[#allocation148_spill]] %s8690_s10 }
   0x9 LB: > { %s4897_s30 = sadd.s32 4294967295, %s5211_s29   ;;  %p4901_p0 = scmp.ge.s32.totalorder %s5211_s29, 1  ;;  %s5211_s29 = sphi %s5340_s29, %s34_s29  }
   0xa   : > { %p622_p1 = scmp.lt.s32.totalorder %s5211_s29, 3 }
   0xc   : > { %p623_p2 = pnand %p4901_p0, %p622_p1 }
   0xe   : > { %626 = sbr.rel (%p623_p2) target bundleno = 2709 (0xa95), region = 108 }
  0x13   : > { %p685_p3 = scmp.lt.s32.totalorder %s4897_s30, 1  ;;  %v696_v1 = vlaneseq  ;;  %v5213_v2 = vmov 0   ;;  %s8821_s23 = sld [smem:[#allocation141_spill]]  ;;  %v8822_v12 = vmov 0  ;;  %v8825_v14 = vmov 0 }
  0x14   : > { %4944 = vset.pattern.permute.xlu2 %v5213_v2  ;;  %4943 = vset.pattern.permute.xlu1 %v5213_v2  ;;  %v8828_v17 = vmov 0  ;;  %v8832_v25 = vmov 0  ;;  %v8835_v28 = vmov 0  ;;  %v8848_v61 = vmov 0  ;;  %s9013_s6 = sld [smem:[#allocation143_spill]]  ;;  %s5215_s2 = smov 16  }
  0x15   : > { %4942 = vset.pattern.permute.xlu0 %v5213_v2  ;;  %s9296_s30 = smov (!%p685_p3, %s4897_s30), 1  ;;  %v5350_v3 = vshrl.u32 %v696_v1, 7  ;;  %s9017_s3 = sld [smem:[#allocation144_spill]] }
  0x16   : > { %s4924_s21 = smul.u32 296, %s9296_s30  ;;  %s9235_s10 = sld [smem:[#allocation148_spill]] }
  0x17   : > { %8818 = vst [vmem:[#allocation9_spill] sm:$0xff] %v5350_v3  ;;  %v5354_v4 = vadd.s32 32, %v5350_v3  ;;  %v5357_v5 = vadd.s32 16, %v5350_v3  ;;  %v729_v11 = vand.u32 15, %v5350_v3  ;;  %v705_v16 = vadd.s32 64, %v5350_v3  ;;  %s9236_s24 = sld [smem:[#allocation145_spill]] }
  0x18   : > { %v5387_v19 = vadd.s32 48, %v5350_v3  ;;  %v707_v27 = vadd.s32 80, %v5350_v3  ;;  %v711_v36 = vadd.s32 112, %v5350_v3  ;;  %v709_v37 = vadd.s32 96, %v5350_v3  ;;  %s8804_s27 = smov 32   ;;  %s5217_s28 = smov 48  }
  0x19   : > { %8819 = vst [vmem:[#allocation10_spill] sm:$0xff] %v5354_v4  ;;  %s5362_s1 = scalar_lea.vmem %s8821_s23, %s4924_s21  ;;  %v733_v6 = vand.u32 15, %v5354_v4  ;;  %v731_v7 = vand.u32 15, %v5357_v5  ;;  %vm5381_vm2 = vcmp.ne.s32.totalorder %v729_v11, 0  ;;  %v737_v23 = vand.u32 15, %v705_v16  ;;  %s5219_s21 = smov 80  }
  0x1a   : > { %8820 = vst [vmem:[#allocation11_spill] sm:$0xff] %v5357_v5  ;;  %v830_v8 = vld [vmem:[%s5362_s1 + $0x28] sm:$0xff]  ;;  %v828_v9 = vld [vmem:[%s5362_s1 + $0x18] sm:$0xff]  ;;  %v829_v13 = vld [vmem:[%s5362_s1 + $0x20] sm:$0xff]  ;;  %v8829_v17 = vsel %vm5381_vm2, 4294967295, %v8828_v17  ;;  %v735_v24 = vand.u32 15, %v5387_v19 }
  0x1b   : > { %v826_v10 = vld [vmem:[%s5362_s1 + $0x8] sm:$0xff]  ;;  %1154 = vperm.xlu2 %4944, %v830_v8   ;;  %1144 = vperm.xlu1 %4943, %v828_v9   ;;  %vm5370_vm0 = vcmp.ne.s32.totalorder %v733_v6, 0  ;;  %vm5375_vm1 = vcmp.ne.s32.totalorder %v731_v7, 0  ;;  %v827_v15 = vld [vmem:[%s5362_s1 + $0x10] sm:$0xff]  ;;  %8830 = vst [vmem:[#allocation14_spill] sm:$0xff] %v8829_v17  ;;  %v825_v18 = vld [vmem:[%s5362_s1] sm:$0xff] }
  0x1c   : > { %1134 = vperm.xlu0 %4942, %v826_v10   ;;  %v8823_v12 = vsel %vm5370_vm0, 4294967295, %v8822_v12  ;;  %v8826_v14 = vsel %vm5375_vm1, 4294967295, %v8825_v14  ;;  %8831 = vst [vmem:[#allocation15_spill] sm:$0xff] %v5387_v19  ;;  %v861_v20 = vsel %vm5370_vm0, %v829_v13, 0.0  ;;  %v859_v21 = vsel %vm5375_vm1, %v827_v15, 0.0  ;;  %v833_v26 = vld [vmem:[%s5362_s1 + $0x40] sm:$0xff] }
  0x1d   : > { %8824 = vst [vmem:[#allocation12_spill] sm:$0xff] %v8823_v12  ;;  %v857_v22 = vsel %vm5381_vm2, %v825_v18, 0.0  ;;  %vm5396_vm3 = vcmp.ne.s32.totalorder %v737_v23, 0  ;;  %vm5402_vm4 = vcmp.ne.s32.totalorder %v735_v24, 0  ;;  %v831_v29 = vld [vmem:[%s5362_s1 + $0x30] sm:$0xff]  ;;  %v832_v31 = vld [vmem:[%s5362_s1 + $0x38] sm:$0xff] }
  0x1e   : > { %8827 = vst [vmem:[#allocation13_spill] sm:$0xff] %v8826_v14  ;;  %v8833_v25 = vsel %vm5396_vm3, 4294967295, %v8832_v25  ;;  %v8836_v28 = vsel %vm5402_vm4, 4294967295, %v8835_v28  ;;  %v865_v30 = vsel %vm5396_vm3, %v833_v26, 0.0  ;;  %v863_v32 = vsel %vm5402_vm4, %v831_v29, 0.0  ;;  %v5417_v35 = vld [vmem:[%s5362_s1 + $0x50] sm:$0xff] }
  0x1f   : > { %8834 = vst [vmem:[#allocation16_spill] sm:$0xff] %v8833_v25  ;;  %v739_v33 = vand.u32 15, %v707_v27  ;;  %v5422_v38 = vld [vmem:[%s5362_s1 + $0x58] sm:$0xff]  ;;  %v834_v40 = vld [vmem:[%s5362_s1 + $0x48] sm:$0xff]  ;;  %v743_v41 = vand.u32 15, %v711_v36  ;;  %v741_v42 = vand.u32 15, %v709_v37 }
  0x20   : > { %8837 = vst [vmem:[#allocation17_spill] sm:$0xff] %v8836_v28  ;;  %v5434_v44 = vld [vmem:[%s5362_s1 + $0x70] sm:$0xff]  ;;  %v713_v45 = vadd.s32 128, %v5350_v3  ;;  %v5442_v47 = vld [vmem:[%s5362_s1 + $0x60] sm:$0xff]  ;;  %v5448_v49 = vld [vmem:[%s5362_s1 + $0x68] sm:$0xff]  ;;  %v717_v54 = vadd.s32 160, %v5350_v3 }
  0x21   : > { %vm5412_vm5 = vcmp.ne.s32.totalorder %v739_v33, 0  ;;  %8840 = vst [vmem:[#allocation18_spill] sm:$0xff] %v5417_v35  ;;  %vm5429_vm6 = vcmp.ne.s32.totalorder %v743_v41, 0  ;;  %vm5437_vm7 = vcmp.ne.s32.totalorder %v741_v42, 0  ;;  %v5459_v53 = vld [vmem:[%s5362_s1 + $0x80] sm:$0xff]  ;;  %v715_v55 = vadd.s32 144, %v5350_v3 }
  0x22   : > { %v867_v39 = vsel %vm5412_vm5, %v5417_v35, 0.0  ;;  %v871_v48 = vsel %vm5429_vm6, %v5434_v44, 0.0  ;;  %v869_v50 = vsel %vm5437_vm7, %v5442_v47, 0.0  ;;  %v745_v51 = vand.u32 15, %v713_v45  ;;  %v5464_v56 = vld [vmem:[%s5362_s1 + $0x88] sm:$0xff]  ;;  %v5470_v58 = vld [vmem:[%s5362_s1 + $0x78] sm:$0xff] }
  0x23   : > { %1149 = vperm.xlu2 %4944, %v861_v20   ;;  %1139 = vperm.xlu1 %4943, %v859_v21   ;;  %8847 = vst [vmem:[#allocation19_spill] sm:$0xff] %v5470_v58  ;;  %v749_v59 = vand.u32 15, %v717_v54  ;;  %v747_v60 = vand.u32 15, %v715_v55  ;;  %v5479_v62 = vld [vmem:[%s5362_s1 + $0xa0] sm:$0xff]  ;;  %v719_v63 = vadd.s32 176, %v5350_v3  ;;  %v5487_v1 = vld [vmem:[%s5362_s1 + $0x90] sm:$0xff] }
  0x24   : > { %1129 = vperm.xlu0 %4942, %v857_v22   ;;  %vm5454_vm8 = vcmp.ne.s32.totalorder %v745_v51, 0  ;;  %v5493_v6 = vld [vmem:[%s5362_s1 + $0x98] sm:$0xff]  ;;  %v8853_v9 = vmov 0  ;;  %v5504_v10 = vld [vmem:[%s5362_s1 + $0xb0] sm:$0xff]  ;;  %v723_v11 = vadd.s32 208, %v5350_v3  ;;  %v721_v13 = vadd.s32 192, %v5350_v3 }
  0x25   : > { %v873_v57 = vsel %vm5454_vm8, %v5459_v53, 0.0  ;;  %vm5474_vm9 = vcmp.ne.s32.totalorder %v749_v59, 0  ;;  %vm5482_vm10 = vcmp.ne.s32.totalorder %v747_v60, 0  ;;  %v751_v8 = vand.u32 15, %v719_v63  ;;  %v848_v15 = vld [vmem:[%s5362_s1 + $0xb8] sm:$0xff]  ;;  %v5513_v18 = vld [vmem:[%s5362_s1 + $0xa8] sm:$0xff] }
  0x26   : > { %v8849_v61 = vsel %vm5474_vm9, 4294967295, %v8848_v61  ;;  %v877_v2 = vsel %vm5474_vm9, %v5479_v62, 0.0  ;;  %v875_v7 = vsel %vm5482_vm10, %v5487_v1, 0.0  ;;  %v755_v20 = vand.u32 15, %v723_v11  ;;  %v5521_v23 = vld [vmem:[%s5362_s1 + $0xd0] sm:$0xff]  ;;  %v849_v27 = vld [vmem:[%s5362_s1 + $0xc0] sm:$0xff] }
  0x27   : > { %8850 = vst [vmem:[#allocation20_spill] sm:$0xff] %v8849_v61  ;;  %vm5499_vm11 = vcmp.ne.s32.totalorder %v751_v8, 0  ;;  %v753_v21 = vand.u32 15, %v721_v13  ;;  %v725_v24 = vadd.s32 224, %v5350_v3  ;;  %v8859_v26 = vmov 0  ;;  %v5543_v36 = vld [vmem:[%s5362_s1 + $0xe0] sm:$0xff] }
  0x28   : > { %v8854_v9 = vsel %vm5499_vm11, 4294967295, %v8853_v9  ;;  %v879_v16 = vsel %vm5499_vm11, %v5504_v10, 0.0  ;;  %vm5516_vm12 = vcmp.ne.s32.totalorder %v755_v20, 0  ;;  %8858 = vst [vmem:[#allocation22_spill] sm:$0xff] %v5521_v23  ;;  %v727_v37 = vadd.s32 240, %v5350_v3  ;;  %v5553_v41 = vld [vmem:[%s5362_s1 + $0xd8] sm:$0xff] }
  0x29   : > { %8855 = vst [vmem:[#allocation21_spill] sm:$0xff] %v8854_v9  ;;  %vm5524_vm13 = vcmp.ne.s32.totalorder %v753_v21, 0  ;;  %v883_v29 = vsel %vm5516_vm12, %v5521_v23, 0.0  ;;  %v5566_v51 = vld [vmem:[%s5362_s1 + $0xf8] sm:$0xff]  ;;  %v890_v59 = vld [vmem:[%s5362_s1 + $0x9] sm:$0xff]  ;;  %v897_v13 = vld [vmem:[%s5362_s1 + $0x41] sm:$0xff] }
  0x2a   : > { %v8860_v26 = vsel %vm5524_vm13, 4294967295, %v8859_v26  ;;  %v759_v42 = vand.u32 15, %v727_v37  ;;  %8867 = vst [vmem:[#allocation25_spill] sm:$0xff] %v5566_v51  ;;  %v892_v55 = vld [vmem:[%s5362_s1 + $0x19] sm:$0xff]  ;;  %v895_v63 = vld [vmem:[%s5362_s1 + $0x31] sm:$0xff]  ;;  %v898_v11 = vld [vmem:[%s5362_s1 + $0x49] sm:$0xff] }
  0x2b   : > { %1169 = vperm.xlu2 %4944, %v865_v30   ;;  %1164 = vperm.xlu1 %4943, %v832_v31   ;;  %8861 = vst [vmem:[#allocation23_spill] sm:$0xff] %v8860_v26  ;;  %v5533_v30 = vld [vmem:[%s5362_s1 + $0xc8] sm:$0xff]  ;;  %v881_v31 = vsel %vm5524_vm13, %v849_v27, 0.0  ;;  %v5591_v21 = vld [vmem:[%s5362_s1 + $0x59] sm:$0xff]  ;;  %v5609_v37 = vld [vmem:[%s5362_s1 + $0x71] sm:$0xff]  ;;  %v8938_v23 = vmov 0 }
  0x2c   : > { %1159 = vperm.xlu0 %4942, %v863_v32   ;;  %8862 = vst [vmem:[#allocation24_spill] sm:$0xff] %v5533_v30  ;;  %v757_v32 = vand.u32 15, %v725_v24  ;;  %vm5557_vm15 = vcmp.ne.s32.totalorder %v759_v42, 0  ;;  %v5588_v20 = vld [vmem:[%s5362_s1 + $0x61] sm:$0xff]  ;;  %v5594_v24 = vld [vmem:[%s5362_s1 + $0x51] sm:$0xff]  ;;  %v5649_v19 = vld [vmem:[%s5362_s1 + $0x99] sm:$0xff] }
  0x2d   : > { %8871 = vst [vmem:[#allocation29_spill] sm:$0xff] %v5591_v21  ;;  %v5670_v17 = vld [vmem:[%s5362_s1 + $0x82] sm:$0xff]  ;;  %v5717_v12 = vld [vmem:[%s5362_s1 + $0xf2] sm:$0xff]  ;;  %v1075_v52 = vsel %vm5482_vm10, %v5504_v10, 0.0  ;;  %s5220_s4 = smov 96   ;;  %s5221_s0 = smov 112  }
  0x2e   : > { %vm5538_vm14 = vcmp.ne.s32.totalorder %v757_v32, 0  ;;  %8872 = vst [vmem:[#allocation30_spill] sm:$0xff] %v5594_v24  ;;  %v5606_v32 = vld [vmem:[%s5362_s1 + $0x79] sm:$0xff]  ;;  %v6018_v45 = vld [vmem:[%s5362_s1 + $0xb1] sm:$0xff]  ;;  %v6126_v14 = vld [vmem:[%s5362_s1 + $0x42] sm:$0xff]  ;;  %s9278_s23 = sld [smem:[#allocation146_spill]] }
  0x2f   : > { %8888 = vst [vmem:[#allocation44_spill] sm:$0xff] %v5670_v17  ;;  %v5720_v61 = vld [vmem:[%s5362_s1 + $0x72] sm:$0xff]  ;;  %v5794_v25 = vld [vmem:[%s5362_s1 + $0x100] sm:$0xff]  ;;  %s9289_s26 = sld [smem:[#allocation147_spill]] }
  0x30   : > { %v1017_v35 = vsel %vm5557_vm15, %v5794_v25, 0.0  ;;  %8984 = vst [vmem:[#allocation124_spill] sm:$0xff] %v6126_v14  ;;  %v1091_v33 = vld [vmem:[%s5362_s1 + $0x112] sm:$0xff] }
  0x33   : > { %1184 = vperm.xlu2 %4944, %v5422_v38   ;;  %1179 = vperm.xlu1 %4943, %v867_v39   ;;  %v5547_v39 = vld [vmem:[%s5362_s1 + $0xe8] sm:$0xff] }
  0x34   : > { %1174 = vperm.xlu0 %4942, %v834_v40   ;;  %v885_v40 = vsel %vm5538_vm14, %v5543_v36, 0.0 }
  0x3b   : > { %1199 = vperm.xlu2 %4944, %v871_v48   ;;  %1194 = vperm.xlu1 %4943, %v5448_v49   ;;  %v5562_v48 = vld [vmem:[%s5362_s1 + $0xf0] sm:$0xff] }
  0x3c   : > { %1189 = vperm.xlu0 %4942, %v869_v50   ;;  %v889_v50 = vld [vmem:[%s5362_s1 + $0x1] sm:$0xff]  ;;  %v887_v54 = vsel %vm5557_vm15, %v5562_v48, 0.0 }
  0x43   : > { %1214 = vperm.xlu2 %4944, %v5464_v56   ;;  %1209 = vperm.xlu1 %4943, %v873_v57   ;;  %v891_v57 = vld [vmem:[%s5362_s1 + $0x11] sm:$0xff] }
  0x44   : > { %1204 = vperm.xlu0 %4942, %v5470_v58  }
  0x4b   : > { %1229 = vperm.xlu2 %4944, %v877_v2   ;;  %1224 = vperm.xlu1 %4943, %v5493_v6   ;;  %v894_v2 = vld [vmem:[%s5362_s1 + $0x29] sm:$0xff] }
  0x4c   : > { %1219 = vperm.xlu0 %4942, %v875_v7   ;;  %v893_v7 = vld [vmem:[%s5362_s1 + $0x21] sm:$0xff] }
  0x53   : > { %1244 = vperm.xlu2 %4944, %v848_v15   ;;  %1239 = vperm.xlu1 %4943, %v879_v16   ;;  %v896_v15 = vld [vmem:[%s5362_s1 + $0x39] sm:$0xff] }
  0x54   : > { %1234 = vperm.xlu0 %4942, %v5513_v18  }
  0x5b   : > { %1259 = vperm.xlu2 %4944, %v883_v29   ;;  %1254 = vperm.xlu1 %4943, %v5533_v30  }
  0x5c   : > { %1249 = vperm.xlu0 %4942, %v881_v31  }
  0x63   : > { %1274 = vperm.xlu2 %4944, %v5547_v39   ;;  %1269 = vperm.xlu1 %4943, %v885_v40   ;;  %v5612_v40 = vld [vmem:[%s5362_s1 + $0x69] sm:$0xff] }
  0x64   : > { %1264 = vperm.xlu0 %4942, %v5553_v41  }
  0x6b   : > { %1358 = vperm.xlu2 %4944, %v889_v50   ;;  %1284 = vperm.xlu1 %4943, %v5566_v51  }
  0x6c   : > { %1279 = vperm.xlu0 %4942, %v887_v54  }
  0x73   : > { %1373 = vperm.xlu2 %4944, %v892_v55   ;;  %1368 = vperm.xlu1 %4943, %v891_v57   ;;  %v5624_v55 = vld [vmem:[%s5362_s1 + $0x91] sm:$0xff]  ;;  %v5627_v57 = vld [vmem:[%s5362_s1 + $0x89] sm:$0xff] }
  0x74   : > { %1363 = vperm.xlu0 %4942, %v890_v59   ;;  %v5630_v59 = vld [vmem:[%s5362_s1 + $0x81] sm:$0xff] }
  0x75   : > { %v5575_v60 = vpop.permute.xlu2 %1154  ;;  %8879 = vst [vmem:[#allocation37_spill] sm:$0xff] %v5630_v59 }
  0x76   : > { %8868 = vst [vmem:[#allocation26_spill] sm:$0xff] %v5575_v60 }
  0x7b   : > { %1388 = vperm.xlu2 %4944, %v895_v63   ;;  %1383 = vperm.xlu1 %4943, %v894_v2  }
  0x7c   : > { %1378 = vperm.xlu0 %4942, %v893_v7   ;;  %v712_v7 = vadd.s32 120, %v5350_v3 }
  0x7d   : > { %v5580_v8 = vpop.permute.xlu2 %1149 }
  0x7e   : > { %8869 = vst [vmem:[#allocation27_spill] sm:$0xff] %v5580_v8  ;;  %v744_v4 = vand.u32 15, %v712_v7  ;;  %v5676_v8 = vld [vmem:[%s5362_s1 + $0xf1] sm:$0xff] }
  0x80   : > { %vm5658_vm2 = vcmp.ne.s32.totalorder %v744_v4, 15 }
  0x83   : > { %1403 = vperm.xlu2 %4944, %v898_v11   ;;  %1398 = vperm.xlu1 %4943, %v897_v13   ;;  %v5643_v13 = vld [vmem:[%s5362_s1 + $0xf9] sm:$0xff] }
  0x84   : > { %1393 = vperm.xlu0 %4942, %v896_v15   ;;  %v5646_v15 = vld [vmem:[%s5362_s1 + $0xa1] sm:$0xff] }
  0x85   : > { %v5585_v16 = vpop.permute.xlu2 %1169 }
  0x86   : > { %8870 = vst [vmem:[#allocation28_spill] sm:$0xff] %v5585_v16  ;;  %v714_v16 = vadd.s32 136, %v5350_v3 }
  0x88   : > { %v746_v60 = vand.u32 15, %v714_v16 }
  0x8a   : > { %vm5693_vm0 = vcmp.ne.s32.totalorder %v746_v60, 15 }
  0x8b   : > { %1418 = vperm.xlu2 %4944, %v5588_v20   ;;  %1413 = vperm.xlu1 %4943, %v5591_v21  }
  0x8c   : > { %1408 = vperm.xlu0 %4942, %v5594_v24   ;;  %v5748_v24 = vld [vmem:[%s5362_s1 + $0xe1] sm:$0xff] }
  0x8d   : > { %v5599_v27 = vpop.permute.xlu2 %1184  ;;  %v5601_v29 = vpop.permute.xlu1 %1144 }
  0x8e   : > { %8873 = vst [vmem:[#allocation31_spill] sm:$0xff] %v5599_v27  ;;  %v5603_v31 = vpop.permute.xlu0 %1134 }
  0x8f   : > { %8874 = vst [vmem:[#allocation32_spill] sm:$0xff] %v5601_v29  ;;  %v728_v29 = vadd.s32 248, %v5350_v3 }
  0x90   : > { %8875 = vst [vmem:[#allocation33_spill] sm:$0xff] %v5603_v31  ;;  %v6110_v31 = vld [vmem:[%s5362_s1 + $0xb2] sm:$0xff] }
  0x93   : > { %1433 = vperm.xlu2 %4944, %v5606_v32   ;;  %1428 = vperm.xlu1 %4943, %v5609_v37  }
  0x94   : > { %1423 = vperm.xlu0 %4942, %v5612_v40  }
  0x95   : > { %v5617_v42 = vpop.permute.xlu2 %1199  ;;  %v5619_v50 = vpop.permute.xlu1 %1139 }
  0x96   : > { %8876 = vst [vmem:[#allocation34_spill] sm:$0xff] %v5617_v42  ;;  %v5621_v54 = vpop.permute.xlu0 %1129  ;;  %v1003_v42 = vsel %vm5454_vm8, %v5487_v1, 0.0 }
  0x97   : > { %8877 = vst [vmem:[#allocation35_spill] sm:$0xff] %v5619_v50  ;;  %v5663_v50 = vld [vmem:[%s5362_s1 + $0x7a] sm:$0xff] }
  0x98   : > { %8878 = vst [vmem:[#allocation36_spill] sm:$0xff] %v5621_v54  ;;  %v968_v4 = vsel %vm5658_vm2, %v5663_v50, 0.0 }
  0x9b   : > { %1448 = vperm.xlu2 %4944, %v5624_v55   ;;  %1443 = vperm.xlu1 %4943, %v5627_v57  }
  0x9c   : > { %1438 = vperm.xlu0 %4942, %v5630_v59  }
  0x9d   : > { %v5635_v63 = vpop.permute.xlu2 %1214  ;;  %v5637_v2 = vpop.permute.xlu1 %1164 }
  0x9e   : > { %8880 = vst [vmem:[#allocation38_spill] sm:$0xff] %v5635_v63  ;;  %v5640_v11 = vpop.permute.xlu0 %1159 }
  0x9f   : > { %8881 = vst [vmem:[#allocation39_spill] sm:$0xff] %v5637_v2  ;;  %v5704_v2 = vld [vmem:[%s5362_s1 + $0x92] sm:$0xff] }
  0xa0   : > { %8882 = vst [vmem:[#allocation40_spill] sm:$0xff] %v5640_v11 }
  0xa3   : > { %1513 = vperm.xlu2 %4944, %v5643_v13   ;;  %1458 = vperm.xlu1 %4943, %v5646_v15  }
  0xa4   : > { %1453 = vperm.xlu0 %4942, %v5649_v19  }
  0xa5   : > { %v5654_v5 = vpop.permute.xlu2 %1229  ;;  %v5656_v54 = vpop.permute.xlu1 %1179 }
  0xa6   : > { %8883 = vst [vmem:[#allocation41_spill] sm:$0xff] %v5654_v5  ;;  %v5666_v7 = vpop.permute.xlu0 %1174  ;;  %v760_v5 = vand.u32 15, %v728_v29 }
  0xa7   : > { %8884 = vst [vmem:[#allocation42_spill] sm:$0xff] %v5656_v54  ;;  %v5689_v54 = vld [vmem:[%s5362_s1 + $0xfa] sm:$0xff] }
  0xa8   : > { %8887 = vst [vmem:[#allocation43_spill] sm:$0xff] %v5666_v7  ;;  %vm5684_vm1 = vcmp.ne.s32.totalorder %v760_v5, 15 }
  0xab   : > { %1664 = vperm.xlu2 %4944, %v5670_v17   ;;  %1659 = vperm.xlu1 %4943, %v968_v4   ;;  %v5698_v4 = vld [vmem:[%s5362_s1 + $0x8a] sm:$0xff] }
  0xac   : > { %1508 = vperm.xlu0 %4942, %v5676_v8   ;;  %8896 = vst [vmem:[#allocation48_spill] sm:$0xff] %v5698_v4  ;;  %v970_v5 = vsel %vm5693_vm0, %v5698_v4, 0.0 }
  0xad   : > { %v5680_v7 = vpop.permute.xlu2 %1244  ;;  %v5682_v11 = vpop.permute.xlu1 %1194 }
  0xae   : > { %8889 = vst [vmem:[#allocation45_spill] sm:$0xff] %v5680_v7  ;;  %v5691_v29 = vpop.permute.xlu0 %1189  ;;  %v984_v7 = vsel %vm5684_vm1, %v5689_v54, 0.0 }
  0xaf   : > { %8890 = vst [vmem:[#allocation46_spill] sm:$0xff] %v5682_v11  ;;  %v5723_v11 = vld [vmem:[%s5362_s1 + $0xe9] sm:$0xff] }
  0xb0   : > { %8893 = vst [vmem:[#allocation47_spill] sm:$0xff] %v5691_v29 }
  0xb3   : > { %1739 = vperm.xlu2 %4944, %v984_v7   ;;  %1674 = vperm.xlu1 %4943, %v5704_v2  }
  0xb4   : > { %1669 = vperm.xlu0 %4942, %v970_v5  }
  0xb5   : > { %v5710_v60 = vpop.permute.xlu2 %1259  ;;  %v5712_v27 = vpop.permute.xlu1 %1209 }
  0xb6   : > { %8897 = vst [vmem:[#allocation49_spill] sm:$0xff] %v5710_v60  ;;  %v5714_v29 = vpop.permute.xlu0 %1204 }
  0xb7   : > { %8898 = vst [vmem:[#allocation50_spill] sm:$0xff] %v5712_v27  ;;  %v5767_v27 = vld [vmem:[%s5362_s1 + $0xea] sm:$0xff] }
  0xb8   : > { %8899 = vst [vmem:[#allocation51_spill] sm:$0xff] %v5714_v29 }
  0xbb   : > { %1734 = vperm.xlu2 %4944, %v5717_v12   ;;  %1654 = vperm.xlu1 %4943, %v5720_v61  }
  0xbc   : > { %1503 = vperm.xlu0 %4942, %v5723_v11  }
  0xbd   : > { %v5728_v7 = vpop.permute.xlu2 %1274  ;;  %v5730_v5 = vpop.permute.xlu1 %1224 }
  0xbe   : > { %8900 = vst [vmem:[#allocation52_spill] sm:$0xff] %v5728_v7  ;;  %v5732_v60 = vpop.permute.xlu0 %1219  ;;  %v726_v7 = vadd.s32 232, %v5350_v3 }
  0xbf   : > { %8901 = vst [vmem:[#allocation53_spill] sm:$0xff] %v5730_v5  ;;  %v710_v5 = vadd.s32 104, %v5350_v3 }
  0xc0   : > { %8902 = vst [vmem:[#allocation54_spill] sm:$0xff] %v5732_v60  ;;  %v5751_v60 = vld [vmem:[%s5362_s1 + $0x108] sm:$0xff]  ;;  %v758_v63 = vand.u32 15, %v726_v7 }
  0xc2   : > { %vm5762_vm9 = vcmp.ne.s32.totalorder %v758_v63, 15 }
  0xc3   : > { %1895 = vperm.xlu2 %4944, %v5493_v6   ;;  %1890 = vperm.xlu1 %4943, %v1003_v42   ;;  %v1005_v42 = vsel %vm5482_vm10, %v5479_v62, 0.0  ;;  %v982_v63 = vsel %vm5762_vm9, %v5767_v27, 0.0  ;;  %vm3234_vm10 = vcmask 122880  }
  0xc4   : > { %1885 = vperm.xlu0 %4942, %v5464_v56  }
  0xc5   : > { %v5739_v9 = vpop.permute.xlu2 %1358  ;;  %v5741_v28 = vpop.permute.xlu1 %1239 }
  0xc6   : > { %8903 = vst [vmem:[#allocation55_spill] sm:$0xff] %v5739_v9  ;;  %v5744_v30 = vpop.permute.xlu0 %1234  ;;  %v742_v9 = vand.u32 15, %v710_v5  ;;  %v5776_v5 = vld [vmem:[%s5362_s1 + $0x6a] sm:$0xff] }
  0xc7   : > { %8904 = vst [vmem:[#allocation56_spill] sm:$0xff] %v5741_v28 }
  0xc8   : > { %8905 = vst [vmem:[#allocation57_spill] sm:$0xff] %v5744_v30  ;;  %vm5771_vm11 = vcmp.ne.s32.totalorder %v742_v9, 15 }
  0xcb   : > { %1498 = vperm.xlu2 %4944, %v5748_v24   ;;  %1965 = vperm.xlu1 %4943, %v5751_v60  }
  0xcc   : > { %1900 = vperm.xlu0 %4942, %v1005_v42   ;;  %v1001_v42 = vsel %vm5429_vm6, %v5459_v53, 0.0 }
  0xcd   : > { %v5758_v28 = vpop.permute.xlu2 %1373  ;;  %v5760_v30 = vpop.permute.xlu1 %1254 }
  0xce   : > { %8906 = vst [vmem:[#allocation58_spill] sm:$0xff] %v5758_v28  ;;  %v5769_v21 = vpop.permute.xlu0 %1249  ;;  %v966_v28 = vsel %vm5771_vm11, %v5776_v5, 0.0 }
  0xcf   : > { %8907 = vst [vmem:[#allocation59_spill] sm:$0xff] %v5760_v30 }
  0xd0   : > { %8910 = vst [vmem:[#allocation60_spill] sm:$0xff] %v5769_v21 }
  0xd3   : > { %1880 = vperm.xlu2 %4944, %v1001_v42   ;;  %1729 = vperm.xlu1 %4943, %v982_v63  }
  0xd4   : > { %1649 = vperm.xlu0 %4942, %v966_v28  }
  0xd5   : > { %v5787_v9 = vpop.permute.xlu2 %1388  ;;  %v5789_v30 = vpop.permute.xlu1 %1269 }
  0xd6   : > { %8913 = vst [vmem:[#allocation61_spill] sm:$0xff] %v5787_v9  ;;  %v5791_v21 = vpop.permute.xlu0 %1264  ;;  %v5808_v9 = vld [vmem:[%s5362_s1 + $0x109] sm:$0xff] }
  0xd7   : > { %8914 = vst [vmem:[#allocation62_spill] sm:$0xff] %v5789_v30 }
  0xd8   : > { %8915 = vst [vmem:[#allocation63_spill] sm:$0xff] %v5791_v21 }
  0xd9   : > { %8919 = vst [vmem:[#allocation67_spill] sm:$0xff] %v5808_v9 }
  0xdb   : > { %2099 = vperm.xlu2 %4944, %v5624_v55   ;;  %2095 = vperm.xlu1 %4943, %v5627_v57  }
  0xdc   : > { %1960 = vperm.xlu0 %4942, %v1017_v35   ;;  %v5820_v35 = vld [vmem:[%s5362_s1 + $0xe2] sm:$0xff] }
  0xdd   : > { %v5801_v28 = vpop.permute.xlu2 %1403  ;;  %v5803_v42 = vpop.permute.xlu1 %1284  ;;  %8923 = vst [vmem:[#allocation71_spill] sm:$0xff] %v5820_v35 }
  0xde   : > { %8916 = vst [vmem:[#allocation64_spill] sm:$0xff] %v5801_v28  ;;  %v5805_v63 = vpop.permute.xlu0 %1279  ;;  %v5823_v28 = vld [vmem:[%s5362_s1 + $0x62] sm:$0xff] }
  0xdf   : > { %8917 = vst [vmem:[#allocation65_spill] sm:$0xff] %v5803_v42 }
  0xe0   : > { %8918 = vst [vmem:[#allocation66_spill] sm:$0xff] %v5805_v63  ;;  %v5826_v63 = vld [vmem:[%s5362_s1 + $0xd9] sm:$0xff] }
  0xe1   : > { %8924 = vst [vmem:[#allocation72_spill] sm:$0xff] %v5823_v28 }
  0xe2   : > { %8925 = vst [vmem:[#allocation73_spill] sm:$0xff] %v5826_v63 }
  0xe3   : > { %2161 = vperm.xlu2 %4944, %v5808_v9   ;;  %2107 = vperm.xlu1 %4943, %v5646_v15   ;;  %v8942_v9 = vmov 0 }
  0xe4   : > { %2103 = vperm.xlu0 %4942, %v5649_v19  }
  0xe5   : > { %v5813_v21 = vpop.permute.xlu2 %1418  ;;  %v5815_v30 = vpop.permute.xlu1 %1368 }
  0xe6   : > { %8920 = vst [vmem:[#allocation68_spill] sm:$0xff] %v5813_v21  ;;  %v5817_v26 = vpop.permute.xlu0 %1363 }
  0xe7   : > { %8921 = vst [vmem:[#allocation69_spill] sm:$0xff] %v5815_v30 }
  0xe8   : > { %8922 = vst [vmem:[#allocation70_spill] sm:$0xff] %v5817_v26 }
  0xeb   : > { %1724 = vperm.xlu2 %4944, %v5820_v35   ;;  %1644 = vperm.xlu1 %4943, %v5823_v28  }
  0xec   : > { %1493 = vperm.xlu0 %4942, %v5826_v63  }
  0xed   : > { %v5831_v42 = vpop.permute.xlu2 %1433  ;;  %v5833_v21 = vpop.permute.xlu1 %1383 }
  0xee   : > { %8926 = vst [vmem:[#allocation74_spill] sm:$0xff] %v5831_v42  ;;  %v5835_v30 = vpop.permute.xlu0 %1378  ;;  %v5850_v42 = vld [vmem:[%s5362_s1 + $0x101] sm:$0xff] }
  0xef   : > { %8927 = vst [vmem:[#allocation75_spill] sm:$0xff] %v5833_v21  ;;  %v1038_v21 = vsel %vm5658_vm2, %v5698_v4, 0.0 }
  0xf0   : > { %8928 = vst [vmem:[#allocation76_spill] sm:$0xff] %v5835_v30 }
  0xf1   : > { %8932 = vst [vmem:[#allocation80_spill] sm:$0xff] %v5850_v42 }
  0xf3   : > { %2091 = vperm.xlu2 %4944, %v5630_v59   ;;  %1955 = vperm.xlu1 %4943, %v5566_v51   ;;  %v5866_v51 = vld [vmem:[%s5362_s1 + $0x9a] sm:$0xff] }
  0xf4   : > { %1875 = vperm.xlu0 %4942, %v5470_v58  }
  0xf5   : > { %v5840_v26 = vpop.permute.xlu2 %1448  ;;  %v5842_v28 = vpop.permute.xlu1 %1398 }
  0xf6   : > { %8929 = vst [vmem:[#allocation77_spill] sm:$0xff] %v5840_v26  ;;  %v5844_v63 = vpop.permute.xlu0 %1393  ;;  %v5859_v26 = vld [vmem:[%s5362_s1 + $0x10a] sm:$0xff] }
  0xf7   : > { %8930 = vst [vmem:[#allocation78_spill] sm:$0xff] %v5842_v28  ;;  %v724_v28 = vadd.s32 216, %v5350_v3 }
  0xf8   : > { %8931 = vst [vmem:[#allocation79_spill] sm:$0xff] %v5844_v63  ;;  %v708_v63 = vadd.s32 88, %v5350_v3 }
  0xf9   : > { %8935 = vst [vmem:[#allocation83_spill] sm:$0xff] %v5859_v26  ;;  %v756_v59 = vand.u32 15, %v724_v28  ;;  %v5894_v28 = vld [vmem:[%s5362_s1 + $0x5a] sm:$0xff] }
  0xfa   : > { %8945 = vst [vmem:[#allocation89_spill] sm:$0xff] %v5894_v28 }
  0xfb   : > { %2312 = vperm.xlu2 %4944, %v5704_v2   ;;  %2307 = vperm.xlu1 %4943, %v1038_v21   ;;  %v1054_v21 = vsel %vm5684_vm1, %v5859_v26, 0.0  ;;  %vm5882_vm4 = vcmp.ne.s32.totalorder %v756_v59, 15  ;;  %v5887_v26 = vld [vmem:[%s5362_s1 + $0xda] sm:$0xff] }
  0xfc   : > { %2156 = vperm.xlu0 %4942, %v5850_v42   ;;  %v5872_v42 = vld [vmem:[%s5362_s1 + $0xa2] sm:$0xff]  ;;  %v8939_v23 = vsel %vm5882_vm4, 4294967295, %v8938_v23  ;;  %8941 = vst [vmem:[#allocation87_spill] sm:$0xff] %v5887_v26 }
  0xfd   : > { %v5854_v30 = vpop.permute.xlu2 %1513  ;;  %v5856_v58 = vpop.permute.xlu1 %1413  ;;  %8940 = vst [vmem:[#allocation86_spill] sm:$0xff] %v8939_v23 }
  0xfe   : > { %8933 = vst [vmem:[#allocation81_spill] sm:$0xff] %v5854_v30  ;;  %v5863_v4 = vpop.permute.xlu0 %1408  ;;  %v740_v30 = vand.u32 15, %v708_v63 }
  0xff   : > { %8934 = vst [vmem:[#allocation82_spill] sm:$0xff] %v5856_v58  ;;  %v1040_v58 = vsel %vm5693_vm0, %v5866_v51, 0.0 }
 0x100   : > { %8936 = vst [vmem:[#allocation84_spill] sm:$0xff] %v5863_v4  ;;  %vm5889_vm3 = vcmp.ne.s32.totalorder %v740_v30, 15 }
 0x101   : > { %v8943_v9 = vsel %vm5889_vm3, 4294967295, %v8942_v9  ;;  %v964_v59 = vsel %vm5889_vm3, %v5894_v28, 0.0  ;;  %v999_v28 = vsel %vm5437_vm7, %v5434_v44, 0.0 }
 0x102   : > { %8944 = vst [vmem:[#allocation88_spill] sm:$0xff] %v8943_v9  ;;  %v9024_v9 = vld [vmem:[#allocation37_spill] sm:$0xff] }
 0x103   : > { %2387 = vperm.xlu2 %4944, %v1054_v21   ;;  %2322 = vperm.xlu1 %4943, %v5872_v42   ;;  %v5905_v21 = vld [vmem:[%s5362_s1 + $0xd1] sm:$0xff] }
 0x104   : > { %2317 = vperm.xlu0 %4942, %v1040_v58   ;;  %v980_v58 = vsel %vm5882_vm4, %v5887_v26, 0.0  ;;  %8947 = vst [vmem:[#allocation91_spill] sm:$0xff] %v5905_v21  ;;  %v1015_v26 = vsel %vm5538_vm14, %v5562_v48, 0.0 }
 0x105   : > { %v5878_v4 = vpop.permute.xlu2 %1664  ;;  %v5880_v35 = vpop.permute.xlu1 %1428 }
 0x106   : > { %8937 = vst [vmem:[#allocation85_spill] sm:$0xff] %v5880_v35  ;;  %v5896_v63 = vpop.permute.xlu0 %1423 }
 0x107   : > { %8946 = vst [vmem:[#allocation90_spill] sm:$0xff] %v5896_v63 }
 0x10b   : > { %1719 = vperm.xlu2 %4944, %v980_v58   ;;  %1639 = vperm.xlu1 %4943, %v964_v59  }
 0x10c   : > { %1488 = vperm.xlu0 %4942, %v5905_v21  }
 0x10d   : > { %v5908_v30 = vpop.permute.xlu2 %1739  ;;  %v5910_v35 = vpop.permute.xlu1 %1443 }
 0x10e   : > { %8948 = vst [vmem:[#allocation92_spill] sm:$0xff] %v5910_v35  ;;  %v5912_v63 = vpop.permute.xlu0 %1438  ;;  %v5928_v35 = vld [vmem:[%s5362_s1 + $0x102] sm:$0xff] }
 0x10f   : > { %8951 = vst [vmem:[#allocation95_spill] sm:$0xff] %v5928_v35 }
 0x113   : > { %2087 = vperm.xlu2 %4944, %v5606_v32   ;;  %1950 = vperm.xlu1 %4943, %v1015_v26   ;;  %v1073_v32 = vsel %vm5454_vm8, %v5479_v62, 0.0 }
 0x114   : > { %1870 = vperm.xlu0 %4942, %v999_v28  }
 0x115   : > { %v5921_v58 = vpop.permute.xlu2 %1734  ;;  %v5923_v59 = vpop.permute.xlu1 %1458 }
 0x116   : > { %8949 = vst [vmem:[#allocation93_spill] sm:$0xff] %v5923_v59  ;;  %v5925_v21 = vpop.permute.xlu0 %1453  ;;  %v5951_v59 = vld [vmem:[%s5362_s1 + $0xc9] sm:$0xff] }
 0x117   : > { %8950 = vst [vmem:[#allocation94_spill] sm:$0xff] %v5925_v21 }
 0x118   : > { %8953 = vst [vmem:[#allocation97_spill] sm:$0xff] %v5951_v59 }
 0x11b   : > { %2382 = vperm.xlu2 %4944, %v5928_v35   ;;  %2302 = vperm.xlu1 %4943, %v5670_v17   ;;  %v1056_v17 = vld [vmem:[%s5362_s1 + $0x118] sm:$0xff] }
 0x11c   : > { %2151 = vperm.xlu0 %4942, %v5643_v13  }
 0x11d   : > { %v5933_v44 = vpop.permute.xlu2 %1895  ;;  %v5935_v26 = vpop.permute.xlu1 %1659 }
 0x11e   : > { %v5937_v48 = vpop.permute.xlu0 %1508 }
 0x123   : > { %2543 = vperm.xlu2 %4944, %v5513_v18   ;;  %2538 = vperm.xlu1 %4943, %v1073_v32   ;;  %v5965_v32 = vld [vmem:[%s5362_s1 + $0xd2] sm:$0xff] }
 0x124   : > { %2533 = vperm.xlu0 %4942, %v5493_v6   ;;  %8957 = vst [vmem:[#allocation101_spill] sm:$0xff] %v5965_v32 }
 0x125   : > { %v5944_v28 = vpop.permute.xlu2 %1498  ;;  %v5946_v13 = vpop.permute.xlu1 %1674 }
 0x126   : > { %8952 = vst [vmem:[#allocation96_spill] sm:$0xff] %v5944_v28  ;;  %v5948_v21 = vpop.permute.xlu0 %1669  ;;  %v5968_v28 = vld [vmem:[%s5362_s1 + $0x52] sm:$0xff] }
 0x127   : > { %8958 = vst [vmem:[#allocation102_spill] sm:$0xff] %v5968_v28 }
 0x12b   : > { %1483 = vperm.xlu2 %4944, %v5951_v59   ;;  %2613 = vperm.xlu1 %4943, %v1056_v17   ;;  %v6052_v59 = vld [vmem:[%s5362_s1 + $0xc1] sm:$0xff] }
 0x12c   : > { %2548 = vperm.xlu0 %4942, %v1075_v52   ;;  %8970 = vst [vmem:[#allocation110_spill] sm:$0xff] %v6052_v59 }
 0x12d   : > { %v5958_v62 = vpop.permute.xlu2 %1880  ;;  %v5960_v6 = vpop.permute.xlu1 %1654 }
 0x12e   : > { %8954 = vst [vmem:[#allocation98_spill] sm:$0xff] %v5958_v62  ;;  %v5962_v18 = vpop.permute.xlu0 %1503  ;;  %v1052_v62 = vsel %vm5762_vm9, %v5689_v54, 0.0 }
 0x12f   : > { %8955 = vst [vmem:[#allocation99_spill] sm:$0xff] %v5960_v6 }
 0x130   : > { %8956 = vst [vmem:[#allocation100_spill] sm:$0xff] %v5962_v18 }
 0x133   : > { %1865 = vperm.xlu2 %4944, %v5448_v49   ;;  %1714 = vperm.xlu1 %4943, %v5965_v32   ;;  %v6034_v32 = vld [vmem:[%s5362_s1 + $0xca] sm:$0xff] }
 0x134   : > { %1634 = vperm.xlu0 %4942, %v5968_v28   ;;  %v1071_v28 = vsel %vm5429_vm6, %v5487_v1, 0.0  ;;  %v1055_v1 = vld [vmem:[%s5362_s1 + $0x110] sm:$0xff]  ;;  %8966 = vst [vmem:[#allocation108_spill] sm:$0xff] %v6034_v32 }
 0x135   : > { %v5973_v0 = vpop.permute.xlu2 %2099  ;;  %v5975_v17 = vpop.permute.xlu1 %1890  ;;  %v1087_v54 = vsel %vm5557_vm15, %v1055_v1, 0.0 }
 0x136   : > { %v5977_v10 = vpop.permute.xlu0 %1885 }
 0x13b   : > { %2147 = vperm.xlu2 %4944, %v5676_v8   ;;  %2083 = vperm.xlu1 %4943, %v5609_v37   ;;  %v1036_v8 = vsel %vm5771_vm11, %v5663_v50, 0.0 }
 0x13c   : > { %1945 = vperm.xlu0 %4942, %v5547_v39  }
 0x13d   : > { %v5982_v52 = vpop.permute.xlu2 %2161  ;;  %v5984_v49 = vpop.permute.xlu1 %1965 }
 0x13e   : > { %v5986_v18 = vpop.permute.xlu0 %1900 }
 0x143   : > { %2528 = vperm.xlu2 %4944, %v1071_v28   ;;  %2377 = vperm.xlu1 %4943, %v1052_v62   ;;  %v722_v62 = vadd.s32 200, %v5350_v3 }
 0x144   : > { %2297 = vperm.xlu0 %4942, %v1036_v8   ;;  %v706_v8 = vadd.s32 72, %v5350_v3 }
 0x145   : > { %v5997_v39 = vpop.permute.xlu2 %1724  ;;  %v5999_v37 = vpop.permute.xlu1 %1729 }
 0x146   : > { %8959 = vst [vmem:[#allocation103_spill] sm:$0xff] %v5997_v39  ;;  %v6001_v43 = vpop.permute.xlu0 %1649  ;;  %v738_v1 = vand.u32 15, %v706_v8 }
 0x147   : > { %8960 = vst [vmem:[#allocation104_spill] sm:$0xff] %v5999_v37 }
 0x148   : > { %8961 = vst [vmem:[#allocation105_spill] sm:$0xff] %v6001_v43  ;;  %v1090_v43 = vld [vmem:[%s5362_s1 + $0x119] sm:$0xff]  ;;  %vm6036_vm8 = vcmp.ne.s32.totalorder %v738_v1, 15 }
 0x14b   : > { %2747 = vperm.xlu2 %4944, %v5646_v15   ;;  %2743 = vperm.xlu1 %4943, %v5649_v19   ;;  %v6021_v15 = vld [vmem:[%s5362_s1 + $0xa9] sm:$0xff]  ;;  %v754_v19 = vand.u32 15, %v722_v62 }
 0x14c   : > { %2608 = vperm.xlu0 %4942, %v1087_v54   ;;  %v6041_v62 = vld [vmem:[%s5362_s1 + $0x4a] sm:$0xff] }
 0x14d   : > { %v6008_v50 = vpop.permute.xlu2 %2091  ;;  %v6010_v28 = vpop.permute.xlu1 %2095  ;;  %vm6029_vm6 = vcmp.ne.s32.totalorder %v754_v19, 15  ;;  %8969 = vst [vmem:[#allocation109_spill] sm:$0xff] %v6041_v62  ;;  %v962_v19 = vsel %vm6036_vm8, %v6041_v62, 0.0  ;;  %v997_v62 = vsel %vm5412_vm5, %v5442_v47, 0.0 }
 0x14e   : > { %8962 = vst [vmem:[#allocation106_spill] sm:$0xff] %v6008_v50  ;;  %v6014_v39 = vpop.permute.xlu0 %1960  ;;  %v978_v8 = vsel %vm6029_vm6, %v6034_v32, 0.0  ;;  %v1013_v32 = vsel %vm5516_vm12, %v5543_v36, 0.0 }
 0x14f   : > { %8963 = vst [vmem:[#allocation107_spill] sm:$0xff] %v6014_v39 }
 0x153   : > { %2809 = vperm.xlu2 %4944, %v1090_v43   ;;  %2755 = vperm.xlu1 %4943, %v6018_v45  }
 0x154   : > { %2751 = vperm.xlu0 %4942, %v6021_v15  }
 0x155   : > { %v6025_v54 = vpop.permute.xlu2 %2312  ;;  %v6027_v37 = vpop.permute.xlu1 %2107 }
 0x156   : > { %v6043_v43 = vpop.permute.xlu0 %2103 }
 0x15b   : > { %1709 = vperm.xlu2 %4944, %v978_v8   ;;  %1629 = vperm.xlu1 %4943, %v962_v19  }
 0x15c   : > { %1478 = vperm.xlu0 %4942, %v6052_v59   ;;  %v6257_v59 = vld [vmem:[%s9013_s6 + $0x3] ss:$0 sm:$0xff] }
 0x15d   : > { %v6055_v1 = vpop.permute.xlu2 %2387  ;;  %v6057_v35 = vpop.permute.xlu1 %1644 }
 0x15e   : > { %8971 = vst [vmem:[#allocation111_spill] sm:$0xff] %v6057_v35  ;;  %v6059_v39 = vpop.permute.xlu0 %1493 }
 0x15f   : > { %8972 = vst [vmem:[#allocation112_spill] sm:$0xff] %v6059_v39  ;;  %v6105_v39 = vld [vmem:[%s5362_s1 + $0xaa] sm:$0xff] }
 0x160   : > { %8979 = vst [vmem:[#allocation119_spill] sm:$0xff] %v6105_v39 }
 0x163   : > { %2079 = vperm.xlu2 %4944, %v5612_v40   ;;  %1940 = vperm.xlu1 %4943, %v1013_v32   ;;  %v1108_v32 = vsel %vm5658_vm2, %v5866_v51, 0.0 }
 0x164   : > { %1860 = vperm.xlu0 %4942, %v997_v62   ;;  %v1089_v62 = vld [vmem:[%s5362_s1 + $0x111] sm:$0xff] }
 0x165   : > { %v6068_v8 = vpop.permute.xlu2 %1719  ;;  %v6070_v19 = vpop.permute.xlu1 %1955 }
 0x166   : > { %8973 = vst [vmem:[#allocation113_spill] sm:$0xff] %v6068_v8  ;;  %v6072_v35 = vpop.permute.xlu0 %1875 }
 0x167   : > { %8974 = vst [vmem:[#allocation114_spill] sm:$0xff] %v6070_v19 }
 0x168   : > { %8975 = vst [vmem:[#allocation115_spill] sm:$0xff] %v6072_v35 }
 0x16b   : > { %2372 = vperm.xlu2 %4944, %v5717_v12   ;;  %2292 = vperm.xlu1 %4943, %v5720_v61  }
 0x16c   : > { %2143 = vperm.xlu0 %4942, %v5723_v11  }
 0x16d   : > { %v6077_v36 = vpop.permute.xlu2 %2087  ;;  %v6079_v47 = vpop.permute.xlu1 %2307 }
 0x16e   : > { %8976 = vst [vmem:[#allocation116_spill] sm:$0xff] %v6077_v36  ;;  %v6081_v40 = vpop.permute.xlu0 %2156  ;;  %v9009_v36 = vld [vmem:[#allocation18_spill] sm:$0xff] }
 0x173   : > { %2739 = vperm.xlu2 %4944, %v5624_v55   ;;  %2603 = vperm.xlu1 %4943, %v5751_v60   ;;  %v1092_v60 = vld [vmem:[%s5362_s1 + $0x11a] sm:$0xff] }
 0x174   : > { %2523 = vperm.xlu0 %4942, %v5464_v56   ;;  %v1124_v51 = vsel %vm5684_vm1, %v1092_v60, 0.0  ;;  %v6129_v60 = vld [vmem:[%s5362_s1 + $0xb9] sm:$0xff] }
 0x175   : > { %v6086_v12 = vpop.permute.xlu2 %2382  ;;  %v6088_v61 = vpop.permute.xlu1 %2322  ;;  %8985 = vst [vmem:[#allocation125_spill] sm:$0xff] %v6129_v60 }
 0x176   : > { %v6090_v11 = vpop.permute.xlu0 %2317 }
 0x17b   : > { %2960 = vperm.xlu2 %4944, %v5872_v42   ;;  %2955 = vperm.xlu1 %4943, %v1108_v32   ;;  %v1110_v42 = vsel %vm5693_vm0, %v6105_v39, 0.0 }
 0x17c   : > { %2804 = vperm.xlu0 %4942, %v1089_v62  }
 0x17d   : > { %v6097_v55 = vpop.permute.xlu2 %2543  ;;  %v6099_v56 = vpop.permute.xlu1 %1639 }
 0x17e   : > { %8977 = vst [vmem:[#allocation117_spill] sm:$0xff] %v6099_v56  ;;  %v6102_v8 = vpop.permute.xlu0 %1488  ;;  %v6123_v56 = vld [vmem:[%s5362_s1 + $0xc2] sm:$0xff] }
 0x17f   : > { %8978 = vst [vmem:[#allocation118_spill] sm:$0xff] %v6102_v8 }
 0x180   : > { %8983 = vst [vmem:[#allocation123_spill] sm:$0xff] %v6123_v56 }
 0x183   : > { %3035 = vperm.xlu2 %4944, %v1124_v51   ;;  %2970 = vperm.xlu1 %4943, %v6110_v31  }
 0x184   : > { %2965 = vperm.xlu0 %4942, %v1110_v42  }
 0x185   : > { %v6116_v32 = vpop.permute.xlu2 %1483  ;;  %v6118_v62 = vpop.permute.xlu1 %1950 }
 0x186   : > { %8980 = vst [vmem:[#allocation120_spill] sm:$0xff] %v6116_v32  ;;  %v6120_v8 = vpop.permute.xlu0 %1870 }
 0x187   : > { %8981 = vst [vmem:[#allocation121_spill] sm:$0xff] %v6118_v62 }
 0x188   : > { %8982 = vst [vmem:[#allocation122_spill] sm:$0xff] %v6120_v8 }
 0x18b   : > { %1704 = vperm.xlu2 %4944, %v6123_v56   ;;  %1624 = vperm.xlu1 %4943, %v6126_v14   ;;  %v1085_v14 = vsel %vm5538_vm14, %v5794_v25, 0.0 }
 0x18c   : > { %1473 = vperm.xlu0 %4942, %v6129_v60   ;;  %v1034_v60 = vsel %vm5889_vm3, %v5776_v5, 0.0 }
 0x18d   : > { %v6134_v16 = vpop.permute.xlu2 %1865  ;;  %v6136_v51 = vpop.permute.xlu1 %2302 }
 0x18e   : > { %8986 = vst [vmem:[#allocation126_spill] sm:$0xff] %v6134_v16  ;;  %v6138_v42 = vpop.permute.xlu0 %2151  ;;  %v1050_v16 = vsel %vm5882_vm4, %v5767_v27, 0.0  ;;  %v1069_v27 = vsel %vm5437_vm7, %v5459_v53, 0.0  ;;  %vm3199_vm7 = vcmask 130048  }
 0x18f   : > { %8987 = vst [vmem:[#allocation127_spill] sm:$0xff] %v6136_v51 }
 0x190   : > { %8988 = vst [vmem:[#allocation128_spill] sm:$0xff] %v6138_v42 }
 0x193   : > { %2075 = vperm.xlu2 %4944, %v5588_v20   ;;  %1935 = vperm.xlu1 %4943, %v5553_v41  }
 0x194   : > { %1855 = vperm.xlu0 %4942, %v5422_v38  }
 0x195   : > { %v6143_v32 = vpop.permute.xlu2 %2147  ;;  %v6145_v8 = vpop.permute.xlu1 %2538 }
 0x196   : > { %8989 = vst [vmem:[#allocation129_spill] sm:$0xff] %v6143_v32  ;;  %v6147_v56 = vpop.permute.xlu0 %2533  ;;  %v944_v32 = vld [vmem:[%s5362_s1 + $0xba] sm:$0xff] }
 0x19b   : > { %2367 = vperm.xlu2 %4944, %v1050_v16   ;;  %2287 = vperm.xlu1 %4943, %v1034_v60   ;;  %v720_v60 = vadd.s32 184, %v5350_v3  ;;  %v6175_v16 = vadd.s32 56, %v5350_v3 }
 0x19c   : > { %2139 = vperm.xlu0 %4942, %v5748_v24  }
 0x19d   : > { %v6156_v38 = vpop.permute.xlu2 %2528  ;;  %v6158_v41 = vpop.permute.xlu1 %2613  ;;  %8992 = vst [vmem:[#allocation132_spill] sm:$0xff] %v6175_v16  ;;  %v752_v46 = vand.u32 15, %v720_v60  ;;  %v736_v53 = vand.u32 15, %v6175_v16  ;;  %v6197_v60 = vld [vmem:[%s5362_s1 + $0x3a] sm:$0xff] }
 0x19e   : > { %8990 = vst [vmem:[#allocation130_spill] sm:$0xff] %v6156_v38  ;;  %v6160_v20 = vpop.permute.xlu0 %2548 }
 0x19f   : > { %vm6187_vm0 = vcmp.ne.s32.totalorder %v752_v46, 15  ;;  %vm6192_vm1 = vcmp.ne.s32.totalorder %v736_v53, 15  ;;  %9002 = vst [vmem:[#allocation136_spill] sm:$0xff] %v6197_v60 }
 0x1a3   : > { %2735 = vperm.xlu2 %4944, %v5627_v57   ;;  %2598 = vperm.xlu1 %4943, %v1085_v14   ;;  %v8994_v57 = vld [vmem:[#allocation67_spill] sm:$0xff] }
 0x1a4   : > { %2518 = vperm.xlu0 %4942, %v1069_v27  }
 0x1a5   : > { %v6169_v24 = vpop.permute.xlu2 %2747  ;;  %v6171_v5 = vpop.permute.xlu1 %1714 }
 0x1a6   : > { %8991 = vst [vmem:[#allocation131_spill] sm:$0xff] %v6171_v5  ;;  %v6177_v25 = vpop.permute.xlu0 %1634  ;;  %v8996_v5 = vmov 0 }
 0x1a7   : > { %8993 = vst [vmem:[#allocation133_spill] sm:$0xff] %v6177_v25  ;;  %v8997_v5 = vsel %vm6187_vm0, 4294967295, %v8996_v5  ;;  %v8999_v25 = vmov 0 }
 0x1a8   : > { %8998 = vst [vmem:[#allocation134_spill] sm:$0xff] %v8997_v5  ;;  %v9000_v25 = vsel %vm6192_vm1, 4294967295, %v8999_v25  ;;  %v9012_v5 = vld [vmem:[#allocation29_spill] sm:$0xff] }
 0x1a9   : > { %9001 = vst [vmem:[#allocation135_spill] sm:$0xff] %v9000_v25 }
 0x1ab   : > { %3030 = vperm.xlu2 %4944, %v1091_v33   ;;  %2950 = vperm.xlu1 %4943, %v5704_v2   ;;  %v976_v2 = vsel %vm6187_vm0, %v944_v32, 0.0  ;;  %v9010_v32 = vld [vmem:[#allocation16_spill] sm:$0xff] }
 0x1ac   : > { %2799 = vperm.xlu0 %4942, %v8994_v57   ;;  %v960_v57 = vsel %vm6192_vm1, %v6197_v60, 0.0  ;;  %vm9011_vm2 = vnez %v9010_v32  ;;  %v9020_v32 = vld [vmem:[#allocation73_spill] sm:$0xff] }
 0x1ad   : > { %v6183_v14 = vpop.permute.xlu2 %2809  ;;  %v6185_v27 = vpop.permute.xlu1 %2083  ;;  %v995_v35 = vsel %vm9011_vm2, %v9009_v36, 0.0  ;;  %v6236_v36 = vld [vmem:[%s9013_s6 + $0x1] ss:$0 sm:$0xff] }
 0x1ae   : > { %8995 = vst [vmem:[#allocation67_spill] sm:$0xff] %v6185_v27  ;;  %v6199_v33 = vpop.permute.xlu0 %1945  ;;  %v9007_v27 = vld [vmem:[#allocation22_spill] sm:$0xff] }
 0x1af   : > { %9003 = vst [vmem:[#allocation137_spill] sm:$0xff] %v6199_v33  ;;  %v1011_v33 = vsel %vm5524_vm13, %v9007_v27, 0.0  ;;  %v9016_v27 = vld [vmem:[#allocation50_spill] sm:$0xff] }
 0x1b3   : > { %1699 = vperm.xlu2 %4944, %v976_v2   ;;  %1619 = vperm.xlu1 %4943, %v960_v57  }
 0x1b4   : > { %1468 = vperm.xlu0 %4942, %v6018_v45   ;;  %v6223_v45 = vld [vmem:[%s9013_s6] ss:$0 sm:$0xff] }
 0x1b5   : > { %v6207_v46 = vpop.permute.xlu2 %1709  ;;  %v6209_v53 = vpop.permute.xlu1 %2377  ;;  %v1304_v60 = vmul.f32 %v6223_v45, %v9016_v27  ;;  %v9018_v27 = vld [vmem:[#allocation71_spill] sm:$0xff] }
 0x1b6   : > { %9004 = vst [vmem:[#allocation138_spill] sm:$0xff] %v6207_v46  ;;  %v6211_v16 = vpop.permute.xlu0 %2297 }
 0x1b7   : > { %9005 = vst [vmem:[#allocation139_spill] sm:$0xff] %v6209_v53  ;;  %v8777_v53 = vmov 0.0  }
 0x1b8   : > { %9006 = vst [vmem:[#allocation140_spill] sm:$0xff] %v6211_v16  ;;  %v9019_v16 = vld [vmem:[#allocation72_spill] sm:$0xff] }
 0x1b9   : > { %3232 = vst.msk [vmem:[#allocation5 + $0x100] sm:$0xff] %vm3199_vm7, %v8777_v53 }
 0x1ba   : > { %3233 = vst.msk [vmem:[#allocation5 + $0x108] sm:$0xff] %vm3199_vm7, %v8777_v53 }
 0x1bb   : > { %2071 = vperm.xlu2 %4944, %v9012_v5   ;;  %1930 = vperm.xlu1 %4943, %v1011_v33   ;;  %v1533_v5 = vmul.f32 %v6236_v36, %v5912_v63  ;;  %3235 = vst.msk [vmem:[#allocation5 + $0x110] sm:$0x1] %vm3234_vm10, %v8777_v53  ;;  %v9025_v53 = vld [vmem:[#allocation25_spill] sm:$0xff] }
 0x1bc   : > { %1850 = vperm.xlu0 %4942, %v995_v35   ;;  %v6241_v35 = vld [vmem:[%s9017_s3] ss:$0 sm:$0xff] }
 0x1bd   : > { %v6225_v2 = vpop.permute.xlu2 %2079  ;;  %v6227_v57 = vpop.permute.xlu1 %2743  ;;  %v1339_v33 = vadd.f32 %v6241_v35, %v1304_v60 }
 0x1be   : > { %9014 = vst [vmem:[#allocation22_spill] sm:$0xff] %v6225_v2  ;;  %v6229_v46 = vpop.permute.xlu0 %2608  ;;  %v6249_v2 = vld [vmem:[%s9013_s6 + $0x2] ss:$0 sm:$0xff] }
 0x1bf   : > { %9015 = vst [vmem:[#allocation18_spill] sm:$0xff] %v6229_v46  ;;  %v1565_v62 = vadd.f32 %v1533_v5, %v1339_v33  ;;  %v9022_v5 = vld [vmem:[#allocation65_spill] sm:$0xff]  ;;  %v1774_v51 = vmul.f32 %v6249_v2, %v5908_v30  ;;  %v2000_v30 = vmul.f32 %v6257_v59, %v5984_v49  ;;  %v6329_v49 = vld [vmem:[%s9013_s6 + $0x8] ss:$0 sm:$0xff] }
 0x1c0   : > { %v1319_v33 = vmul.f32 %v6223_v45, %v9022_v5  ;;  %v9026_v5 = vld [vmem:[#allocation19_spill] sm:$0xff] }
 0x1c2   : > { %v1354_v23 = vadd.f32 %v6241_v35, %v1319_v33 }
 0x1c3   : > { %2362 = vperm.xlu2 %4944, %v9018_v27   ;;  %2282 = vperm.xlu1 %4943, %v9019_v16   ;;  %v1759_v16 = vmul.f32 %v6249_v2, %v5878_v4  ;;  %v6279_v27 = vld [vmem:[%s9013_s6 + $0x4] ss:$0 sm:$0xff]  ;;  %v6284_v4 = vld [vmem:[%s9013_s6 + $0x5] ss:$0 sm:$0xff] }
 0x1c4   : > { %2135 = vperm.xlu0 %4942, %v9020_v32   ;;  %v1985_v32 = vmul.f32 %v6257_v59, %v5975_v17  ;;  %v9023_v17 = vld [vmem:[#allocation81_spill] sm:$0xff] }
 0x1c5   : > { %v6259_v63 = vpop.permute.xlu2 %2372  ;;  %v6261_v60 = vpop.permute.xlu1 %2755  ;;  %v1548_v42 = vmul.f32 %v6236_v36, %v9023_v17  ;;  %v9029_v17 = vld [vmem:[#allocation83_spill] sm:$0xff] }
 0x1c6   : > { %9021 = vst [vmem:[#allocation29_spill] sm:$0xff] %v6259_v63  ;;  %v6263_v25 = vpop.permute.xlu0 %2751  ;;  %v1791_v63 = vadd.f32 %v1759_v16, %v1565_v62  ;;  %v2181_v62 = vmul.f32 %v6279_v27, %v5973_v0 }
 0x1c8   : > { %v2017_v19 = vadd.f32 %v1985_v32, %v1791_v63  ;;  %v2407_v63 = vmul.f32 %v6284_v4, %v6025_v54  ;;  %v1580_v32 = vadd.f32 %v1548_v42, %v1354_v23 }
 0x1ca   : > { %v2213_v33 = vadd.f32 %v2181_v62, %v2017_v19  ;;  %v1806_v39 = vadd.f32 %v1774_v51, %v1580_v32  ;;  %v9031_v19 = vld [vmem:[#allocation80_spill] sm:$0xff]  ;;  %v2196_v51 = vmul.f32 %v6279_v27, %v5982_v52 }
 0x1cb   : > { %2731 = vperm.xlu2 %4944, %v9024_v9   ;;  %2593 = vperm.xlu1 %4943, %v9025_v53   ;;  %v6305_v9 = vld [vmem:[%s9013_s6 + $0x6] ss:$0 sm:$0xff]  ;;  %v6310_v53 = vld [vmem:[%s9013_s6 + $0x7] ss:$0 sm:$0xff] }
 0x1cc   : > { %2513 = vperm.xlu0 %4942, %v9026_v5   ;;  %v2633_v54 = vmul.f32 %v6305_v9, %v6145_v8  ;;  %v1122_v5 = vsel %vm5762_vm9, %v9029_v17, 0.0  ;;  %v2439_v46 = vadd.f32 %v2407_v63, %v2213_v33  ;;  %v2829_v23 = vmul.f32 %v6310_v53, %v6169_v24 }
 0x1cd   : > { %v6294_v16 = vpop.permute.xlu2 %2739  ;;  %v6296_v38 = vpop.permute.xlu1 %1629  ;;  %v2032_v8 = vadd.f32 %v2000_v30, %v1806_v39  ;;  %v2648_v39 = vmul.f32 %v6305_v9, %v6158_v41  ;;  %v2844_v30 = vmul.f32 %v6310_v53, %v6183_v14  ;;  %v9035_v14 = vld [vmem:[#allocation74_spill] sm:$0xff] }
 0x1ce   : > { %9027 = vst [vmem:[#allocation50_spill] sm:$0xff] %v6294_v16  ;;  %v6312_v0 = vpop.permute.xlu0 %1478  ;;  %v2665_v29 = vadd.f32 %v2633_v54, %v2439_v46 }
 0x1cf   : > { %9028 = vst [vmem:[#allocation71_spill] sm:$0xff] %v6296_v38  ;;  %v9030_v38 = vld [vmem:[#allocation48_spill] sm:$0xff]  ;;  %v2228_v32 = vadd.f32 %v2196_v51, %v2032_v8  ;;  %v1532_v8 = vmul.f32 %v6236_v36, %v9035_v14 }
 0x1d0   : > { %v1106_v16 = vsel %vm5771_vm11, %v9030_v38, 0.0  ;;  %v2422_v38 = vmul.f32 %v6284_v4, %v6055_v1  ;;  %v2861_v24 = vadd.f32 %v2829_v23, %v2665_v29  ;;  %v9033_v1 = vld [vmem:[#allocation51_spill] sm:$0xff] }
 0x1d1   : > { %v1303_v54 = vmul.f32 %v6223_v45, %v9033_v1  ;;  %v5103_v1 = vld [vmem:[%s5362_s1 + $0x48] sm:$0xff] }
 0x1d2   : > { %v2454_v33 = vadd.f32 %v2422_v38, %v2228_v32  ;;  %v9036_v32 = vld [vmem:[#allocation38_spill] sm:$0xff] }
 0x1d3   : > { %3025 = vperm.xlu2 %4944, %v1122_v5   ;;  %2945 = vperm.xlu1 %4943, %v1106_v16   ;;  %v927_v16 = vld [vmem:[%s5362_s1 + $0x32] sm:$0xff] }
 0x1d4   : > { %2795 = vperm.xlu0 %4942, %v9031_v19   ;;  %v2680_v17 = vadd.f32 %v2648_v39, %v2454_v33  ;;  %v1305_v39 = vmul.f32 %v6223_v45, %v9036_v32  ;;  %v9038_v33 = vld [vmem:[#allocation30_spill] sm:$0xff] }
 0x1d5   : > { %v2961_v42 = vpop.permute.xlu2 %2960  ;;  %v6332_v7 = vpop.permute.xlu1 %1940 }
 0x1d6   : > { %9032 = vst [vmem:[#allocation72_spill] sm:$0xff] %v6332_v7  ;;  %v3055_v62 = vmul.f32 %v6329_v49, %v2961_v42  ;;  %v6339_v63 = vpop.permute.xlu0 %1860  ;;  %v2876_v29 = vadd.f32 %v2844_v30, %v2680_v17  ;;  %v1338_v42 = vadd.f32 %v6241_v35, %v1303_v54  ;;  %v9039_v30 = vld [vmem:[#allocation24_spill] sm:$0xff]  ;;  %v5133_v7 = vld [vmem:[%s5362_s1 + $0x58] sm:$0xff] }
 0x1d8   : > { %v3087_v46 = vadd.f32 %v3055_v62, %v2861_v24  ;;  %v1564_v38 = vadd.f32 %v1532_v8, %v1338_v42  ;;  %v1984_v24 = vmul.f32 %v6257_v59, %v5977_v10  ;;  %v9040_v10 = vld [vmem:[#allocation92_spill] sm:$0xff]  ;;  %v9041_v8 = vld [vmem:[#allocation77_spill] sm:$0xff]  ;;  %v2406_v42 = vmul.f32 %v6284_v4, %v6079_v47 }
 0x1d9   : > { %v1534_v17 = vmul.f32 %v6236_v36, %v9040_v10 }
 0x1da   : > { %vm3119_vm9 = vcmp.ge.f32.partialorder %v3087_v46, 0.0  ;;  %v3151_v52 = vmul.f32 0.01, %v3087_v46 }
 0x1db   : > { %1694 = vperm.xlu2 %4944, %v6110_v31   ;;  %1614 = vperm.xlu1 %4943, %v927_v16  }
 0x1dc   : > { %v6349_v5 = vsel %vm3119_vm9, %v3087_v46, %v3151_v52  ;;  %1463 = vperm.xlu0 %4942, %v6021_v15   ;;  %v1758_v15 = vmul.f32 %v6249_v2, %v5935_v26  ;;  %v9037_v46 = vld [vmem:[#allocation54_spill] sm:$0xff]  ;;  %v2180_v26 = vmul.f32 %v6279_v27, %v6010_v28 }
 0x1dd   : > { %9034 = vst [vmem:[#allocation73_spill] sm:$0xff] %v6349_v5  ;;  %v3036_v41 = vpop.permute.xlu2 %3035  ;;  %v6354_v23 = vpop.permute.xlu1 %2292  ;;  %v1306_v16 = vmul.f32 %v6223_v45, %v9037_v46  ;;  %v2632_v46 = vmul.f32 %v6305_v9, %v6147_v56 }
 0x1de   : > { %3216 = vst.msk [vmem:[#allocation5 + $0x80] sm:$0xff] %vm3199_vm7, %v6349_v5  ;;  %v3070_v31 = vmul.f32 %v6329_v49, %v3036_v41  ;;  %v6359_v19 = vpop.permute.xlu0 %2143  ;;  %v1790_v52 = vadd.f32 %v1758_v15, %v1564_v38  ;;  %v1340_v15 = vadd.f32 %v6241_v35, %v1305_v39  ;;  %v1761_v38 = vmul.f32 %v6249_v2, %v5946_v13  ;;  %v5116_v5 = vld [vmem:[%s5362_s1 + $0x7a] sm:$0xff] }
 0x1df   : > { %v1987_v13 = vmul.f32 %v6257_v59, %v5986_v18  ;;  %v1986_v18 = vmul.f32 %v6257_v59, %v5933_v44 }
 0x1e0   : > { %v3102_v51 = vadd.f32 %v3070_v31, %v2876_v29  ;;  %v1535_v29 = vmul.f32 %v6236_v36, %v9041_v8  ;;  %v2016_v31 = vadd.f32 %v1984_v24, %v1790_v52  ;;  %v9042_v24 = vld [vmem:[#allocation87_spill] sm:$0xff]  ;;  %v1566_v52 = vadd.f32 %v1534_v17, %v1340_v15 }
 0x1e1   : > { %v1048_v47 = vsel %vm6029_vm6, %v9042_v24, 0.0 }
 0x1e2   : > { %vm3134_vm11 = vcmp.ge.f32.partialorder %v3102_v51, 0.0  ;;  %v3166_v62 = vmul.f32 0.01, %v3102_v51  ;;  %v2212_v32 = vadd.f32 %v2180_v26, %v2016_v31  ;;  %v2828_v26 = vmul.f32 %v6310_v53, %v6227_v57 }
 0x1e3   : > { %2067 = vperm.xlu2 %4944, %v9038_v33   ;;  %1925 = vperm.xlu1 %4943, %v9039_v30   ;;  %v9043_v33 = vld [vmem:[#allocation89_spill] sm:$0xff]  ;;  %v2183_v31 = vmul.f32 %v6279_v27, %v6027_v37  ;;  %v2182_v57 = vmul.f32 %v6279_v27, %v6043_v43  ;;  %v2409_v37 = vmul.f32 %v6284_v4, %v6088_v61 }
 0x1e4   : > { %1845 = vperm.xlu0 %4942, %v5103_v1   ;;  %v3198_v54 = vsel %vm3134_vm11, %v3102_v51, %v3166_v62  ;;  %v1341_v51 = vadd.f32 %v6241_v35, %v1306_v16  ;;  %v1760_v62 = vmul.f32 %v6249_v2, %v5948_v21  ;;  %v1032_v39 = vsel %vm6036_vm8, %v9043_v33, 0.0  ;;  %v3331_v30 = vld [vmem:[#allocation5 + $0x108] sm:$0xff]  ;;  %v9044_v33 = vld [vmem:[#allocation91_spill] sm:$0xff] }
 0x1e5   : > { %v6377_v41 = vpop.permute.xlu2 %1704  ;;  %v6379_v14 = vpop.permute.xlu1 %2603  ;;  %3231 = vst.msk [vmem:[#allocation5 + $0xf8] sm:$0xff] %vm3199_vm7, %v3198_v54  ;;  %v3333_v16 = vld [vmem:[#allocation5 + $0x109] sm:$0xff]  ;;  %v2438_v21 = vadd.f32 %v2406_v42, %v2212_v32 }
 0x1e6   : > { %v6386_v28 = vpop.permute.xlu0 %2523  ;;  %v1567_v1 = vadd.f32 %v1535_v29, %v1341_v51  ;;  %v1792_v56 = vadd.f32 %v1760_v62, %v1566_v52  ;;  %v3365_v10 = vmax.f32 %v3331_v30, %v3333_v16  ;;  %v5104_v30 = vld [vmem:[%s5362_s1 + $0xf0] sm:$0xff] }
 0x1e7   : > { %v2664_v24 = vadd.f32 %v2632_v46, %v2438_v21  ;;  %v2408_v46 = vmul.f32 %v6284_v4, %v6090_v11  ;;  %v1083_v61 = vsel %vm5516_vm12, %v5104_v30, 0.0  ;;  %v9045_v16 = vld [vmem:[#allocation66_spill] sm:$0xff] }
 0x1e8   : > { %v1793_v8 = vadd.f32 %v1761_v38, %v1567_v1  ;;  %v2018_v44 = vadd.f32 %v1986_v18, %v1792_v56  ;;  %v1318_v52 = vmul.f32 %v6223_v45, %v9045_v16  ;;  %v5105_v11 = vld [vmem:[%s5362_s1 + $0x70] sm:$0xff]  ;;  %v718_v18 = vadd.s32 168, %v5350_v3  ;;  %v9048_v16 = vld [vmem:[#allocation95_spill] sm:$0xff] }
 0x1e9   : > { %v2860_v38 = vadd.f32 %v2828_v26, %v2664_v24  ;;  %v1067_v21 = vsel %vm5412_vm5, %v5105_v11, 0.0  ;;  %v5107_v11 = vld [vmem:[%s5362_s1 + $0xf9] sm:$0xff] }
 0x1ea   : > { %v2019_v51 = vadd.f32 %v1987_v13, %v1793_v8  ;;  %v2214_v1 = vadd.f32 %v2182_v57, %v2018_v44  ;;  %v2634_v13 = vmul.f32 %v6305_v9, %v6097_v55  ;;  %v5106_v8 = vld [vmem:[%s5362_s1 + $0x79] sm:$0xff]  ;;  %v1547_v55 = vmul.f32 %v6236_v36, %v5937_v48 }
 0x1eb   : > { %2357 = vperm.xlu2 %4944, %v1048_v47   ;;  %2277 = vperm.xlu1 %4943, %v1032_v39   ;;  %v2635_v39 = vmul.f32 %v6305_v9, %v6160_v20  ;;  %v2831_v20 = vmul.f32 %v6310_v53, %v6261_v60  ;;  %v6454_v48 = vadd.s32 40, %v5350_v3  ;;  %v1773_v44 = vmul.f32 %v6249_v2, %v5921_v58 }
 0x1ec   : > { %2131 = vperm.xlu0 %4942, %v9044_v33   ;;  %v6409_v17 = vld [vmem:[#allocation5 + $0xf9] sm:$0xff]  ;;  %v2215_v47 = vadd.f32 %v2183_v31, %v2019_v51  ;;  %v2440_v22 = vadd.f32 %v2408_v46, %v2214_v1  ;;  %v2195_v58 = vmul.f32 %v6279_v27, %v6081_v40  ;;  %v2421_v40 = vmul.f32 %v6284_v4, %v6086_v12 }
 0x1ed   : > { %v6415_v29 = vpop.permute.xlu2 %2075  ;;  %v2956_v42 = vpop.permute.xlu1 %2955  ;;  %v3299_v15 = vmax.f32 %v3198_v54, %v6409_v17  ;;  %9046 = vst [vmem:[#allocation65_spill] sm:$0xff] %v6454_v48  ;;  %v734_v30 = vand.u32 15, %v6454_v48  ;;  %v925_v48 = vld [vmem:[%s5362_s1 + $0x22] sm:$0xff] }
 0x1ee   : > { %v3054_v62 = vmul.f32 %v6329_v49, %v2956_v42  ;;  %v6421_v32 = vpop.permute.xlu0 %2804  ;;  %v2441_v26 = vadd.f32 %v2409_v37, %v2215_v47  ;;  %v2666_v24 = vadd.f32 %v2634_v13, %v2440_v22  ;;  %v9047_v47 = vld [vmem:[#allocation107_spill] sm:$0xff] }
 0x1ef   : > { %v3397_v43 = vmax.f32 %v3299_v15, %v3365_v10  ;;  %v2830_v10 = vmul.f32 %v6310_v53, %v6263_v25  ;;  %v1353_v25 = vadd.f32 %v6241_v35, %v1318_v52  ;;  %v9049_v52 = vld [vmem:[#allocation44_spill] sm:$0xff]  ;;  %vm6487_vm10 = vcmp.ne.s32.totalorder %v734_v30, 15 }
 0x1f0   : > { %v3086_v54 = vadd.f32 %v3054_v62, %v2860_v38  ;;  %v2667_v31 = vadd.f32 %v2635_v39, %v2441_v26  ;;  %v1999_v39 = vmul.f32 %v6257_v59, %v9047_v47 }
 0x1f1   : > { %3470 = vmatpush.msra.mxu1 %v3397_v43  ;;  %v2862_v51 = vadd.f32 %v2830_v10, %v2666_v24  ;;  %v1579_v38 = vadd.f32 %v1547_v55, %v1353_v25  ;;  %v750_v43 = vand.u32 15, %v718_v18  ;;  %v926_v55 = vld [vmem:[%s5362_s1 + $0x2a] sm:$0xff]  ;;  %v5108_v18 = vld [vmem:[%s5362_s1 + $0x40] sm:$0xff] }
 0x1f2   : > { %vm3118_vm14 = vcmp.ge.f32.partialorder %v3086_v54, 0.0  ;;  %v3150_v56 = vmul.f32 0.01, %v3086_v54  ;;  %v2863_v57 = vadd.f32 %v2831_v20, %v2667_v31  ;;  %v9059_v24 = vld [vmem:[#allocation18_spill] sm:$0xff]  ;;  %v9060_v25 = vld [vmem:[#allocation17_spill] sm:$0xff] }
 0x1f3   : > { %2727 = vperm.xlu2 %4944, %v5106_v8   ;;  %2588 = vperm.xlu1 %4943, %v1083_v61   ;;  %v1805_v1 = vadd.f32 %v1773_v44, %v1579_v38  ;;  %vm6477_vm15 = vcmp.ne.s32.totalorder %v750_v43, 15  ;;  %v9056_v8 = vmov 0  ;;  %vm9061_vm9 = vnez %v9060_v25 }
 0x1f4   : > { %2508 = vperm.xlu0 %4942, %v1067_v21   ;;  %v6444_v34 = vsel %vm3118_vm14, %v3086_v54, %v3150_v56  ;;  %v9053_v56 = vmov 0  ;;  %v9057_v8 = vsel %vm6487_vm10, 4294967295, %v9056_v8 }
 0x1f5   : > { %v6446_v33 = vpop.permute.xlu2 %2367  ;;  %v2971_v60 = vpop.permute.xlu1 %2970  ;;  %3215 = vst.msk [vmem:[#allocation5 + $0x78] sm:$0xff] %vm3199_vm7, %v6444_v34  ;;  %v9054_v56 = vsel %vm6477_vm15, 4294967295, %v9053_v56  ;;  %v2031_v22 = vadd.f32 %v1999_v39, %v1805_v1 }
 0x1f6   : > { %v3057_v42 = vmul.f32 %v6329_v49, %v2971_v60  ;;  %v2966_v15 = vpop.permute.xlu0 %2965  ;;  %9055 = vst [vmem:[#allocation19_spill] sm:$0xff] %v9054_v56  ;;  %v2647_v60 = vmul.f32 %v6305_v9, %v9059_v24  ;;  %v9157_v56 = vld [vmem:[#allocation137_spill] sm:$0xff] }
 0x1f7   : > { %v3056_v37 = vmul.f32 %v6329_v49, %v2966_v15  ;;  %9058 = vst [vmem:[#allocation83_spill] sm:$0xff] %v9057_v8  ;;  %v2227_v31 = vadd.f32 %v2195_v58, %v2031_v22  ;;  %v958_v15 = vsel %vm6487_vm10, %v926_v55, 0.0  ;;  %v5109_v22 = vld [vmem:[%s5362_s1 + $0xc0] sm:$0xff] }
 0x1f8   : > { %v3089_v62 = vadd.f32 %v3057_v42, %v2863_v57  ;;  %v993_v57 = vsel %vm9061_vm9, %v5108_v18, 0.0  ;;  %v9062_v42 = vld [vmem:[#allocation119_spill] sm:$0xff]  ;;  %v5110_v18 = vld [vmem:[%s5362_s1 + $0x49] sm:$0xff] }
 0x1f9   : > { %v3088_v46 = vadd.f32 %v3056_v37, %v2862_v51  ;;  %v974_v12 = vsel %vm6477_vm15, %v9062_v42, 0.0  ;;  %v2453_v51 = vadd.f32 %v2421_v40, %v2227_v31  ;;  %v2843_v37 = vmul.f32 %v6310_v53, %v6421_v32  ;;  %v9067_v40 = vld [vmem:[#allocation21_spill] sm:$0xff]  ;;  %v9069_v31 = vld [vmem:[#allocation34_spill] sm:$0xff] }
 0x1fa   : > { %vm3121_vm5 = vcmp.ge.f32.partialorder %v3089_v62, 0.0  ;;  %v3153_v54 = vmul.f32 0.01, %v3089_v62  ;;  %vm9068_vm11 = vnez %v9067_v40  ;;  %v1302_v24 = vmul.f32 %v6223_v45, %v9069_v31 }
 0x1fb   : > { %vm3120_vm12 = vcmp.ge.f32.partialorder %v3088_v46, 0.0  ;;  %v3152_v61 = vmul.f32 0.01, %v3088_v46  ;;  %3020 = vperm.xlu2 %4944, %v9048_v16   ;;  %2940 = vperm.xlu1 %4943, %v9049_v52   ;;  %v1009_v55 = vsel %vm9068_vm11, %v5109_v22, 0.0  ;;  %v5112_v52 = vld [vmem:[%s5362_s1 + $0xf1] sm:$0xff] }
 0x1fc   : > { %v6466_v13 = vsel %vm3121_vm5, %v3089_v62, %v3153_v54  ;;  %2791 = vperm.xlu0 %4942, %v5107_v11   ;;  %v6504_v38 = vld [vmem:[#allocation5 + $0x79] sm:$0xff]  ;;  %v2679_v62 = vadd.f32 %v2647_v60, %v2453_v51 }
 0x1fd   : > { %9050 = vst [vmem:[#allocation81_spill] sm:$0xff] %v6466_v13  ;;  %v6471_v21 = vsel %vm3120_vm12, %v3088_v46, %v3152_v61  ;;  %v6473_v26 = vpop.permute.xlu2 %2735  ;;  %v6475_v20 = vpop.permute.xlu1 %1624  ;;  %v3283_v61 = vmax.f32 %v6444_v34, %v6504_v38  ;;  %v9070_v34 = vld [vmem:[#allocation97_spill] sm:$0xff] }
 0x1fe   : > { %3218 = vst.msk [vmem:[#allocation5 + $0x90] sm:$0xff] %vm3199_vm7, %v6466_v13  ;;  %v6485_v10 = vpop.permute.xlu0 %1473  ;;  %v2875_v54 = vadd.f32 %v2843_v37, %v2679_v62  ;;  %v1337_v37 = vadd.f32 %v6241_v35, %v1302_v24  ;;  %v9072_v62 = vld [vmem:[#allocation99_spill] sm:$0xff] }
 0x1ff   : > { %9051 = vst [vmem:[#allocation37_spill] sm:$0xff] %v6471_v21 }
 0x200   : > { %9052 = vst [vmem:[#allocation25_spill] sm:$0xff] %v6475_v20  ;;  %v5135_v20 = vld [vmem:[%s5362_s1 + $0x6a] sm:$0xff] }
 0x201   : > { %3217 = vst.msk [vmem:[#allocation5 + $0x88] sm:$0xff] %vm3199_vm7, %v6471_v21  ;;  %v1104_v21 = vsel %vm5889_vm3, %v5116_v5, 0.0 }
 0x203   : > { %1840 = vperm.xlu2 %4944, %v993_v57   ;;  %1689 = vperm.xlu1 %4943, %v974_v12   ;;  %v9071_v57 = vld [vmem:[#allocation85_spill] sm:$0xff] }
 0x204   : > { %1609 = vperm.xlu0 %4942, %v958_v15   ;;  %v1531_v42 = vmul.f32 %v6236_v36, %v9071_v57 }
 0x205   : > { %v3031_v44 = vpop.permute.xlu2 %3030  ;;  %v6506_v46 = vpop.permute.xlu1 %1935 }
 0x206   : > { %9063 = vst [vmem:[#allocation48_spill] sm:$0xff] %v6506_v46  ;;  %v3069_v30 = vmul.f32 %v6329_v49, %v3031_v44  ;;  %v6513_v32 = vpop.permute.xlu0 %1855  ;;  %v1757_v44 = vmul.f32 %v6249_v2, %v9072_v62  ;;  %v9104_v46 = vld [vmem:[#allocation116_spill] sm:$0xff] }
 0x207   : > { %9066 = vst [vmem:[#allocation74_spill] sm:$0xff] %v6513_v32  ;;  %v9103_v32 = vld [vmem:[#allocation115_spill] sm:$0xff] }
 0x208   : > { %v6508_v43 = vld [vmem:[#allocation5 + $0x89] sm:$0xff]  ;;  %v6510_v39 = vld [vmem:[#allocation5 + $0x81] sm:$0xff]  ;;  %v3101_v58 = vadd.f32 %v3069_v30, %v2875_v54  ;;  %v1563_v54 = vadd.f32 %v1531_v42, %v1337_v37 }
 0x209   : > { %9064 = vst [vmem:[#allocation80_spill] sm:$0xff] %v6508_v43  ;;  %v3315_v47 = vld [vmem:[#allocation5 + $0x88] sm:$0xff]  ;;  %v3330_v30 = vld [vmem:[#allocation5 + $0x100] sm:$0xff] }
 0x20a   : > { %9065 = vst [vmem:[#allocation51_spill] sm:$0xff] %v6510_v39  ;;  %v3349_v16 = vmax.f32 %v3315_v47, %v6508_v43  ;;  %v3165_v60 = vmul.f32 0.01, %v3101_v58  ;;  %vm3133_vm14 = vcmp.ge.f32.partialorder %v3101_v58, 0.0 }
 0x20b   : > { %2127 = vperm.xlu2 %4944, %v9070_v34   ;;  %2063 = vperm.xlu1 %4943, %v5110_v18   ;;  %v9077_v34 = vld [vmem:[#allocation102_spill] sm:$0xff] }
 0x20c   : > { %v3381_v11 = vmax.f32 %v3283_v61, %v3349_v16  ;;  %1920 = vperm.xlu0 %4942, %v1009_v55   ;;  %v3197_v12 = vsel %vm3133_vm14, %v3101_v58, %v3165_v60  ;;  %v3332_v61 = vld [vmem:[#allocation5 + $0x101] sm:$0xff]  ;;  %v1789_v16 = vadd.f32 %v1757_v44, %v1563_v54  ;;  %v9075_v55 = vld [vmem:[#allocation98_spill] sm:$0xff]  ;;  %v9079_v44 = vld [vmem:[#allocation127_spill] sm:$0xff] }
 0x20d   : > { %v6531_v15 = vpop.permute.xlu2 %1699  ;;  %v6533_v51 = vpop.permute.xlu1 %2287  ;;  %3230 = vst.msk [vmem:[#allocation5 + $0xf0] sm:$0xff] %vm3199_vm7, %v3197_v12  ;;  %v9074_v58 = vld [vmem:[#allocation101_spill] sm:$0xff]  ;;  %v3364_v22 = vmax.f32 %v3330_v30, %v3332_v61  ;;  %v1983_v31 = vmul.f32 %v6257_v59, %v9075_v55  ;;  %v9076_v60 = vld [vmem:[#allocation106_spill] sm:$0xff]  ;;  %v2405_v54 = vmul.f32 %v6284_v4, %v9079_v44  ;;  %v9084_v44 = vld [vmem:[#allocation100_spill] sm:$0xff] }
 0x20e   : > { %3420 = vmatpush.msra.mxu0 %v3381_v11  ;;  %v6539_v47 = vpop.permute.xlu0 %2139  ;;  %v5111_v11 = vld [vmem:[%s5362_s1 + $0x68] sm:$0xff]  ;;  %v2179_v24 = vmul.f32 %v6279_v27, %v9076_v60 }
 0x20f   : > { %9073 = vst [vmem:[#allocation38_spill] sm:$0xff] %v6539_v47  ;;  %v2015_v62 = vadd.f32 %v1983_v31, %v1789_v16  ;;  %v9082_v16 = vld [vmem:[#allocation52_spill] sm:$0xff]  ;;  %v5124_v47 = vld [vmem:[%s5362_s1 + $0xe9] sm:$0xff] }
 0x210   : > { %v1317_v31 = vmul.f32 %v6223_v45, %v9082_v16 }
 0x213   : > { %2503 = vperm.xlu2 %4944, %v5111_v11   ;;  %2352 = vperm.xlu1 %4943, %v9074_v58   ;;  %v2211_v11 = vadd.f32 %v2179_v24, %v2015_v62  ;;  %v9080_v58 = vld [vmem:[#allocation130_spill] sm:$0xff]  ;;  %v5114_v24 = vld [vmem:[%s5362_s1 + $0xe8] sm:$0xff] }
 0x214   : > { %2272 = vperm.xlu0 %4942, %v9077_v34   ;;  %v6548_v18 = vld [vmem:[#allocation5 + $0xf1] sm:$0xff]  ;;  %v2631_v55 = vmul.f32 %v6305_v9, %v9080_v58  ;;  %v9081_v34 = vld [vmem:[#allocation50_spill] sm:$0xff]  ;;  %v1352_v58 = vadd.f32 %v6241_v35, %v1317_v31 }
 0x215   : > { %v6550_v57 = vpop.permute.xlu2 %2071  ;;  %v6552_v42 = vpop.permute.xlu1 %2598  ;;  %v3298_v37 = vmax.f32 %v3197_v12, %v6548_v18  ;;  %v2437_v60 = vadd.f32 %v2405_v54, %v2211_v11  ;;  %v2827_v1 = vmul.f32 %v6310_v53, %v9081_v34  ;;  %v5113_v12 = vld [vmem:[%s5362_s1 + $0x71] sm:$0xff]  ;;  %v1546_v54 = vmul.f32 %v6236_v36, %v9084_v44  ;;  %v9085_v34 = vld [vmem:[#allocation104_spill] sm:$0xff] }
 0x216   : > { %9078 = vst [vmem:[#allocation54_spill] sm:$0xff] %v6550_v57  ;;  %v6557_v30 = vpop.permute.xlu0 %2518 }
 0x217   : > { %v3396_v61 = vmax.f32 %v3298_v37, %v3364_v22  ;;  %v2663_v22 = vadd.f32 %v2631_v55, %v2437_v60  ;;  %v5115_v55 = vld [vmem:[%s5362_s1 + $0xfa] sm:$0xff]  ;;  %v1578_v44 = vadd.f32 %v1546_v54, %v1352_v58  ;;  %v2646_v60 = vmul.f32 %v6305_v9, %v6379_v14 }
 0x218   : > { %v9090_v54 = vld [vmem:[#allocation139_spill] sm:$0xff] }
 0x219   : > { %3471 = vmatpush.msra.mxu1 %v3396_v61  ;;  %v2859_v61 = vadd.f32 %v2827_v1, %v2663_v22  ;;  %v9088_v1 = vld [vmem:[#allocation114_spill] sm:$0xff] }
 0x21a   : > { %v1998_v22 = vmul.f32 %v6257_v59, %v9088_v1 }
 0x21b   : > { %2787 = vperm.xlu2 %4944, %v5112_v52   ;;  %2723 = vperm.xlu1 %4943, %v5113_v12   ;;  %v1772_v12 = vmul.f32 %v6249_v2, %v9085_v34 }
 0x21c   : > { %2583 = vperm.xlu0 %4942, %v5114_v24   ;;  %v1120_v24 = vsel %vm5882_vm4, %v5115_v55, 0.0 }
 0x21d   : > { %v6568_v37 = vpop.permute.xlu2 %2362  ;;  %v2951_v62 = vpop.permute.xlu1 %2950  ;;  %v1804_v31 = vadd.f32 %v1772_v12, %v1578_v44  ;;  %v5118_v44 = vld [vmem:[%s5362_s1 + $0x38] sm:$0xff] }
 0x21e   : > { %9083 = vst [vmem:[#allocation30_spill] sm:$0xff] %v6568_v37  ;;  %v3053_v52 = vmul.f32 %v6329_v49, %v2951_v62  ;;  %v2800_v11 = vpop.permute.xlu0 %2799  ;;  %v5123_v37 = vld [vmem:[%s5362_s1 + $0x72] sm:$0xff] }
 0x21f   : > { %v2030_v43 = vadd.f32 %v1998_v22, %v1804_v31  ;;  %v3314_v31 = vld [vmem:[#allocation5 + $0x80] sm:$0xff] }
 0x220   : > { %v3085_v16 = vadd.f32 %v3053_v52, %v2859_v61  ;;  %v9089_v61 = vld [vmem:[#allocation128_spill] sm:$0xff]  ;;  %v3348_v14 = vmax.f32 %v3314_v31, %v6510_v39  ;;  %v9095_v31 = vld [vmem:[#allocation46_spill] sm:$0xff]  ;;  %v2178_v39 = vmul.f32 %v6279_v27, %v9104_v46 }
 0x221   : > { %v2194_v52 = vmul.f32 %v6279_v27, %v9089_v61  ;;  %v9107_v46 = vld [vmem:[#allocation140_spill] sm:$0xff] }
 0x222   : > { %v3149_v62 = vmul.f32 0.01, %v3085_v16  ;;  %vm3117_vm5 = vcmp.ge.f32.partialorder %v3085_v16, 0.0 }
 0x223   : > { %1604 = vperm.xlu2 %4944, %v925_v48   ;;  %3015 = vperm.xlu1 %4943, %v1120_v24   ;;  %v2420_v48 = vmul.f32 %v6284_v4, %v9090_v54  ;;  %v2226_v12 = vadd.f32 %v2194_v52, %v2030_v43 }
 0x224   : > { %2935 = vperm.xlu0 %4942, %v1104_v21   ;;  %v3181_v34 = vsel %vm3117_vm5, %v3085_v16, %v3149_v62  ;;  %v2842_v21 = vmul.f32 %v6310_v53, %v2800_v11  ;;  %v5117_v16 = vld [vmem:[%s5362_s1 + $0xb8] sm:$0xff]  ;;  %v5119_v62 = vld [vmem:[%s5362_s1 + $0xa2] sm:$0xff] }
 0x225   : > { %v6587_v55 = vpop.permute.xlu2 %2731  ;;  %v6589_v5 = vpop.permute.xlu1 %1619  ;;  %3214 = vst.msk [vmem:[#allocation5 + $0x70] sm:$0xff] %vm3199_vm7, %v3181_v34  ;;  %v2452_v24 = vadd.f32 %v2420_v48, %v2226_v12 }
 0x226   : > { %v6594_v58 = vpop.permute.xlu0 %1468 }
 0x227   : > { %v2678_v1 = vadd.f32 %v2646_v60, %v2452_v24  ;;  %v9092_v24 = vld [vmem:[#allocation109_spill] sm:$0xff] }
 0x229   : > { %v2874_v43 = vadd.f32 %v2842_v21, %v2678_v1  ;;  %v1301_v21 = vmul.f32 %v6223_v45, %v9095_v31  ;;  %v5120_v1 = vld [vmem:[%s5362_s1 + $0x41] sm:$0xff] }
 0x22a   : > { %v5121_v31 = vld [vmem:[%s5362_s1 + $0xe0] sm:$0xff] }
 0x22b   : > { %1915 = vperm.xlu2 %4944, %v5117_v16   ;;  %1835 = vperm.xlu1 %4943, %v5118_v44   ;;  %v1030_v44 = vsel %vm6192_vm1, %v9092_v24, 0.0  ;;  %v1336_v24 = vadd.f32 %v6241_v35, %v1301_v21  ;;  %v3329_v21 = vld [vmem:[#allocation5 + $0xf8] sm:$0xff]  ;;  %v5166_v16 = vld [vmem:[%s5362_s1 + $0xd1] sm:$0xff] }
 0x22c   : > { %1684 = vperm.xlu0 %4942, %v5119_v62   ;;  %v6602_v22 = vld [vmem:[#allocation5 + $0x71] sm:$0xff] }
 0x22d   : > { %v3026_v61 = vpop.permute.xlu2 %3025  ;;  %v6604_v54 = vpop.permute.xlu1 %1930  ;;  %v3282_v52 = vmax.f32 %v3181_v34, %v6602_v22  ;;  %v9094_v34 = vld [vmem:[#allocation110_spill] sm:$0xff] }
 0x22e   : > { %v3068_v11 = vmul.f32 %v6329_v49, %v3026_v61  ;;  %v6609_v48 = vpop.permute.xlu0 %1850 }
 0x22f   : > { %9091 = vst [vmem:[#allocation24_spill] sm:$0xff] %v6609_v48  ;;  %v3380_v12 = vmax.f32 %v3282_v52, %v3348_v14  ;;  %v9101_v48 = vld [vmem:[#allocation108_spill] sm:$0xff] }
 0x230   : > { %v3100_v60 = vadd.f32 %v3068_v11, %v2874_v43  ;;  %v9096_v43 = vld [vmem:[#allocation90_spill] sm:$0xff]  ;;  %v1046_v57 = vsel %vm6187_vm0, %v9101_v48, 0.0 }
 0x231   : > { %3421 = vmatpush.msra.mxu0 %v3380_v12  ;;  %v1530_v11 = vmul.f32 %v6236_v36, %v9096_v43 }
 0x232   : > { %v3164_v62 = vmul.f32 0.01, %v3100_v60  ;;  %vm3132_vm3 = vcmp.ge.f32.partialorder %v3100_v60, 0.0 }
 0x233   : > { %2267 = vperm.xlu2 %4944, %v1030_v44   ;;  %2123 = vperm.xlu1 %4943, %v9094_v34   ;;  %v9098_v44 = vld [vmem:[#allocation105_spill] sm:$0xff]  ;;  %v1562_v43 = vadd.f32 %v1530_v11, %v1336_v24  ;;  %v3363_v11 = vmax.f32 %v3329_v21, %v6409_v17 }
 0x234   : > { %2059 = vperm.xlu0 %4942, %v5120_v1   ;;  %v3196_v61 = vsel %vm3132_vm3, %v3100_v60, %v3164_v62  ;;  %v1756_v34 = vmul.f32 %v6249_v2, %v9098_v44  ;;  %v1081_v60 = vsel %vm5524_vm13, %v5121_v31, 0.0  ;;  %v5122_v62 = vld [vmem:[%s5362_s1 + $0x60] sm:$0xff] }
 0x235   : > { %v6618_v52 = vpop.permute.xlu2 %1694  ;;  %v6620_v14 = vpop.permute.xlu1 %2282  ;;  %3229 = vst.msk [vmem:[#allocation5 + $0xe8] sm:$0xff] %vm3199_vm7, %v3196_v61  ;;  %v1065_v13 = vsel %vm9011_vm2, %v5122_v62, 0.0 }
 0x236   : > { %v6625_v12 = vpop.permute.xlu0 %2135  ;;  %v1788_v44 = vadd.f32 %v1756_v34, %v1562_v43 }
 0x237   : > { %9097 = vst [vmem:[#allocation92_spill] sm:$0xff] %v6625_v12  ;;  %v1982_v12 = vmul.f32 %v6257_v59, %v9103_v32  ;;  %v716_v32 = vadd.s32 152, %v5350_v3 }
 0x239   : > { %v2014_v24 = vadd.f32 %v1982_v12, %v1788_v44  ;;  %v748_v17 = vand.u32 15, %v716_v32  ;;  %v2826_v12 = vmul.f32 %v6310_v53, %v6473_v26  ;;  %v9108_v44 = vld [vmem:[#allocation62_spill] sm:$0xff]  ;;  %v9110_v32 = vmov 0 }
 0x23a   : > { %v9113_v26 = vmov 0 }
 0x23b   : > { %2578 = vperm.xlu2 %4944, %v1081_v60   ;;  %2498 = vperm.xlu1 %4943, %v1065_v13   ;;  %v6653_v13 = vadd.s32 24, %v5350_v3  ;;  %v2210_v43 = vadd.f32 %v2178_v39, %v2014_v24  ;;  %vm6671_vm4 = vcmp.ne.s32.totalorder %v748_v17, 15  ;;  %v924_v24 = vld [vmem:[%s5362_s1 + $0x1a] sm:$0xff] }
 0x23c   : > { %2347 = vperm.xlu0 %4942, %v1046_v57   ;;  %v6643_v31 = vld [vmem:[#allocation5 + $0xe9] sm:$0xff]  ;;  %v2404_v57 = vmul.f32 %v6284_v4, %v9107_v46  ;;  %v1316_v46 = vmul.f32 %v6223_v45, %v9108_v44  ;;  %v9111_v32 = vsel %vm6671_vm4, 4294967295, %v9110_v32 }
 0x23d   : > { %v6645_v1 = vpop.permute.xlu2 %2067  ;;  %v6647_v62 = vpop.permute.xlu1 %2593  ;;  %v3297_v48 = vmax.f32 %v3196_v61, %v6643_v31  ;;  %9106 = vst [vmem:[#allocation87_spill] sm:$0xff] %v6653_v13  ;;  %v2630_v61 = vmul.f32 %v6305_v9, %v6386_v28  ;;  %v732_v21 = vand.u32 15, %v6653_v13 }
 0x23e   : > { %9105 = vst [vmem:[#allocation77_spill] sm:$0xff] %v6645_v1  ;;  %v6657_v34 = vpop.permute.xlu0 %2513  ;;  %v2436_v1 = vadd.f32 %v2404_v57, %v2210_v43  ;;  %v9116_v57 = vld [vmem:[#allocation96_spill] sm:$0xff]  ;;  %v1351_v43 = vadd.f32 %v6241_v35, %v1316_v46 }
 0x23f   : > { %v3395_v60 = vmax.f32 %v3297_v48, %v3363_v11  ;;  %v5125_v48 = vld [vmem:[%s5362_s1 + $0x69] sm:$0xff]  ;;  %9112 = vst [vmem:[#allocation91_spill] sm:$0xff] %v9111_v32  ;;  %vm6675_vm13 = vcmp.ne.s32.totalorder %v732_v21, 15  ;;  %v5130_v32 = vld [vmem:[%s5362_s1 + $0x39] sm:$0xff] }
 0x240   : > { %v2662_v39 = vadd.f32 %v2630_v61, %v2436_v1  ;;  %v9114_v26 = vsel %vm6675_vm13, 4294967295, %v9113_v26  ;;  %v9117_v61 = vld [vmem:[#allocation103_spill] sm:$0xff]  ;;  %v956_v13 = vsel %vm6675_vm13, %v924_v24, 0.0 }
 0x241   : > { %3472 = vmatpush.msra.mxu1 %v3395_v60  ;;  %9115 = vst [vmem:[#allocation66_spill] sm:$0xff] %v9114_v26  ;;  %v1771_v17 = vmul.f32 %v6249_v2, %v9117_v61 }
 0x243   : > { %2930 = vperm.xlu2 %4944, %v5123_v37   ;;  %2783 = vperm.xlu1 %4943, %v5124_v47   ;;  %v1545_v37 = vmul.f32 %v6236_v36, %v9116_v57  ;;  %v2858_v47 = vadd.f32 %v2826_v12, %v2662_v39  ;;  %v9118_v57 = vld [vmem:[#allocation121_spill] sm:$0xff] }
 0x244   : > { %2719 = vperm.xlu0 %4942, %v5125_v48   ;;  %v5126_v48 = vld [vmem:[%s5362_s1 + $0x9a] sm:$0xff]  ;;  %v1997_v12 = vmul.f32 %v6257_v59, %v9118_v57  ;;  %v5128_v57 = vld [vmem:[%s5362_s1 + $0xb0] sm:$0xff] }
 0x245   : > { %v6669_v28 = vpop.permute.xlu2 %2357  ;;  %v2946_v11 = vpop.permute.xlu1 %2945  ;;  %v972_v21 = vsel %vm6671_vm4, %v5126_v48, 0.0 }
 0x246   : > { %9109 = vst [vmem:[#allocation89_spill] sm:$0xff] %v6669_v28  ;;  %v3052_v1 = vmul.f32 %v6329_v49, %v2946_v11  ;;  %v2796_v60 = vpop.permute.xlu0 %2795  ;;  %v1577_v28 = vadd.f32 %v1545_v37, %v1351_v43  ;;  %v9119_v11 = vld [vmem:[#allocation129_spill] sm:$0xff] }
 0x247   : > { %v9120_v43 = vld [vmem:[#allocation29_spill] sm:$0xff] }
 0x248   : > { %v3084_v44 = vadd.f32 %v3052_v1, %v2858_v47  ;;  %v1803_v46 = vadd.f32 %v1771_v17, %v1577_v28  ;;  %v2193_v47 = vmul.f32 %v6279_v27, %v9119_v11  ;;  %v5127_v1 = vld [vmem:[%s5362_s1 + $0xf2] sm:$0xff]  ;;  %v2645_v17 = vmul.f32 %v6305_v9, %v6552_v42  ;;  %v9122_v11 = vld [vmem:[#allocation20_spill] sm:$0xff] }
 0x249   : > { %vm9123_vm12 = vnez %v9122_v11 }
 0x24a   : > { %v3148_v39 = vmul.f32 0.01, %v3084_v44  ;;  %vm3116_vm2 = vcmp.ge.f32.partialorder %v3084_v44, 0.0  ;;  %v2029_v37 = vadd.f32 %v1997_v12, %v1803_v46  ;;  %v2841_v46 = vmul.f32 %v6310_v53, %v2796_v60 }
 0x24b   : > { %1679 = vperm.xlu2 %4944, %v972_v21   ;;  %1599 = vperm.xlu1 %4943, %v956_v13   ;;  %v2419_v21 = vmul.f32 %v6284_v4, %v9120_v43  ;;  %v3313_v43 = vld [vmem:[#allocation5 + $0x78] sm:$0xff] }
 0x24c   : > { %3010 = vperm.xlu0 %4942, %v5127_v1   ;;  %v3180_v61 = vsel %vm3116_vm2, %v3084_v44, %v3148_v39  ;;  %v2225_v28 = vadd.f32 %v2193_v47, %v2029_v37  ;;  %v1007_v44 = vsel %vm9123_vm12, %v5128_v57, 0.0  ;;  %v6711_v39 = vld [vmem:[%s5362_s1 + $0x30] sm:$0xff]  ;;  %v9125_v1 = vld [vmem:[#allocation12_spill] sm:$0xff]  ;;  %v3347_v11 = vmax.f32 %v3313_v43, %v6504_v38 }
 0x24d   : > { %v6696_v48 = vpop.permute.xlu2 %2727  ;;  %v6698_v24 = vpop.permute.xlu1 %1614  ;;  %3213 = vst.msk [vmem:[#allocation5 + $0x68] sm:$0xff] %vm3199_vm7, %v3180_v61  ;;  %vm9126_vm14 = vnez %v9125_v1  ;;  %v9130_v38 = vld [vmem:[#allocation125_spill] sm:$0xff] }
 0x24e   : > { %v6703_v13 = vpop.permute.xlu0 %1463  ;;  %9124 = vst [vmem:[#allocation95_spill] sm:$0xff] %v6711_v39  ;;  %v991_v26 = vsel %vm9126_vm14, %v6711_v39, 0.0  ;;  %v2451_v12 = vadd.f32 %v2419_v21, %v2225_v28 }
 0x24f   : > { %9121 = vst [vmem:[#allocation107_spill] sm:$0xff] %v6703_v13 }
 0x250   : > { %v2677_v47 = vadd.f32 %v2645_v17, %v2451_v12  ;;  %v9128_v17 = vld [vmem:[#allocation124_spill] sm:$0xff] }
 0x252   : > { %v2873_v1 = vadd.f32 %v2841_v46, %v2677_v47 }
 0x253   : > { %2055 = vperm.xlu2 %4944, %v5130_v32   ;;  %1910 = vperm.xlu1 %4943, %v1007_v44   ;;  %v9129_v44 = vld [vmem:[#allocation47_spill] sm:$0xff] }
 0x254   : > { %1830 = vperm.xlu0 %4942, %v991_v26   ;;  %v6718_v42 = vld [vmem:[#allocation5 + $0x69] sm:$0xff]  ;;  %v9127_v26 = vld [vmem:[#allocation123_spill] sm:$0xff] }
 0x255   : > { %v3021_v37 = vpop.permute.xlu2 %3020  ;;  %v6720_v13 = vpop.permute.xlu1 %1925  ;;  %v3281_v57 = vmax.f32 %v3180_v61, %v6718_v42  ;;  %v1300_v61 = vmul.f32 %v6223_v45, %v9129_v44  ;;  %v5132_v44 = vld [vmem:[%s5362_s1 + $0xd8] sm:$0xff] }
 0x256   : > { %v3067_v21 = vmul.f32 %v6329_v49, %v3021_v37  ;;  %v6725_v28 = vpop.permute.xlu0 %1845 }
 0x257   : > { %v3379_v60 = vmax.f32 %v3281_v57, %v3347_v11  ;;  %v1335_v37 = vadd.f32 %v6241_v35, %v1300_v61  ;;  %v9133_v57 = vld [vmem:[#allocation111_spill] sm:$0xff] }
 0x258   : > { %v3099_v39 = vadd.f32 %v3067_v21, %v2873_v1  ;;  %v9132_v1 = vld [vmem:[#allocation68_spill] sm:$0xff]  ;;  %v1755_v21 = vmul.f32 %v6249_v2, %v9133_v57 }
 0x259   : > { %3422 = vmatpush.msra.mxu0 %v3379_v60  ;;  %v1529_v43 = vmul.f32 %v6236_v36, %v9132_v1 }
 0x25a   : > { %v3163_v32 = vmul.f32 0.01, %v3099_v39  ;;  %vm3131_vm5 = vcmp.ge.f32.partialorder %v3099_v39, 0.0 }
 0x25b   : > { %2342 = vperm.xlu2 %4944, %v9127_v26   ;;  %2262 = vperm.xlu1 %4943, %v9128_v17   ;;  %v1561_v60 = vadd.f32 %v1529_v43, %v1335_v37  ;;  %v9134_v26 = vld [vmem:[#allocation122_spill] sm:$0xff]  ;;  %v5131_v17 = vld [vmem:[%s5362_s1 + $0x61] sm:$0xff] }
 0x25c   : > { %2119 = vperm.xlu0 %4942, %v9130_v38   ;;  %v3195_v12 = vsel %vm3131_vm5, %v3099_v39, %v3163_v32  ;;  %v1981_v39 = vmul.f32 %v6257_v59, %v9134_v26  ;;  %v3328_v32 = vld [vmem:[#allocation5 + $0xf0] sm:$0xff] }
 0x25d   : > { %v6732_v46 = vpop.permute.xlu2 %1840  ;;  %v6734_v11 = vpop.permute.xlu1 %2277  ;;  %3228 = vst.msk [vmem:[#allocation5 + $0xe0] sm:$0xff] %vm3199_vm7, %v3195_v12  ;;  %v1787_v38 = vadd.f32 %v1755_v21, %v1561_v60  ;;  %v3362_v37 = vmax.f32 %v3328_v32, %v6548_v18  ;;  %v2403_v21 = vmul.f32 %v6284_v4, %v6354_v23  ;;  %v1102_v18 = vsel %vm6036_vm8, %v5135_v20, 0.0 }
 0x25e   : > { %9131 = vst [vmem:[#allocation44_spill] sm:$0xff] %v6734_v11  ;;  %v6739_v47 = vpop.permute.xlu0 %2131  ;;  %v9135_v11 = vld [vmem:[#allocation67_spill] sm:$0xff]  ;;  %v2825_v4 = vmul.f32 %v6310_v53, %v6587_v55  ;;  %v5137_v53 = vld [vmem:[%s5362_s1 + $0xa8] sm:$0xff] }
 0x25f   : > { %v2177_v1 = vmul.f32 %v6279_v27, %v9135_v11  ;;  %v2013_v26 = vadd.f32 %v1981_v39, %v1787_v38  ;;  %v6780_v38 = vld [vmem:[%s5362_s1 + $0x12] sm:$0xff]  ;;  %v6784_v55 = vld [vmem:[%s5362_s1 + $0x28] sm:$0xff] }
 0x260   : > { %9139 = vst [vmem:[#allocation21_spill] sm:$0xff] %v6780_v38 }
 0x261   : > { %9140 = vst [vmem:[#allocation34_spill] sm:$0xff] %v6784_v55 }
 0x263   : > { %2715 = vperm.xlu2 %4944, %v5131_v17   ;;  %2573 = vperm.xlu1 %4943, %v5132_v44   ;;  %v2209_v17 = vadd.f32 %v2177_v1, %v2013_v26  ;;  %v5134_v44 = vld [vmem:[%s5362_s1 + $0xea] sm:$0xff]  ;;  %v9141_v26 = vld [vmem:[#allocation136_spill] sm:$0xff] }
 0x264   : > { %2493 = vperm.xlu0 %4942, %v5133_v7   ;;  %v6751_v61 = vld [vmem:[#allocation5 + $0xe1] sm:$0xff]  ;;  %v2629_v7 = vmul.f32 %v6305_v9, %v6557_v30  ;;  %v5136_v9 = vld [vmem:[%s5362_s1 + $0xe1] sm:$0xff] }
 0x265   : > { %9136 = vst [vmem:[#allocation18_spill] sm:$0xff] %v6751_v61  ;;  %v6753_v57 = vpop.permute.xlu2 %2127  ;;  %v6755_v43 = vpop.permute.xlu1 %2588  ;;  %v3296_v59 = vmax.f32 %v3195_v12, %v6751_v61  ;;  %v2435_v12 = vadd.f32 %v2403_v21, %v2209_v17  ;;  %v1028_v21 = vsel %vm6487_vm10, %v9141_v26, 0.0  ;;  %v5139_v17 = vld [vmem:[%s5362_s1 + $0xb1] sm:$0xff] }
 0x266   : > { %9137 = vst [vmem:[#allocation17_spill] sm:$0xff] %v6755_v43  ;;  %v6761_v60 = vpop.permute.xlu0 %2508  ;;  %v1118_v43 = vsel %vm6029_vm6, %v5134_v44, 0.0 }
 0x267   : > { %v3394_v11 = vmax.f32 %v3296_v59, %v3362_v37  ;;  %v2661_v23 = vadd.f32 %v2629_v7, %v2435_v12  ;;  %v6800_v7 = vld [vmem:[%s5362_s1 + $0x31] sm:$0xff] }
 0x268   : > { %9142 = vst [vmem:[#allocation97_spill] sm:$0xff] %v6800_v7 }
 0x269   : > { %3473 = vmatpush.msra.mxu1 %v3394_v11  ;;  %v2857_v39 = vadd.f32 %v2825_v4, %v2661_v23  ;;  %v3312_v11 = vld [vmem:[#allocation5 + $0x70] sm:$0xff] }
 0x26a   : > { %v3346_v23 = vmax.f32 %v3312_v11, %v6602_v22 }
 0x26b   : > { %3005 = vperm.xlu2 %4944, %v1118_v43   ;;  %2925 = vperm.xlu1 %4943, %v1102_v18  }
 0x26c   : > { %2779 = vperm.xlu0 %4942, %v5136_v9  }
 0x26d   : > { %v6774_v30 = vpop.permute.xlu2 %2503  ;;  %v2941_v50 = vpop.permute.xlu1 %2940 }
 0x26e   : > { %9138 = vst [vmem:[#allocation119_spill] sm:$0xff] %v6774_v30  ;;  %v3051_v6 = vmul.f32 %v6329_v49, %v2941_v50  ;;  %v6777_v32 = vpop.permute.xlu0 %2791  ;;  %v5149_v30 = vld [vmem:[%s5362_s1 + $0x62] sm:$0xff] }
 0x270   : > { %v3083_v20 = vadd.f32 %v3051_v6, %v2857_v39  ;;  %v5141_v39 = vld [vmem:[%s5362_s1 + $0xd0] sm:$0xff] }
 0x271   : > { %v1079_v6 = vsel %vm9068_vm11, %v5141_v39, 0.0  ;;  %v9149_v39 = vld [vmem:[#allocation82_spill] sm:$0xff] }
 0x272   : > { %v3147_v1 = vmul.f32 0.01, %v3083_v20  ;;  %vm3115_vm6 = vcmp.ge.f32.partialorder %v3083_v20, 0.0 }
 0x273   : > { %1905 = vperm.xlu2 %4944, %v5137_v53   ;;  %1825 = vperm.xlu1 %4943, %v6784_v55   ;;  %v9143_v53 = vld [vmem:[#allocation31_spill] sm:$0xff]  ;;  %v9156_v55 = vld [vmem:[#allocation126_spill] sm:$0xff] }
 0x274   : > { %1594 = vperm.xlu0 %4942, %v6780_v38   ;;  %v3179_v43 = vsel %vm3115_vm6, %v3083_v20, %v3147_v1  ;;  %v5142_v20 = vld [vmem:[%s5362_s1 + $0x50] sm:$0xff]  ;;  %v1299_v26 = vmul.f32 %v6223_v45, %v9143_v53  ;;  %v6876_v38 = vld [vmem:[%s9013_s6 + $0x3] ss:$0 sm:$0xff] }
 0x275   : > { %v6788_v59 = vpop.permute.xlu2 %2787  ;;  %v6790_v49 = vpop.permute.xlu1 %1689  ;;  %3212 = vst.msk [vmem:[#allocation5 + $0x60] sm:$0xff] %vm3199_vm7, %v3179_v43  ;;  %v1063_v1 = vsel %vm9061_vm9, %v5142_v20, 0.0  ;;  %v1528_v20 = vmul.f32 %v6236_v36, %v9149_v39 }
 0x276   : > { %v6793_v37 = vpop.permute.xlu0 %1609  ;;  %v1334_v53 = vadd.f32 %v6241_v35, %v1299_v26 }
 0x27b   : > { %2257 = vperm.xlu2 %4944, %v1028_v21   ;;  %2115 = vperm.xlu1 %4943, %v5139_v17   ;;  %v6820_v21 = vld [vmem:[%s5362_s1 + $0xba] sm:$0xff]  ;;  %v9146_v17 = vld [vmem:[#allocation42_spill] sm:$0xff] }
 0x27c   : > { %2051 = vperm.xlu0 %4942, %v6800_v7   ;;  %v6803_v44 = vld [vmem:[#allocation5 + $0x61] sm:$0xff]  ;;  %9144 = vst [vmem:[#allocation85_spill] sm:$0xff] %v6820_v21  ;;  %v1044_v22 = vsel %vm6477_vm15, %v6820_v21, 0.0  ;;  %v1298_v40 = vmul.f32 %v6223_v45, %v9146_v17  ;;  %v9150_v7 = vld [vmem:[#allocation112_spill] sm:$0xff] }
 0x27d   : > { %v6805_v18 = vpop.permute.xlu2 %1604  ;;  %v2064_v12 = vpop.permute.xlu1 %2063  ;;  %v3280_v4 = vmax.f32 %v3179_v43, %v6803_v44  ;;  %v9145_v43 = vld [vmem:[#allocation39_spill] sm:$0xff] }
 0x27e   : > { %v6809_v9 = vpop.permute.xlu0 %1920  ;;  %v1295_v11 = vmul.f32 %v6223_v45, %v9145_v43  ;;  %v1544_v43 = vmul.f32 %v6236_v36, %v9150_v7  ;;  %v1750_v7 = vmul.f32 %v6249_v2, %v6589_v5  ;;  %v1560_v5 = vadd.f32 %v1528_v20, %v1334_v53 }
 0x27f   : > { %v3378_v50 = vmax.f32 %v3280_v4, %v3346_v23  ;;  %v9147_v4 = vld [vmem:[#allocation63_spill] sm:$0xff] }
 0x280   : > { %v1315_v25 = vmul.f32 %v6223_v45, %v9147_v4  ;;  %v9148_v23 = vld [vmem:[#allocation79_spill] sm:$0xff]  ;;  %v6843_v45 = vadd.s32 8, %v5350_v3  ;;  %v9153_v4 = vld [vmem:[#allocation117_spill] sm:$0xff] }
 0x281   : > { %3423 = vmatpush.msra.mxu0 %v3378_v50  ;;  %v1524_v50 = vmul.f32 %v6236_v36, %v9148_v23  ;;  %v1754_v36 = vmul.f32 %v6249_v2, %v9153_v4  ;;  %v9155_v4 = vld [vmem:[#allocation113_spill] sm:$0xff] }
 0x282   : > { %9151 = vst [vmem:[#allocation99_spill] sm:$0xff] %v6843_v45  ;;  %v730_v53 = vand.u32 15, %v6843_v45  ;;  %v9158_v45 = vld [vmem:[#allocation84_spill] sm:$0xff] }
 0x283   : > { %2568 = vperm.xlu2 %4944, %v1079_v6   ;;  %2488 = vperm.xlu1 %4943, %v1063_v1   ;;  %v1330_v6 = vadd.f32 %v6241_v35, %v1295_v11  ;;  %v6849_v1 = vld [vmem:[%s9013_s6] ss:$0 sm:$0xff] }
 0x284   : > { %2337 = vperm.xlu0 %4942, %v1044_v22   ;;  %v9152_v22 = vld [vmem:[#allocation60_spill] sm:$0xff]  ;;  %v6862_v35 = vld [vmem:[%s9017_s3] ss:$0 sm:$0xff]  ;;  %vm6912_vm8 = vcmp.ne.s32.totalorder %v730_v53, 15 }
 0x285   : > { %v6838_v21 = vpop.permute.xlu2 %1915  ;;  %v6840_v17 = vpop.permute.xlu1 %2352  ;;  %v1312_v26 = vmul.f32 %v6849_v1, %v9152_v22  ;;  %v1333_v11 = vadd.f32 %v6862_v35, %v1298_v40  ;;  %v1350_v39 = vadd.f32 %v6862_v35, %v1315_v25  ;;  %v6869_v22 = vld [vmem:[%s9013_s6 + $0x2] ss:$0 sm:$0xff]  ;;  %v1556_v2 = vadd.f32 %v1524_v50, %v1330_v6  ;;  %v6887_v50 = vld [vmem:[%s9013_s6 + $0x1] ss:$0 sm:$0xff] }
 0x286   : > { %v6857_v23 = vpop.permute.xlu0 %2272  ;;  %v1770_v3 = vmul.f32 %v6869_v22, %v9155_v4  ;;  %v1980_v40 = vmul.f32 %v6876_v38, %v9156_v55  ;;  %v1976_v25 = vmul.f32 %v6876_v38, %v6725_v28  ;;  %v1541_v20 = vmul.f32 %v6887_v50, %v6312_v0  ;;  %v5150_v0 = vld [vmem:[%s5362_s1 + $0xd9] sm:$0xff] }
 0x287   : > { %9154 = vst [vmem:[#allocation101_spill] sm:$0xff] %v6857_v23  ;;  %v1576_v8 = vadd.f32 %v1544_v43, %v1350_v39  ;;  %v1996_v23 = vmul.f32 %v6876_v38, %v9157_v56  ;;  %v1347_v55 = vadd.f32 %v6862_v35, %v1312_v26  ;;  %v1786_v6 = vadd.f32 %v1754_v36, %v1560_v5  ;;  %v9159_v36 = vld [vmem:[#allocation133_spill] sm:$0xff] }
 0x288   : > { %v1782_v4 = vadd.f32 %v1750_v7, %v1556_v2  ;;  %v2172_v28 = vmul.f32 %v6279_v27, %v2064_v12  ;;  %v2192_v56 = vmul.f32 %v6279_v27, %v6359_v19  ;;  %v1767_v39 = vmul.f32 %v6869_v22, %v6377_v41  ;;  %v6908_v27 = vld [vmem:[%s9013_s6 + $0x4] ss:$0 sm:$0xff]  ;;  %v9160_v19 = vld [vmem:[#allocation22_spill] sm:$0xff] }
 0x289   : > { %v1802_v43 = vadd.f32 %v1770_v3, %v1576_v8  ;;  %v1527_v61 = vmul.f32 %v6887_v50, %v9158_v45  ;;  %v2012_v26 = vadd.f32 %v1980_v40, %v1786_v6  ;;  %v1753_v7 = vmul.f32 %v6869_v22, %v9159_v36  ;;  %v5151_v3 = vld [vmem:[%s5362_s1 + $0x59] sm:$0xff]  ;;  %v922_v40 = vld [vmem:[%s5362_s1 + $0xa] sm:$0xff]  ;;  %v6934_v36 = vld [vmem:[%s9013_s6 + $0x6] ss:$0 sm:$0xff] }
 0x28a   : > { %v2008_v12 = vadd.f32 %v1976_v25, %v1782_v4  ;;  %v2176_v41 = vmul.f32 %v6908_v27, %v9160_v19  ;;  %v1993_v6 = vmul.f32 %v6876_v38, %v6604_v54  ;;  %v2189_v54 = vmul.f32 %v6908_v27, %v6739_v47 }
 0x28b   : > { %2920 = vperm.xlu2 %4944, %v5149_v30   ;;  %2775 = vperm.xlu1 %4943, %v5150_v0   ;;  %v2028_v8 = vadd.f32 %v1996_v23, %v1802_v43  ;;  %v1573_v30 = vadd.f32 %v1541_v20, %v1347_v55  ;;  %v6920_v23 = vld [vmem:[%s9013_s6 + $0x5] ss:$0 sm:$0xff]  ;;  %v2628_v47 = vmul.f32 %v6934_v36, %v6657_v34 }
 0x28c   : > { %2711 = vperm.xlu0 %4942, %v5151_v3   ;;  %v2418_v25 = vmul.f32 %v6920_v23, %v6446_v33  ;;  %v2204_v20 = vadd.f32 %v2172_v28, %v2008_v12  ;;  %v2402_v0 = vmul.f32 %v6920_v23, %v6533_v51  ;;  %v2644_v33 = vmul.f32 %v6934_v36, %v6647_v62  ;;  %v6943_v12 = vld [vmem:[%s5362_s1 + $0x20] sm:$0xff] }
 0x28d   : > { %v2268_v2 = vpop.permute.xlu2 %2267  ;;  %v2724_v5 = vpop.permute.xlu1 %2723  ;;  %v2224_v53 = vadd.f32 %v2192_v56, %v2028_v8  ;;  %v1799_v43 = vadd.f32 %v1767_v39, %v1573_v30  ;;  %v9163_v56 = vld [vmem:[#allocation13_spill] sm:$0xff]  ;;  %v954_v51 = vsel %vm6912_vm8, %v922_v40, 0.0  ;;  %v1559_v3 = vadd.f32 %v1527_v61, %v1333_v11 }
 0x28e   : > { %v2398_v55 = vmul.f32 %v6920_v23, %v2268_v2  ;;  %v6927_v4 = vpop.permute.xlu0 %2583  ;;  %vm9164_vm9 = vnez %v9163_v56  ;;  %v2208_v8 = vadd.f32 %v2176_v41, %v2012_v26  ;;  %v1979_v62 = vmul.f32 %v6876_v38, %v6339_v63  ;;  %v6957_v2 = vld [vmem:[%s9013_s6 + $0x7] ss:$0 sm:$0xff] }
 0x28f   : > { %v989_v39 = vsel %vm9164_vm9, %v6943_v12, 0.0  ;;  %v2450_v19 = vadd.f32 %v2418_v25, %v2224_v53  ;;  %v2025_v30 = vadd.f32 %v1993_v6, %v1799_v43  ;;  %v2415_v61 = vmul.f32 %v6920_v23, %v6840_v17  ;;  %v5157_v25 = vld [vmem:[%s5362_s1 + $0xe2] sm:$0xff] }
 0x290   : > { %v6940_v28 = vadd.f32 %v2398_v55, %v2204_v20  ;;  %v2840_v20 = vmul.f32 %v6957_v2, %v6777_v32  ;;  %v1785_v11 = vadd.f32 %v1753_v7, %v1559_v3  ;;  %v2434_v26 = vadd.f32 %v2402_v0, %v2208_v8 }
 0x291   : > { %v2824_v63 = vmul.f32 %v6957_v2, %v6696_v48  ;;  %v2175_v34 = vmul.f32 %v6908_v27, %v6415_v29  ;;  %v2676_v41 = vadd.f32 %v2644_v33, %v2450_v19  ;;  %v2221_v40 = vadd.f32 %v2189_v54, %v2025_v30  ;;  %v6974_v29 = vld [vmem:[%s9013_s6 + $0x8] ss:$0 sm:$0xff] }
 0x292   : > { %v2011_v6 = vadd.f32 %v1979_v62, %v1785_v11  ;;  %v2401_v32 = vmul.f32 %v6920_v23, %v6620_v14  ;;  %v2660_v55 = vadd.f32 %v2628_v47, %v2434_v26  ;;  %v2823_v19 = vmul.f32 %v6957_v2, %v2724_v5  ;;  %v5160_v11 = vld [vmem:[%s5362_s1 + $0xa9] sm:$0xff]  ;;  %v9165_v26 = vld [vmem:[#allocation56_spill] sm:$0xff] }
 0x293   : > { %1820 = vperm.xlu2 %4944, %v989_v39   ;;  %1589 = vperm.xlu1 %4943, %v954_v51   ;;  %v2872_v53 = vadd.f32 %v2840_v20, %v2676_v41  ;;  %v2447_v43 = vadd.f32 %v2415_v61, %v2221_v40  ;;  %v2627_v51 = vmul.f32 %v6934_v36, %v6761_v60  ;;  %v6984_v61 = vld [vmem:[%s5362_s1 + $0x32] sm:$0xff]  ;;  %v9166_v5 = vld [vmem:[#allocation40_spill] sm:$0xff] }
 0x294   : > { %3000 = vperm.xlu0 %4942, %v5157_v25   ;;  %v2856_v54 = vadd.f32 %v2824_v63, %v2660_v55  ;;  %v2207_v39 = vadd.f32 %v2175_v34, %v2011_v6  ;;  %v1310_v60 = vmul.f32 %v6849_v1, %v9165_v26  ;;  %v6991_v34 = vld [vmem:[%s5362_s1 + $0x29] sm:$0xff]  ;;  %v1294_v40 = vmul.f32 %v6849_v1, %v9166_v5 }
 0x295   : > { %v2579_v17 = vpop.permute.xlu2 %2578  ;;  %v3016_v7 = vpop.permute.xlu1 %3015  ;;  %v1539_v55 = vmul.f32 %v6887_v50, %v6594_v58  ;;  %v3311_v5 = vld [vmem:[#allocation5 + $0x68] sm:$0xff] }
 0x296   : > { %v2641_v48 = vmul.f32 %v6934_v36, %v2579_v17  ;;  %v3066_v0 = vmul.f32 %v6974_v29, %v3016_v7  ;;  %v2936_v33 = vpop.permute.xlu0 %2935  ;;  %v2433_v47 = vadd.f32 %v2401_v32, %v2207_v39  ;;  %v1345_v58 = vadd.f32 %v6862_v35, %v1310_v60  ;;  %v5162_v60 = vld [vmem:[%s5362_s1 + $0xc8] sm:$0xff] }
 0x297   : > { %v3050_v14 = vmul.f32 %v6974_v29, %v2936_v33  ;;  %v1765_v39 = vmul.f32 %v6869_v22, %v6618_v52  ;;  %v1975_v52 = vmul.f32 %v6876_v38, %v6732_v46 }
 0x298   : > { %v6980_v3 = vadd.f32 %v2641_v48, %v2447_v43  ;;  %v3098_v8 = vadd.f32 %v3066_v0, %v2872_v53  ;;  %v2659_v63 = vadd.f32 %v2627_v51, %v2433_v47  ;;  %v9167_v43 = vld [vmem:[#allocation26_spill] sm:$0xff]  ;;  %v9168_v0 = vld [vmem:[#allocation61_spill] sm:$0xff]  ;;  %v1571_v47 = vadd.f32 %v1539_v55, %v1345_v58 }
 0x299   : > { %v3082_v62 = vadd.f32 %v3050_v14, %v2856_v54  ;;  %v1293_v48 = vmul.f32 %v6849_v1, %v9167_v43  ;;  %v1523_v33 = vmul.f32 %v6887_v50, %v9168_v0  ;;  %v9169_v54 = vld [vmem:[#allocation45_spill] sm:$0xff]  ;;  %v5164_v55 = vld [vmem:[%s5362_s1 + $0xb2] sm:$0xff]  ;;  %v1540_v43 = vmul.f32 %v6887_v50, %v6485_v10 }
 0x29a   : > { %v3162_v30 = vmul.f32 0.01, %v3098_v8  ;;  %vm3130_vm11 = vcmp.ge.f32.partialorder %v3098_v8, 0.0  ;;  %v2855_v17 = vadd.f32 %v2823_v19, %v2659_v63  ;;  %v1311_v14 = vmul.f32 %v6849_v1, %v9169_v54  ;;  %v5163_v63 = vld [vmem:[%s5362_s1 + $0x48] sm:$0xff] }
 0x29b   : > { %v3146_v20 = vmul.f32 0.01, %v3082_v62  ;;  %2252 = vperm.xlu2 %4944, %v6984_v61   ;;  %2111 = vperm.xlu1 %4943, %v5160_v11   ;;  %vm3114_vm3 = vcmp.ge.f32.partialorder %v3082_v62, 0.0  ;;  %v1991_v19 = vmul.f32 %v6876_v38, %v6809_v9  ;;  %v1328_v11 = vadd.f32 %v6862_v35, %v1293_v48 }
 0x29c   : > { %2047 = vperm.xlu0 %4942, %v6991_v34   ;;  %v3194_v41 = vsel %vm3130_vm11, %v3098_v8, %v3162_v30  ;;  %v1329_v8 = vadd.f32 %v6862_v35, %v1294_v40  ;;  %v9170_v40 = vld [vmem:[#allocation75_spill] sm:$0xff]  ;;  %v1797_v9 = vadd.f32 %v1765_v39, %v1571_v47  ;;  %v3345_v10 = vmax.f32 %v3311_v5, %v6718_v42 }
 0x29d   : > { %v2931_v25 = vpop.permute.xlu2 %2930  ;;  %v6996_v6 = vpop.permute.xlu1 %1835  ;;  %v3178_v32 = vsel %vm3114_vm3, %v3082_v62, %v3146_v20  ;;  %3227 = vst.msk [vmem:[#allocation5 + $0xd8] sm:$0xff] %vm3199_vm7, %v3194_v41  ;;  %v1749_v62 = vmul.f32 %v6869_v22, %v6698_v24  ;;  %v3327_v20 = vld [vmem:[#allocation5 + $0xe8] sm:$0xff]  ;;  %v1346_v24 = vadd.f32 %v6862_v35, %v1311_v14  ;;  %v1992_v42 = vmul.f32 %v6876_v38, %v6720_v13 }
 0x29e   : > { %v3049_v7 = vmul.f32 %v6974_v29, %v2931_v25  ;;  %v7002_v53 = vpop.permute.xlu0 %1684  ;;  %3211 = vst.msk [vmem:[#allocation5 + $0x58] sm:$0xff] %vm3199_vm7, %v3178_v32  ;;  %v1555_v26 = vadd.f32 %v1523_v33, %v1329_v8  ;;  %v1522_v25 = vmul.f32 %v6887_v50, %v9170_v40  ;;  %v3361_v14 = vmax.f32 %v3327_v20, %v6643_v31  ;;  %v5165_v20 = vld [vmem:[%s5362_s1 + $0x5a] sm:$0xff] }
 0x29f   : > { %v2023_v58 = vadd.f32 %v1991_v19, %v1797_v9  ;;  %v1748_v31 = vmul.f32 %v6869_v22, %v6793_v37  ;;  %v3310_v37 = vld [vmem:[#allocation5 + $0x60] sm:$0xff]  ;;  %v2188_v40 = vmul.f32 %v6908_v27, %v6753_v57  ;;  %v5167_v9 = vld [vmem:[%s5362_s1 + $0x51] sm:$0xff] }
 0x2a0   : > { %v3081_v51 = vadd.f32 %v3049_v7, %v2855_v17  ;;  %v1781_v46 = vadd.f32 %v1749_v62, %v1555_v26  ;;  %v1766_v62 = vmul.f32 %v6869_v22, %v6531_v15  ;;  %v3344_v57 = vmax.f32 %v3310_v37, %v6803_v44  ;;  %v5169_v37 = vld [vmem:[%s5362_s1 + $0x18] sm:$0xff] }
 0x2a2   : > { %v3145_v30 = vmul.f32 0.01, %v3081_v51  ;;  %vm3113_vm2 = vcmp.ge.f32.partialorder %v3081_v51, 0.0  ;;  %v2007_v47 = vadd.f32 %v1975_v52, %v1781_v46  ;;  %v1554_v52 = vadd.f32 %v1522_v25, %v1328_v11 }
 0x2a3   : > { %2563 = vperm.xlu2 %4944, %v5162_v60   ;;  %2483 = vperm.xlu1 %4943, %v5163_v63   ;;  %v1572_v60 = vadd.f32 %v1540_v43, %v1346_v24  ;;  %v1974_v63 = vmul.f32 %v6876_v38, %v6996_v6 }
 0x2a4   : > { %2332 = vperm.xlu0 %4942, %v5164_v55   ;;  %v7028_v17 = vld [vmem:[#allocation5 + $0xd9] sm:$0xff]  ;;  %v3177_v7 = vsel %vm3113_vm2, %v3081_v51, %v3145_v30  ;;  %v1780_v24 = vadd.f32 %v1748_v31, %v1554_v52  ;;  %v9171_v55 = vld [vmem:[#allocation49_spill] sm:$0xff] }
 0x2a5   : > { %v7032_v48 = vpop.permute.xlu2 %1679  ;;  %v2124_v0 = vpop.permute.xlu1 %2123  ;;  %v7034_v33 = vld [vmem:[#allocation5 + $0x59] sm:$0xff]  ;;  %v3295_v54 = vmax.f32 %v3194_v41, %v7028_v17  ;;  %3210 = vst.msk [vmem:[#allocation5 + $0x50] sm:$0xff] %vm3199_vm7, %v3177_v7  ;;  %v1798_v5 = vadd.f32 %v1766_v62, %v1572_v60  ;;  %v1314_v11 = vmul.f32 %v6849_v1, %v9171_v55 }
 0x2a6   : > { %v2187_v39 = vmul.f32 %v6908_v27, %v2124_v0  ;;  %v2060_v51 = vpop.permute.xlu0 %2059  ;;  %v3279_v8 = vmax.f32 %v3178_v32, %v7034_v33  ;;  %v1100_v32 = vsel %vm6192_vm1, %v5165_v20, 0.0  ;;  %v2006_v0 = vadd.f32 %v1974_v63, %v1780_v24  ;;  %v5168_v31 = vld [vmem:[%s5362_s1 + $0xda] sm:$0xff] }
 0x2a7   : > { %v2171_v30 = vmul.f32 %v6908_v27, %v2060_v51  ;;  %v3393_v26 = vmax.f32 %v3295_v54, %v3361_v14  ;;  %v2024_v25 = vadd.f32 %v1992_v42, %v1798_v5  ;;  %v1116_v20 = vsel %vm6187_vm0, %v5168_v31, 0.0  ;;  %v9176_v52 = vld [vmem:[#allocation72_spill] sm:$0xff]  ;;  %v9183_v31 = vld [vmem:[#allocation17_spill] sm:$0xff] }
 0x2a8   : > { %v2219_v41 = vadd.f32 %v2187_v39, %v2023_v58  ;;  %v3377_v19 = vmax.f32 %v3279_v8, %v3345_v10  ;;  %v9172_v58 = vld [vmem:[#allocation118_spill] sm:$0xff]  ;;  %v1995_v63 = vmul.f32 %v6876_v38, %v9176_v52  ;;  %v9178_v55 = vld [vmem:[#allocation120_spill] sm:$0xff] }
 0x2a9   : > { %v7052_v15 = vadd.f32 %v2171_v30, %v2007_v47  ;;  %3474 = vmatpush.msra.mxu1 %v3393_v26  ;;  %v1543_v39 = vmul.f32 %v6887_v50, %v9172_v58  ;;  %v2220_v51 = vadd.f32 %v2188_v40, %v2024_v25  ;;  %v921_v47 = vld [vmem:[%s5362_s1 + $0x2] sm:$0xff]  ;;  %v1349_v30 = vadd.f32 %v6862_v35, %v1314_v11  ;;  %v9177_v40 = vld [vmem:[#allocation38_spill] sm:$0xff] }
 0x2aa   : > { %3424 = vmatpush.msra.mxu0 %v3377_v19  ;;  %v1542_v11 = vmul.f32 %v6887_v50, %v9178_v55  ;;  %v2643_v19 = vmul.f32 %v6934_v36, %v9183_v31  ;;  %v9186_v55 = vld [vmem:[#allocation41_spill] sm:$0xff]  ;;  %v5173_v31 = vld [vmem:[%s5362_s1 + $0xc0] sm:$0xff] }
 0x2ab   : > { %2915 = vperm.xlu2 %4944, %v1100_v32   ;;  %2771 = vperm.xlu1 %4943, %v5166_v16   ;;  %v9175_v32 = vld [vmem:[#allocation59_spill] sm:$0xff]  ;;  %v1575_v42 = vadd.f32 %v1543_v39, %v1349_v30  ;;  %v2191_v16 = vmul.f32 %v6908_v27, %v9177_v40 }
 0x2ac   : > { %2707 = vperm.xlu0 %4942, %v5167_v9   ;;  %v7060_v13 = vld [vmem:[#allocation5 + $0x51] sm:$0xff]  ;;  %v1313_v60 = vmul.f32 %v6849_v1, %v9175_v32  ;;  %v9184_v32 = vld [vmem:[#allocation48_spill] sm:$0xff] }
 0x2ad   : > { %v2056_v6 = vpop.permute.xlu2 %2055  ;;  %v7064_v43 = vpop.permute.xlu1 %2498  ;;  %v3278_v46 = vmax.f32 %v3177_v7, %v7060_v13  ;;  %v9173_v7 = vld [vmem:[#allocation131_spill] sm:$0xff] }
 0x2ae   : > { %v2170_v54 = vmul.f32 %v6908_v27, %v2056_v6  ;;  %v2348_v14 = vpop.permute.xlu0 %2347  ;;  %v1769_v44 = vmul.f32 %v6869_v22, %v9173_v7 }
 0x2af   : > { %v2414_v8 = vmul.f32 %v6920_v23, %v2348_v14  ;;  %v3376_v10 = vmax.f32 %v3278_v46, %v3344_v57  ;;  %v1348_v46 = vadd.f32 %v6862_v35, %v1313_v60  ;;  %v9180_v14 = vld [vmem:[#allocation138_spill] sm:$0xff]  ;;  %v1994_v60 = vmul.f32 %v6876_v38, %v9184_v32  ;;  %v9191_v32 = vld [vmem:[#allocation76_spill] sm:$0xff] }
 0x2b0   : > { %v7072_v62 = vadd.f32 %v2170_v54, %v2006_v0  ;;  %v1801_v5 = vadd.f32 %v1769_v44, %v1575_v42  ;;  %v9179_v0 = vld [vmem:[#allocation30_spill] sm:$0xff]  ;;  %v1768_v58 = vmul.f32 %v6869_v22, %v9180_v14  ;;  %v2839_v42 = vmul.f32 %v6957_v2, %v6788_v59 }
 0x2b1   : > { %v7078_v26 = vadd.f32 %v2414_v8, %v2220_v51  ;;  %3425 = vmatpush.msra.mxu0 %v3376_v10  ;;  %v2417_v54 = vmul.f32 %v6920_v23, %v9179_v0  ;;  %v5170_v51 = vld [vmem:[%s5362_s1 + $0xaa] sm:$0xff]  ;;  %v1308_v59 = vmul.f32 %v6849_v1, %v9186_v55  ;;  %v9188_v0 = vld [vmem:[#allocation27_spill] sm:$0xff] }
 0x2b2   : > { %v2027_v57 = vadd.f32 %v1995_v63, %v1801_v5  ;;  %v1042_v10 = vsel %vm6671_vm4, %v5170_v51, 0.0  ;;  %v9185_v63 = vld [vmem:[#allocation92_spill] sm:$0xff]  ;;  %v9189_v51 = vld [vmem:[#allocation93_spill] sm:$0xff] }
 0x2b3   : > { %1815 = vperm.xlu2 %4944, %v5169_v37   ;;  %1584 = vperm.xlu1 %4943, %v921_v47   ;;  %v7106_v47 = vld [vmem:[%s5362_s1 + $0x2a] sm:$0xff]  ;;  %v2190_v37 = vmul.f32 %v6908_v27, %v9185_v63  ;;  %v7120_v5 = vld [vmem:[%s5362_s1 + $0x21] sm:$0xff] }
 0x2b4   : > { %2995 = vperm.xlu0 %4942, %v1116_v20   ;;  %v1026_v7 = vsel %vm6675_vm13, %v7106_v47, 0.0  ;;  %v2223_v44 = vadd.f32 %v2191_v16, %v2027_v57  ;;  %v1574_v20 = vadd.f32 %v1542_v11, %v1348_v46 }
 0x2b5   : > { %v2343_v24 = vpop.permute.xlu2 %2342  ;;  %v2784_v9 = vpop.permute.xlu1 %2783 }
 0x2b6   : > { %v2413_v25 = vmul.f32 %v6920_v23, %v2343_v24  ;;  %v7093_v6 = vpop.permute.xlu0 %2719  ;;  %v1800_v52 = vadd.f32 %v1768_v58, %v1574_v20  ;;  %v1077_v20 = vsel %vm9123_vm12, %v5173_v31, 0.0 }
 0x2b8   : > { %v7100_v39 = vadd.f32 %v2413_v25, %v2219_v41  ;;  %v2449_v41 = vadd.f32 %v2417_v54, %v2223_v44  ;;  %v2026_v11 = vadd.f32 %v1994_v60, %v1800_v52  ;;  %v9187_v25 = vld [vmem:[#allocation89_spill] sm:$0xff]  ;;  %v1292_v54 = vmul.f32 %v6849_v1, %v9188_v0  ;;  %v5174_v52 = vld [vmem:[%s5362_s1 + $0x40] sm:$0xff] }
 0x2b9   : > { %v2416_v46 = vmul.f32 %v6920_v23, %v9187_v25  ;;  %v2642_v44 = vmul.f32 %v6934_v36, %v6927_v4  ;;  %v1521_v60 = vmul.f32 %v6887_v50, %v9191_v32  ;;  %v1061_v63 = vsel %vm9126_vm14, %v5174_v52, 0.0  ;;  %v5175_v0 = vld [vmem:[%s5362_s1 + $0x49] sm:$0xff] }
 0x2ba   : > { %v2675_v40 = vadd.f32 %v2643_v19, %v2449_v41  ;;  %v2838_v4 = vmul.f32 %v6957_v2, %v2784_v9  ;;  %v1747_v25 = vmul.f32 %v6869_v22, %v6805_v18 }
 0x2bb   : > { %2327 = vperm.xlu2 %4944, %v1042_v10   ;;  %2247 = vperm.xlu1 %4943, %v1026_v7   ;;  %v1537_v10 = vmul.f32 %v6887_v50, %v9189_v51  ;;  %v2222_v7 = vadd.f32 %v2190_v37, %v2026_v11  ;;  %v1763_v37 = vmul.f32 %v6869_v22, %v7002_v53  ;;  %v9194_v51 = vld [vmem:[#allocation57_spill] sm:$0xff] }
 0x2bc   : > { %2043 = vperm.xlu0 %4942, %v7120_v5   ;;  %v2871_v14 = vadd.f32 %v2839_v42, %v2675_v40  ;;  %v1343_v40 = vadd.f32 %v6862_v35, %v1308_v59  ;;  %v1327_v11 = vadd.f32 %v6862_v35, %v1292_v54  ;;  %v9193_v59 = vld [vmem:[#allocation53_spill] sm:$0xff]  ;;  %v1309_v53 = vmul.f32 %v6849_v1, %v9194_v51 }
 0x2bd   : > { %v7123_v16 = vpop.permute.xlu2 %2715  ;;  %v7125_v24 = vpop.permute.xlu1 %1599  ;;  %v2448_v55 = vadd.f32 %v2416_v46, %v2222_v7  ;;  %v1307_v46 = vmul.f32 %v6849_v1, %v9193_v59 }
 0x2be   : > { %v3011_v57 = vpop.permute.xlu0 %3010  ;;  %v1553_v9 = vadd.f32 %v1521_v60, %v1327_v11  ;;  %v9196_v60 = vld [vmem:[#allocation94_spill] sm:$0xff] }
 0x2bf   : > { %v3065_v58 = vmul.f32 %v6974_v29, %v3011_v57 }
 0x2c0   : > { %v1779_v42 = vadd.f32 %v1747_v25, %v1553_v9  ;;  %v1342_v25 = vadd.f32 %v6862_v35, %v1307_v46  ;;  %v5176_v9 = vld [vmem:[%s5362_s1 + $0xd2] sm:$0xff] }
 0x2c1   : > { %v3097_v41 = vadd.f32 %v3065_v58, %v2871_v14  ;;  %v1569_v14 = vadd.f32 %v1537_v10, %v1343_v40  ;;  %v2674_v58 = vadd.f32 %v2642_v44, %v2448_v55  ;;  %v9195_v10 = vld [vmem:[#allocation107_spill] sm:$0xff]  ;;  %v1536_v40 = vmul.f32 %v6887_v50, %v9196_v60 }
 0x2c2   : > { %v1538_v44 = vmul.f32 %v6887_v50, %v9195_v10  ;;  %v9199_v10 = vld [vmem:[#allocation18_spill] sm:$0xff] }
 0x2c3   : > { %v3161_v57 = vmul.f32 0.01, %v3097_v41  ;;  %2703 = vperm.xlu2 %4944, %v5175_v0   ;;  %2558 = vperm.xlu1 %4943, %v1077_v20   ;;  %vm3129_vm0 = vcmp.ge.f32.partialorder %v3097_v41, 0.0  ;;  %v1795_v19 = vadd.f32 %v1763_v37, %v1569_v14  ;;  %v2870_v18 = vadd.f32 %v2838_v4, %v2674_v58  ;;  %v3326_v14 = vld [vmem:[#allocation5 + $0xe0] sm:$0xff]  ;;  %v9197_v58 = vld [vmem:[#allocation43_spill] sm:$0xff] }
 0x2c4   : > { %2478 = vperm.xlu0 %4942, %v1061_v63   ;;  %v1344_v37 = vadd.f32 %v6862_v35, %v1309_v53  ;;  %v1764_v4 = vmul.f32 %v6869_v22, %v6790_v49  ;;  %v1297_v59 = vmul.f32 %v6849_v1, %v9197_v58  ;;  %v1990_v53 = vmul.f32 %v6876_v38, %v6838_v21  ;;  %v5177_v49 = vld [vmem:[%s5362_s1 + $0x52] sm:$0xff] }
 0x2c5   : > { %v3006_v7 = vpop.permute.xlu2 %3005  ;;  %v1911_v54 = vpop.permute.xlu1 %1910  ;;  %v3193_v31 = vsel %vm3129_vm0, %v3097_v41, %v3161_v57  ;;  %v1762_v57 = vmul.f32 %v6869_v22, %v7032_v48 }
 0x2c6   : > { %v3064_v32 = vmul.f32 %v6974_v29, %v3006_v7  ;;  %v1989_v20 = vmul.f32 %v6876_v38, %v1911_v54  ;;  %v1831_v52 = vpop.permute.xlu0 %1830  ;;  %3226 = vst.msk [vmem:[#allocation5 + $0xd0] sm:$0xff] %vm3199_vm7, %v3193_v31  ;;  %v1570_v51 = vadd.f32 %v1538_v44, %v1344_v37  ;;  %v1568_v7 = vadd.f32 %v1536_v40, %v1342_v25  ;;  %v5178_v54 = vld [vmem:[%s5362_s1 + $0xc9] sm:$0xff]  ;;  %v9200_v25 = vld [vmem:[#allocation71_spill] sm:$0xff] }
 0x2c7   : > { %v1973_v63 = vmul.f32 %v6876_v38, %v1831_v52  ;;  %v3360_v44 = vmax.f32 %v3326_v14, %v9199_v10  ;;  %v9205_v10 = vld [vmem:[#allocation54_spill] sm:$0xff] }
 0x2c8   : > { %v3096_v41 = vadd.f32 %v3064_v32, %v2870_v18  ;;  %v7166_v55 = vadd.f32 %v1989_v20, %v1795_v19  ;;  %v9198_v19 = vld [vmem:[#allocation64_spill] sm:$0xff]  ;;  %v1796_v18 = vadd.f32 %v1764_v4, %v1570_v51  ;;  %v1794_v21 = vadd.f32 %v1762_v57, %v1568_v7 }
 0x2c9   : > { %v7171_v11 = vadd.f32 %v1973_v63, %v1779_v42  ;;  %v1526_v48 = vmul.f32 %v6887_v50, %v9198_v19  ;;  %v9204_v19 = vld [vmem:[#allocation28_spill] sm:$0xff] }
 0x2ca   : > { %v3160_v0 = vmul.f32 0.01, %v3096_v41  ;;  %vm3128_vm1 = vcmp.ge.f32.partialorder %v3096_v41, 0.0  ;;  %v2022_v37 = vadd.f32 %v1990_v53, %v1796_v18  ;;  %v9203_v53 = vld [vmem:[#allocation74_spill] sm:$0xff]  ;;  %v1296_v18 = vmul.f32 %v6849_v1, %v9204_v19 }
 0x2cb   : > { %2990 = vperm.xlu2 %4944, %v5176_v9   ;;  %2910 = vperm.xlu1 %4943, %v5177_v49   ;;  %v5179_v9 = vld [vmem:[%s5362_s1 + $0x10] sm:$0xff]  ;;  %v1978_v7 = vmul.f32 %v6876_v38, %v9203_v53 }
 0x2cc   : > { %2767 = vperm.xlu0 %4942, %v5178_v54   ;;  %v3192_v46 = vsel %vm3128_vm1, %v3096_v41, %v3160_v0  ;;  %v1332_v41 = vadd.f32 %v6862_v35, %v1297_v59  ;;  %v1752_v0 = vmul.f32 %v6869_v22, %v9200_v25  ;;  %v3325_v54 = vld [vmem:[#allocation5 + $0xd8] sm:$0xff] }
 0x2cd   : > { %v1906_v32 = vpop.permute.xlu2 %1905  ;;  %v2263_v20 = vpop.permute.xlu1 %2262  ;;  %v7185_v52 = vld [vmem:[#allocation5 + $0xd1] sm:$0xff]  ;;  %3225 = vst.msk [vmem:[#allocation5 + $0xc8] sm:$0xff] %vm3199_vm7, %v3192_v46 }
 0x2ce   : > { %v1988_v42 = vmul.f32 %v6876_v38, %v1906_v32  ;;  %v2397_v63 = vmul.f32 %v6920_v23, %v2263_v20  ;;  %v2120_v60 = vpop.permute.xlu0 %2119  ;;  %v3294_v40 = vmax.f32 %v3193_v31, %v7185_v52  ;;  %v9201_v31 = vld [vmem:[#allocation14_spill] sm:$0xff]  ;;  %v1558_v59 = vadd.f32 %v1526_v48, %v1332_v41  ;;  %v7211_v32 = vld [vmem:[%s5362_s1 + $0x22] sm:$0xff] }
 0x2cf   : > { %v2186_v4 = vmul.f32 %v6908_v27, %v2120_v60  ;;  %vm9202_vm12 = vnez %v9201_v31  ;;  %v3359_v41 = vmax.f32 %v3325_v54, %v7028_v17  ;;  %v9209_v17 = vld [vmem:[#allocation119_spill] sm:$0xff] }
 0x2d0   : > { %v7196_v14 = vadd.f32 %v1988_v42, %v1794_v21  ;;  %v7199_v57 = vadd.f32 %v2397_v63, %v7052_v15  ;;  %v3392_v58 = vmax.f32 %v3294_v40, %v3360_v44  ;;  %v987_v49 = vsel %vm9202_vm12, %v5179_v9, 0.0  ;;  %v5181_v15 = vld [vmem:[%s5362_s1 + $0x19] sm:$0xff]  ;;  %v9206_v21 = vld [vmem:[#allocation78_spill] sm:$0xff] }
 0x2d1   : > { %v7201_v51 = vadd.f32 %v2186_v4, %v2022_v37  ;;  %v1784_v20 = vadd.f32 %v1752_v0, %v1558_v59  ;;  %v2174_v44 = vmul.f32 %v6908_v27, %v9205_v10  ;;  %v1525_v42 = vmul.f32 %v6887_v50, %v9206_v21  ;;  %v9207_v4 = vld [vmem:[#allocation44_spill] sm:$0xff]  ;;  %v9208_v59 = vld [vmem:[#allocation25_spill] sm:$0xff] }
 0x2d2   : > { %3475 = vmatpush.msra.mxu1 %v3392_v58  ;;  %v2400_v25 = vmul.f32 %v6920_v23, %v9207_v4  ;;  %v1751_v53 = vmul.f32 %v6869_v22, %v9208_v59  ;;  %v9210_v10 = vld [vmem:[#allocation24_spill] sm:$0xff] }
 0x2d3   : > { %2242 = vperm.xlu2 %4944, %v7211_v32   ;;  %2039 = vperm.xlu1 %4943, %v5181_v15   ;;  %v2010_v37 = vadd.f32 %v1978_v7, %v1784_v20  ;;  %v2626_v7 = vmul.f32 %v6934_v36, %v9209_v17  ;;  %v9214_v17 = vld [vmem:[#allocation58_spill] sm:$0xff] }
 0x2d4   : > { %1810 = vperm.xlu0 %4942, %v987_v49   ;;  %v7217_v48 = vld [vmem:[#allocation5 + $0xc9] sm:$0xff]  ;;  %v1331_v49 = vadd.f32 %v6862_v35, %v1296_v18  ;;  %v1977_v18 = vmul.f32 %v6876_v38, %v9210_v10  ;;  %v2625_v10 = vmul.f32 %v6934_v36, %v7064_v43  ;;  %v1746_v43 = vmul.f32 %v6869_v22, %v7125_v24 }
 0x2d5   : > { %v2258_v63 = vpop.permute.xlu2 %2257  ;;  %v2574_v60 = vpop.permute.xlu1 %2573  ;;  %v3293_v40 = vmax.f32 %v3192_v46, %v7217_v48  ;;  %v2206_v19 = vadd.f32 %v2174_v44, %v2010_v37 }
 0x2d6   : > { %v2396_v0 = vmul.f32 %v6920_v23, %v2258_v63  ;;  %v2640_v58 = vmul.f32 %v6934_v36, %v2574_v60  ;;  %v7227_v9 = vpop.permute.xlu0 %2493  ;;  %v1557_v20 = vadd.f32 %v1525_v42, %v1331_v49  ;;  %v2822_v63 = vmul.f32 %v6957_v2, %v7093_v6  ;;  %v9211_v60 = vld [vmem:[#allocation77_spill] sm:$0xff]  ;;  %v9212_v42 = vld [vmem:[#allocation32_spill] sm:$0xff] }
 0x2d7   : > { %v3391_v46 = vmax.f32 %v3293_v40, %v3359_v41  ;;  %v2432_v21 = vadd.f32 %v2400_v25, %v2206_v19  ;;  %v2173_v40 = vmul.f32 %v6908_v27, %v9211_v60  ;;  %v5182_v41 = vld [vmem:[%s5362_s1 + $0x41] sm:$0xff]  ;;  %v1291_v4 = vmul.f32 %v6849_v1, %v9212_v42 }
 0x2d8   : > { %v7235_v54 = vadd.f32 %v2396_v0, %v7072_v62  ;;  %v7238_v15 = vadd.f32 %v2640_v58, %v7078_v26  ;;  %v1783_v44 = vadd.f32 %v1751_v53, %v1557_v20  ;;  %v5183_v62 = vld [vmem:[%s5362_s1 + $0xb8] sm:$0xff]  ;;  %v9213_v0 = vld [vmem:[#allocation101_spill] sm:$0xff] }
 0x2d9   : > { %3476 = vmatpush.msra.mxu1 %v3391_v46  ;;  %v2658_v37 = vadd.f32 %v2626_v7, %v2432_v21  ;;  %v5184_v26 = vld [vmem:[%s5362_s1 + $0x38] sm:$0xff]  ;;  %v2399_v6 = vmul.f32 %v6920_v23, %v9213_v0  ;;  %v1520_v7 = vmul.f32 %v6887_v50, %v9214_v17 }
 0x2da   : > { %v2009_v25 = vadd.f32 %v1977_v18, %v1783_v44  ;;  %v5185_v44 = vld [vmem:[%s5362_s1 + $0xca] sm:$0xff] }
 0x2db   : > { %2699 = vperm.xlu2 %4944, %v5182_v41   ;;  %2553 = vperm.xlu1 %4943, %v5183_v62   ;;  %v2854_v59 = vadd.f32 %v2822_v63, %v2658_v37  ;;  %v1114_v60 = vsel %vm6477_vm15, %v5185_v44, 0.0  ;;  %v5186_v41 = vld [vmem:[%s5362_s1 + $0x4a] sm:$0xff]  ;;  %v9219_v63 = vld [vmem:[#allocation95_spill] sm:$0xff] }
 0x2dc   : > { %2473 = vperm.xlu0 %4942, %v5184_v26   ;;  %v2205_v20 = vadd.f32 %v2173_v40, %v2009_v25  ;;  %v1098_v37 = vsel %vm6487_vm10, %v5186_v41, 0.0  ;;  %v1326_v26 = vadd.f32 %v6862_v35, %v1291_v4  ;;  %v2821_v40 = vmul.f32 %v6957_v2, %v7123_v16  ;;  %v5188_v41 = vld [vmem:[%s5362_s1 + $0x1a] sm:$0xff] }
 0x2dd   : > { %v2569_v58 = vpop.permute.xlu2 %2568  ;;  %v2926_v49 = vpop.permute.xlu1 %2925  ;;  %v1024_v62 = vsel %vm6912_vm8, %v5188_v41, 0.0 }
 0x2de   : > { %v2639_v53 = vmul.f32 %v6934_v36, %v2569_v58  ;;  %v3048_v46 = vmul.f32 %v6974_v29, %v2926_v49  ;;  %v7255_v19 = vpop.permute.xlu0 %2779  ;;  %v2431_v42 = vadd.f32 %v2399_v6, %v2205_v20  ;;  %v1552_v25 = vadd.f32 %v1520_v7, %v1326_v26  ;;  %v5187_v58 = vld [vmem:[%s5362_s1 + $0xc1] sm:$0xff]  ;;  %v9218_v20 = vld [vmem:[#allocation69_spill] sm:$0xff] }
 0x2e0   : > { %v7262_v18 = vadd.f32 %v2639_v53, %v7100_v39  ;;  %v3080_v21 = vadd.f32 %v3048_v46, %v2854_v59  ;;  %v2657_v0 = vadd.f32 %v2625_v10, %v2431_v42  ;;  %v9217_v59 = vld [vmem:[#allocation35_spill] sm:$0xff]  ;;  %v1778_v46 = vadd.f32 %v1746_v43, %v1552_v25 }
 0x2e1   : > { %v1290_v4 = vmul.f32 %v6849_v1, %v9217_v59  ;;  %v1519_v10 = vmul.f32 %v6887_v50, %v9218_v20 }
 0x2e2   : > { %v3144_v39 = vmul.f32 0.01, %v3080_v21  ;;  %vm3112_vm14 = vcmp.ge.f32.partialorder %v3080_v21, 0.0  ;;  %v2853_v16 = vadd.f32 %v2821_v40, %v2657_v0  ;;  %v3309_v40 = vld [vmem:[#allocation5 + $0x58] sm:$0xff] }
 0x2e3   : > { %2985 = vperm.xlu2 %4944, %v1114_v60   ;;  %2905 = vperm.xlu1 %4943, %v1098_v37   ;;  %v1059_v60 = vsel %vm9164_vm9, %v9219_v63, 0.0  ;;  %v1325_v37 = vadd.f32 %v6862_v35, %v1290_v4  ;;  %v3343_v4 = vmax.f32 %v3309_v40, %v7034_v33  ;;  %v3308_v33 = vld [vmem:[#allocation5 + $0x50] sm:$0xff] }
 0x2e4   : > { %2763 = vperm.xlu0 %4942, %v5187_v58   ;;  %v3176_v49 = vsel %vm3112_vm14, %v3080_v21, %v3144_v39  ;;  %v5189_v39 = vld [vmem:[%s5362_s1 + $0x11] sm:$0xff]  ;;  %v5192_v63 = vld [vmem:[%s5362_s1 + $0x39] sm:$0xff] }
 0x2e5   : > { %v2921_v6 = vpop.permute.xlu2 %2920  ;;  %v1826_v53 = vpop.permute.xlu1 %1825  ;;  %3209 = vst.msk [vmem:[#allocation5 + $0x48] sm:$0xff] %vm3199_vm7, %v3176_v49  ;;  %v1551_v43 = vadd.f32 %v1519_v10, %v1325_v37  ;;  %v5190_v10 = vld [vmem:[%s5362_s1 + $0x42] sm:$0xff] }
 0x2e6   : > { %v3047_v24 = vmul.f32 %v6974_v29, %v2921_v6  ;;  %v1972_v17 = vmul.f32 %v6876_v38, %v1826_v53  ;;  %v1595_v7 = vpop.permute.xlu0 %1594 }
 0x2e7   : > { %v1745_v42 = vmul.f32 %v6869_v22, %v1595_v7 }
 0x2e8   : > { %v3079_v44 = vadd.f32 %v3047_v24, %v2853_v16  ;;  %v7283_v21 = vadd.f32 %v1972_v17, %v1778_v46 }
 0x2e9   : > { %v1777_v6 = vadd.f32 %v1745_v42, %v1551_v43 }
 0x2ea   : > { %v3143_v26 = vmul.f32 0.01, %v3079_v44  ;;  %vm3111_vm15 = vcmp.ge.f32.partialorder %v3079_v44, 0.0 }
 0x2eb   : > { %2468 = vperm.xlu2 %4944, %v1059_v60   ;;  %2237 = vperm.xlu1 %4943, %v1024_v62  }
 0x2ec   : > { %2035 = vperm.xlu0 %4942, %v5189_v39   ;;  %v7294_v25 = vld [vmem:[#allocation5 + $0x49] sm:$0xff]  ;;  %v3175_v56 = vsel %vm3111_vm15, %v3079_v44, %v3143_v26  ;;  %v5191_v44 = vld [vmem:[%s5362_s1 + $0xb9] sm:$0xff] }
 0x2ed   : > { %v1821_v0 = vpop.permute.xlu2 %1820  ;;  %v2116_v58 = vpop.permute.xlu1 %2115  ;;  %v3277_v59 = vmax.f32 %v3176_v49, %v7294_v25  ;;  %3208 = vst.msk [vmem:[#allocation5 + $0x40] sm:$0xff] %vm3199_vm7, %v3175_v56 }
 0x2ee   : > { %v1971_v53 = vmul.f32 %v6876_v38, %v1821_v0  ;;  %v2185_v16 = vmul.f32 %v6908_v27, %v2116_v58  ;;  %v2052_v46 = vpop.permute.xlu0 %2051 }
 0x2ef   : > { %v2169_v24 = vmul.f32 %v6908_v27, %v2052_v46  ;;  %v3375_v17 = vmax.f32 %v3277_v59, %v3343_v4  ;;  %v5193_v59 = vld [vmem:[%s5362_s1 + $0xc2] sm:$0xff]  ;;  %v5194_v46 = vld [vmem:[%s5362_s1 + $0x3a] sm:$0xff]  ;;  %s8806_s1 = smov 64  }
 0x2f0   : > { %v7302_v7 = vadd.f32 %v1971_v53, %v1777_v6  ;;  %v7305_v20 = vadd.f32 %v2185_v16, %v7166_v55  ;;  %v3342_v55 = vmax.f32 %v3308_v33, %v7060_v13  ;;  %v9221_v13 = vld [vmem:[#allocation21_spill] sm:$0xff]  ;;  %v2624_v16 = vmul.f32 %v6934_v36, %v7227_v9 }
 0x2f1   : > { %v2201_v49 = vadd.f32 %v2169_v24, %v7171_v11  ;;  %3426 = vmatpush.msra.mxu0 %v3375_v17  ;;  %v1096_v24 = vsel %vm6675_vm13, %v5194_v46, 0.0  ;;  %v3307_v46 = vld [vmem:[#allocation5 + $0x48] sm:$0xff] }
 0x2f2   : > { %v2656_v33 = vadd.f32 %v2624_v16, %v6940_v28 }
 0x2f3   : > { %2900 = vperm.xlu2 %4944, %v5190_v10   ;;  %2759 = vperm.xlu1 %4943, %v5191_v44   ;;  %v9223_v10 = vld [vmem:[#allocation97_spill] sm:$0xff] }
 0x2f4   : > { %2695 = vperm.xlu0 %4942, %v5192_v63   ;;  %v7311_v60 = vld [vmem:[#allocation5 + $0x41] sm:$0xff] }
 0x2f5   : > { %v2253_v41 = vpop.permute.xlu2 %2252  ;;  %v2489_v62 = vpop.permute.xlu1 %2488  ;;  %v3276_v37 = vmax.f32 %v3175_v56, %v7311_v60  ;;  %v9220_v56 = vld [vmem:[#allocation34_spill] sm:$0xff]  ;;  %v9224_v63 = vld [vmem:[#allocation33_spill] sm:$0xff] }
 0x2f6   : > { %v2395_v26 = vmul.f32 %v6920_v23, %v2253_v41  ;;  %v2623_v11 = vmul.f32 %v6934_v36, %v2489_v62  ;;  %v2338_v42 = vpop.permute.xlu0 %2337  ;;  %v1289_v8 = vmul.f32 %v6849_v1, %v9224_v63 }
 0x2f7   : > { %v2412_v40 = vmul.f32 %v6920_v23, %v2338_v42  ;;  %v3374_v43 = vmax.f32 %v3276_v37, %v3342_v55  ;;  %v1057_v42 = vsel %vm9202_vm12, %v6943_v12, 0.0 }
 0x2f8   : > { %v7318_v39 = vadd.f32 %v2395_v26, %v2201_v49  ;;  %v7321_v0 = vadd.f32 %v2623_v11, %v7199_v57  ;;  %v9222_v57 = vld [vmem:[#allocation85_spill] sm:$0xff]  ;;  %v2837_v49 = vmul.f32 %v6957_v2, %v7255_v19  ;;  %v9225_v19 = vld [vmem:[#allocation70_spill] sm:$0xff] }
 0x2f9   : > { %v7324_v58 = vadd.f32 %v2412_v40, %v7201_v51  ;;  %3427 = vmatpush.msra.mxu0 %v3374_v43  ;;  %v1112_v51 = vsel %vm6671_vm4, %v9222_v57, 0.0  ;;  %v1518_v26 = vmul.f32 %v6887_v50, %v9225_v19  ;;  %v1324_v40 = vadd.f32 %v6862_v35, %v1289_v8 }
 0x2fa   : > { %v2869_v37 = vadd.f32 %v2837_v49, %v6980_v3  ;;  %v1094_v57 = vsel %vm6912_vm8, %v7106_v47, 0.0 }
 0x2fb   : > { %2463 = vperm.xlu2 %4944, %v9220_v56   ;;  %2232 = vperm.xlu1 %4943, %v9221_v13   ;;  %v1550_v3 = vadd.f32 %v1518_v26, %v1324_v40 }
 0x2fc   : > { %2980 = vperm.xlu0 %4942, %v5193_v59  }
 0x2fd   : > { %v7329_v4 = vpop.permute.xlu2 %2563  ;;  %v7331_v6 = vpop.permute.xlu1 %2775 }
 0x2fe   : > { %v2712_v53 = vpop.permute.xlu0 %2711 }
 0x2ff   : > { %v2820_v17 = vmul.f32 %v6957_v2, %v2712_v53 }
 0x301   : > { %v2852_v41 = vadd.f32 %v2820_v17, %v2656_v33  ;;  %v3341_v33 = vmax.f32 %v3307_v46, %v7294_v25 }
 0x303   : > { %2975 = vperm.xlu2 %4944, %v1112_v51   ;;  %2895 = vperm.xlu1 %4943, %v1096_v24  }
 0x304   : > { %2691 = vperm.xlu0 %4942, %v9223_v10  }
 0x305   : > { %v2916_v9 = vpop.permute.xlu2 %2915  ;;  %v1590_v44 = vpop.permute.xlu1 %1589 }
 0x306   : > { %v3046_v30 = vmul.f32 %v6974_v29, %v2916_v9  ;;  %v3001_v62 = vpop.permute.xlu0 %3000  ;;  %v1744_v43 = vmul.f32 %v6869_v22, %v1590_v44 }
 0x307   : > { %v3063_v55 = vmul.f32 %v6974_v29, %v3001_v62 }
 0x308   : > { %v3078_v11 = vadd.f32 %v3046_v30, %v2852_v41  ;;  %v1776_v31 = vadd.f32 %v1744_v43, %v1550_v3 }
 0x309   : > { %v3095_v28 = vadd.f32 %v3063_v55, %v2869_v37 }
 0x30a   : > { %v3142_v1 = vmul.f32 0.01, %v3078_v11  ;;  %vm3110_vm10 = vcmp.ge.f32.partialorder %v3078_v11, 0.0 }
 0x30b   : > { %v3159_v56 = vmul.f32 0.01, %v3095_v28  ;;  %2890 = vperm.xlu2 %4944, %v6984_v61   ;;  %2687 = vperm.xlu1 %4943, %v6991_v34   ;;  %vm3127_vm4 = vcmp.ge.f32.partialorder %v3095_v28, 0.0 }
 0x30c   : > { %2458 = vperm.xlu0 %4942, %v1057_v42   ;;  %v3174_v50 = vsel %vm3110_vm10, %v3078_v11, %v3142_v1 }
 0x30d   : > { %v1816_v13 = vpop.permute.xlu2 %1815  ;;  %v2112_v59 = vpop.permute.xlu1 %2111  ;;  %3207 = vst.msk [vmem:[#allocation5 + $0x38] sm:$0xff] %vm3199_vm7, %v3174_v50  ;;  %v3191_v12 = vsel %vm3127_vm4, %v3095_v28, %v3159_v56 }
 0x30e   : > { %v1970_v35 = vmul.f32 %v6876_v38, %v1816_v13  ;;  %v2184_v22 = vmul.f32 %v6908_v27, %v2112_v59  ;;  %v2048_v53 = vpop.permute.xlu0 %2047  ;;  %3224 = vst.msk [vmem:[#allocation5 + $0xc0] sm:$0xff] %vm3199_vm7, %v3191_v12  ;;  %v3324_v38 = vld [vmem:[#allocation5 + $0xd0] sm:$0xff] }
 0x30f   : > { %v2168_v61 = vmul.f32 %v6908_v27, %v2048_v53 }
 0x310   : > { %v7365_v34 = vadd.f32 %v1970_v35, %v1776_v31  ;;  %v2216_v16 = vadd.f32 %v2184_v22, %v7196_v14  ;;  %v3323_v35 = vld [vmem:[#allocation5 + $0xc8] sm:$0xff] }
 0x311   : > { %v2200_v51 = vadd.f32 %v2168_v61, %v7283_v21 }
 0x313   : > { %2880 = vperm.xlu2 %4944, %v7211_v32   ;;  %2885 = vperm.xlu1 %4943, %v1094_v57   ;;  %v3358_v32 = vmax.f32 %v3324_v38, %v7185_v52  ;;  %v2836_v52 = vmul.f32 %v6957_v2, %v7331_v6 }
 0x314   : > { %2683 = vperm.xlu0 %4942, %v7120_v5   ;;  %v7374_v24 = vld [vmem:[#allocation5 + $0x39] sm:$0xff] }
 0x315   : > { %v2328_v17 = vpop.permute.xlu2 %2327  ;;  %v7376_v49 = vpop.permute.xlu1 %2483  ;;  %v3275_v14 = vmax.f32 %v3174_v50, %v7374_v24  ;;  %v3260_v45 = vld [vmem:[#allocation5 + $0xc1] sm:$0xff]  ;;  %v2868_v11 = vadd.f32 %v2836_v52, %v7238_v15 }
 0x316   : > { %v2410_v47 = vmul.f32 %v6920_v23, %v2328_v17  ;;  %v2333_v21 = vpop.permute.xlu0 %2332  ;;  %v3292_v10 = vmax.f32 %v3191_v12, %v3260_v45  ;;  %v3322_v46 = vld [vmem:[#allocation5 + $0xc0] sm:$0xff] }
 0x317   : > { %v2411_v9 = vmul.f32 %v6920_v23, %v2333_v21  ;;  %v3373_v44 = vmax.f32 %v3275_v14, %v3341_v33 }
 0x318   : > { %v7383_v5 = vadd.f32 %v2410_v47, %v2216_v16  ;;  %v3390_v63 = vmax.f32 %v3292_v10, %v3358_v32  ;;  %v2638_v47 = vmul.f32 %v6934_v36, %v7329_v4 }
 0x319   : > { %v7386_v8 = vadd.f32 %v2411_v9, %v7305_v20  ;;  %3428 = vmatpush.msra.mxu0 %v3373_v44 }
 0x31a   : > { %3477 = vmatpush.msra.mxu1 %v3390_v63 }
 0x31d   : > { %v7388_v41 = vpop.permute.xlu2 %2703  ;;  %v2772_v25 = vpop.permute.xlu1 %2771 }
 0x31e   : > { %v2708_v30 = vpop.permute.xlu0 %2707  ;;  %v2835_v62 = vmul.f32 %v6957_v2, %v2772_v25 }
 0x320   : > { %v2867_v19 = vadd.f32 %v2835_v62, %v7262_v18 }
 0x325   : > { %v2991_v37 = vpop.permute.xlu2 %2990  ;;  %v7393_v55 = vpop.permute.xlu1 %1584 }
 0x326   : > { %v3061_v26 = vmul.f32 %v6974_v29, %v2991_v37  ;;  %v2996_v20 = vpop.permute.xlu0 %2995 }
 0x327   : > { %v3062_v28 = vmul.f32 %v6974_v29, %v2996_v20 }
 0x328   : > { %v3093_v42 = vadd.f32 %v3061_v26, %v2867_v19 }
 0x329   : > { %v3094_v40 = vadd.f32 %v3062_v28, %v2868_v11  ;;  %v3306_v11 = vld [vmem:[#allocation5 + $0x40] sm:$0xff]  ;;  %v7441_v28 = vld [vmem:[%s9013_s6 + $0x7] ss:$0 sm:$0xff] }
 0x32a   : > { %v3157_v1 = vmul.f32 0.01, %v3093_v42  ;;  %vm3125_vm13 = vcmp.ge.f32.partialorder %v3093_v42, 0.0 }
 0x32b   : > { %v3158_v43 = vmul.f32 0.01, %v3094_v40  ;;  %vm3126_vm5 = vcmp.ge.f32.partialorder %v3094_v40, 0.0 }
 0x32c   : > { %v3189_v56 = vsel %vm3125_vm13, %v3093_v42, %v3157_v1 }
 0x32d   : > { %v2243_v6 = vpop.permute.xlu2 %2242  ;;  %v2248_v3 = vpop.permute.xlu1 %2247  ;;  %v3190_v50 = vsel %vm3126_vm5, %v3094_v40, %v3158_v43  ;;  %3222 = vst.msk [vmem:[#allocation5 + $0xb0] sm:$0xff] %vm3199_vm7, %v3189_v56 }
 0x32e   : > { %v2394_v18 = vmul.f32 %v6920_v23, %v2248_v3  ;;  %v2044_v13 = vpop.permute.xlu0 %2043  ;;  %3223 = vst.msk [vmem:[#allocation5 + $0xb8] sm:$0xff] %vm3199_vm7, %v3190_v50  ;;  %v2393_v12 = vmul.f32 %v6920_v23, %v2243_v6  ;;  %v3356_v23 = vmax.f32 %v3322_v46, %v3260_v45  ;;  %v3340_v6 = vmax.f32 %v3306_v11, %v7311_v60 }
 0x32f   : > { %v2167_v15 = vmul.f32 %v6908_v27, %v2044_v13  ;;  %v3357_v27 = vmax.f32 %v3323_v35, %v7217_v48  ;;  %v2670_v48 = vadd.f32 %v2638_v47, %v7324_v58  ;;  %v2818_v46 = vmul.f32 %v7441_v28, %v7388_v41 }
 0x330   : > { %v7403_v59 = vadd.f32 %v2394_v18, %v2200_v51 }
 0x331   : > { %v2199_v31 = vadd.f32 %v2167_v15, %v7302_v7  ;;  %v2819_v7 = vmul.f32 %v6957_v2, %v2708_v30 }
 0x333   : > { %v7407_v22 = vadd.f32 %v2393_v12, %v2199_v31  ;;  %v2851_v32 = vadd.f32 %v2819_v7, %v7321_v0 }
 0x335   : > { %v2700_v53 = vpop.permute.xlu2 %2699  ;;  %v7409_v61 = vpop.permute.xlu1 %2558  ;;  %v3259_v16 = vld [vmem:[#allocation5 + $0xb9] sm:$0xff]  ;;  %v7411_v57 = vld [vmem:[#allocation5 + $0xb1] sm:$0xff] }
 0x336   : > { %v2479_v38 = vpop.permute.xlu0 %2478  ;;  %v3291_v17 = vmax.f32 %v3190_v50, %v3259_v16  ;;  %v3290_v51 = vmax.f32 %v3189_v56, %v7411_v57  ;;  %v2817_v42 = vmul.f32 %v7441_v28, %v2700_v53  ;;  %v3321_v3 = vld [vmem:[#allocation5 + $0xb8] sm:$0xff] }
 0x337   : > { %v3355_v53 = vmax.f32 %v3321_v3, %v3259_v16 }
 0x338   : > { %v3389_v14 = vmax.f32 %v3291_v17, %v3357_v27  ;;  %v3388_v33 = vmax.f32 %v3290_v51, %v3356_v23 }
 0x33a   : > { %3478 = vmatpush.msra.mxu1 %v3389_v14 }
 0x33c   : > { %3479 = vmatpush.msra.mxu1 %v3388_v33 }
 0x33d   : > { %v2986_v21 = vpop.permute.xlu2 %2985  ;;  %v2911_v10 = vpop.permute.xlu1 %2910 }
 0x33e   : > { %v3045_v9 = vmul.f32 %v6974_v29, %v2911_v10  ;;  %v2768_v44 = vpop.permute.xlu0 %2767  ;;  %v3060_v25 = vmul.f32 %v6974_v29, %v2986_v21  ;;  %v3305_v10 = vld [vmem:[#allocation5 + $0x38] sm:$0xff] }
 0x33f   : > { %v2834_v63 = vmul.f32 %v6957_v2, %v2768_v44  ;;  %v7431_v2 = vld [vmem:[%s9013_s6 + $0x6] ss:$0 sm:$0xff] }
 0x340   : > { %v3077_v45 = vadd.f32 %v3045_v9, %v2851_v32  ;;  %v2621_v58 = vmul.f32 %v7431_v2, %v2479_v38  ;;  %v2622_v12 = vmul.f32 %v7431_v2, %v7376_v49  ;;  %v7458_v49 = vld [vmem:[%s9013_s6 + $0x8] ss:$0 sm:$0xff]  ;;  %v2637_v11 = vmul.f32 %v7431_v2, %v7409_v61 }
 0x341   : > { %v2866_v30 = vadd.f32 %v2834_v63, %v2670_v48 }
 0x342   : > { %v3141_v62 = vmul.f32 0.01, %v3077_v45  ;;  %vm3109_vm6 = vcmp.ge.f32.partialorder %v3077_v45, 0.0  ;;  %v2653_v20 = vadd.f32 %v2621_v58, %v7318_v39 }
 0x343   : > { %v3092_v52 = vadd.f32 %v3060_v25, %v2866_v30  ;;  %v3339_v25 = vmax.f32 %v3305_v10, %v7374_v24 }
 0x344   : > { %v3173_v36 = vsel %vm3109_vm6, %v3077_v45, %v3141_v62  ;;  %v2849_v50 = vadd.f32 %v2817_v42, %v2653_v20 }
 0x345   : > { %v7423_v4 = vpop.permute.xlu2 %2468  ;;  %v7425_v37 = vpop.permute.xlu1 %2039  ;;  %3206 = vst.msk [vmem:[#allocation5 + $0x30] sm:$0xff] %vm3199_vm7, %v3173_v36  ;;  %vm3124_vm8 = vcmp.ge.f32.partialorder %v3092_v52, 0.0  ;;  %v3156_v0 = vmul.f32 0.01, %v3092_v52 }
 0x346   : > { %v7434_v19 = vpop.permute.xlu0 %1810 }
 0x347   : > { %v3188_v26 = vsel %vm3124_vm8, %v3092_v52, %v3156_v0 }
 0x348   : > { %3221 = vst.msk [vmem:[#allocation5 + $0xa8] sm:$0xff] %vm3199_vm7, %v3188_v26 }
 0x34c   : > { %v3242_v40 = vld [vmem:[#allocation5 + $0x31] sm:$0xff] }
 0x34d   : > { %v2901_v1 = vpop.permute.xlu2 %2900  ;;  %v2554_v43 = vpop.permute.xlu1 %2553  ;;  %v3274_v56 = vmax.f32 %v3173_v36, %v3242_v40  ;;  %v3304_v44 = vld [vmem:[#allocation5 + $0x30] sm:$0xff] }
 0x34e   : > { %v3043_v18 = vmul.f32 %v6974_v29, %v2901_v1  ;;  %v2474_v13 = vpop.permute.xlu0 %2473  ;;  %v2654_v29 = vadd.f32 %v2622_v12, %v7235_v54  ;;  %v2636_v21 = vmul.f32 %v7431_v2, %v2554_v43  ;;  %v3338_v58 = vmax.f32 %v3304_v44, %v3242_v40 }
 0x34f   : > { %v3372_v39 = vmax.f32 %v3274_v56, %v3340_v6  ;;  %v7446_v15 = vld [vmem:[#allocation5 + $0xa9] sm:$0xff]  ;;  %v2620_v61 = vmul.f32 %v7431_v2, %v2474_v13  ;;  %v2619_v12 = vmul.f32 %v7431_v2, %v7423_v4  ;;  %v5199_v4 = vld [vmem:[%s9013_s6 + $0x1] ss:$0 sm:$0xff] }
 0x350   : > { %v3075_v31 = vadd.f32 %v3043_v18, %v2849_v50  ;;  %v3289_v35 = vmax.f32 %v3188_v26, %v7446_v15  ;;  %v2850_v51 = vadd.f32 %v2818_v46, %v2654_v29  ;;  %v2668_v62 = vadd.f32 %v2636_v21, %v7383_v5  ;;  %v5201_v21 = vld [vmem:[%s9013_s6 + $0x2] ss:$0 sm:$0xff] }
 0x351   : > { %3429 = vmatpush.msra.mxu0 %v3372_v39  ;;  %v2669_v5 = vadd.f32 %v2637_v11, %v7386_v8  ;;  %v1743_v10 = vmul.f32 %v5201_v21, %v7393_v55  ;;  %v9229_v21 = vld [vmem:[#allocation37_spill] sm:$0xff] }
 0x352   : > { %v3139_v60 = vmul.f32 0.01, %v3075_v31  ;;  %v3387_v38 = vmax.f32 %v3289_v35, %v3355_v53  ;;  %vm3107_vm9 = vcmp.ge.f32.partialorder %v3075_v31, 0.0  ;;  %v5198_v35 = vld [vmem:[%s9013_s6] ss:$0 sm:$0xff]  ;;  %v9226_v53 = vld [vmem:[#allocation36_spill] sm:$0xff] }
 0x353   : > { %v1288_v46 = vmul.f32 %v5198_v35, %v9226_v53 }
 0x354   : > { %3480 = vmatpush.msra.mxu1 %v3387_v38  ;;  %v3171_v17 = vsel %vm3107_vm9, %v3075_v31, %v3139_v60  ;;  %v2652_v31 = vadd.f32 %v2620_v61, %v7403_v59  ;;  %v9227_v59 = vld [vmem:[#allocation55_spill] sm:$0xff] }
 0x355   : > { %v2906_v27 = vpop.permute.xlu1 %2905  ;;  %3204 = vst.msk [vmem:[#allocation5 + $0x20] sm:$0xff] %vm3199_vm7, %v3171_v17  ;;  %v7461_v7 = vpop.permute.xlu2 %2463 }
 0x356   : > { %v3044_v16 = vmul.f32 %v7458_v49, %v2906_v27  ;;  %v2764_v14 = vpop.permute.xlu0 %2763 }
 0x357   : > { %v2833_v24 = vmul.f32 %v7441_v28, %v2764_v14 }
 0x358   : > { %v3076_v41 = vadd.f32 %v3044_v16, %v2850_v51  ;;  %v1517_v51 = vmul.f32 %v5199_v4, %v9227_v59  ;;  %v2651_v16 = vadd.f32 %v2619_v12, %v7407_v22  ;;  %v5202_v22 = vld [vmem:[%s9013_s6 + $0x4] ss:$0 sm:$0xff] }
 0x359   : > { %v2865_v3 = vadd.f32 %v2833_v24, %v2669_v5 }
 0x35a   : > { %v3140_v23 = vmul.f32 0.01, %v3076_v41  ;;  %vm3108_vm11 = vcmp.ge.f32.partialorder %v3076_v41, 0.0 }
 0x35c   : > { %v3172_v54 = vsel %vm3108_vm11, %v3076_v41, %v3140_v23  ;;  %v5200_v23 = vld [vmem:[%s9017_s3] ss:$0 sm:$0xff] }
 0x35d   : > { %v7463_v33 = vpop.permute.xlu1 %2237  ;;  %3205 = vst.msk [vmem:[#allocation5 + $0x28] sm:$0xff] %vm3199_vm7, %v3172_v54  ;;  %v2976_v48 = vpop.permute.xlu2 %2975 }
 0x35e   : > { %v7466_v47 = vpop.permute.xlu0 %2035  ;;  %v3058_v26 = vmul.f32 %v7458_v49, %v2976_v48 }
 0x364   : > { %v7469_v32 = vld [vmem:[#allocation5 + $0x29] sm:$0xff]  ;;  %v7471_v9 = vld [vmem:[#allocation5 + $0x21] sm:$0xff] }
 0x365   : > { %v2760_v63 = vpop.permute.xlu1 %2759  ;;  %v3273_v45 = vmax.f32 %v3172_v54, %v7469_v32  ;;  %v3272_v30 = vmax.f32 %v3171_v17, %v7471_v9  ;;  %v2891_v29 = vpop.permute.xlu2 %2890  ;;  %v1323_v54 = vadd.f32 %v5200_v23, %v1288_v46 }
 0x366   : > { %v2832_v52 = vmul.f32 %v7441_v28, %v2760_v63  ;;  %v2696_v36 = vpop.permute.xlu0 %2695  ;;  %v3041_v44 = vmul.f32 %v7458_v49, %v2891_v29  ;;  %v2166_v63 = vmul.f32 %v5202_v22, %v7425_v37 }
 0x367   : > { %v3371_v0 = vmax.f32 %v3273_v45, %v3339_v25  ;;  %v3370_v42 = vmax.f32 %v3272_v30, %v3338_v58  ;;  %v2816_v39 = vmul.f32 %v7441_v28, %v2696_v36  ;;  %v3320_v25 = vld [vmem:[#allocation5 + $0xb0] sm:$0xff]  ;;  %v1549_v30 = vadd.f32 %v1517_v51, %v1323_v54  ;;  %v5204_v36 = vld [vmem:[%s9013_s6 + $0x5] ss:$0 sm:$0xff]  ;;  %v3319_v58 = vld [vmem:[#allocation5 + $0xa8] sm:$0xff] }
 0x368   : > { %v2864_v20 = vadd.f32 %v2832_v52, %v2668_v62  ;;  %v5203_v62 = vld [vmem:[%s9013_s6 + $0x3] ss:$0 sm:$0xff]  ;;  %s695_s6 = scalar_lea.vmem %s8702_s22, %s9296_s30 }
 0x369   : > { %3430 = vmatpush.msra.mxu0 %v3371_v0  ;;  %v2848_v13 = vadd.f32 %v2816_v39, %v2652_v31  ;;  %v1969_v52 = vmul.f32 %v5203_v62, %v7434_v19  ;;  %v2392_v0 = vmul.f32 %v5204_v36, %v7463_v33  ;;  %v1775_v37 = vadd.f32 %v1743_v10, %v1549_v30  ;;  %v9228_v31 = vld [vmem:[#allocation81_spill] sm:$0xff]  ;;  %v9230_v10 = vld [vmem:[#allocation80_spill] sm:$0xff]  ;;  %v9233_v30 = vld [vmem:[#allocation51_spill] sm:$0xff] }
 0x36a   : > { %v3090_v1 = vadd.f32 %v3058_v26, %v2864_v20  ;;  %v2198_v19 = vadd.f32 %v2166_v63, %v7365_v34 }
 0x36b   : > { %3431 = vmatpush.msra.mxu0 %v3370_v42  ;;  %v3354_v42 = vmax.f32 %v3320_v25, %v7411_v57  ;;  %v2001_v33 = vadd.f32 %v1969_v52, %v1775_v37  ;;  %v3353_v57 = vmax.f32 %v3319_v58, %v7446_v15  ;;  %v9232_v25 = vld [vmem:[#allocation73_spill] sm:$0xff] }
 0x36c   : > { %vm3122_vm3 = vcmp.ge.f32.partialorder %v3090_v1, 0.0  ;;  %v3154_v43 = vmul.f32 0.01, %v3090_v1  ;;  %v9234_v62 = vmax.f32 %v9232_v25, %v9233_v30  ;;  %v3399_v52 = vld [vmem:[%s9235_s10 + $0x8] sm:$0xff] }
 0x36d   : > { %v7483_v56 = vpop.permute.xlu1 %2232  ;;  %v3302_v58 = vld [vmem:[#allocation5 + $0x20] sm:$0xff] }
 0x36e   : > { %v2981_v6 = vpop.permute.xlu0 %2980  ;;  %v7485_v40 = vsel %vm3122_vm3, %v3090_v1, %v3154_v43  ;;  %v2391_v34 = vmul.f32 %v5204_v36, %v7483_v56  ;;  %v3336_v37 = vmax.f32 %v3302_v58, %v7471_v9 }
 0x36f   : > { %v3059_v50 = vmul.f32 %v7458_v49, %v2981_v6  ;;  %3219 = vst.msk [vmem:[#allocation5 + $0x98] sm:$0xff] %vm3199_vm7, %v7485_v40 }
 0x371   : > { %v3091_v18 = vadd.f32 %v3059_v50, %v2865_v3  ;;  %v2165_v50 = vmul.f32 %v5202_v22, %v7466_v47 }
 0x373   : > { %v3155_v8 = vmul.f32 0.01, %v3091_v18  ;;  %vm3123_vm2 = vcmp.ge.f32.partialorder %v3091_v18, 0.0  ;;  %v2197_v29 = vadd.f32 %v2165_v50, %v2001_v33 }
 0x375   : > { %v2896_v60 = vpop.permute.xlu1 %2895  ;;  %v3187_v38 = vsel %vm3123_vm2, %v3091_v18, %v3155_v8  ;;  %v2424_v18 = vadd.f32 %v2392_v0, %v2198_v19  ;;  %v2618_v8 = vmul.f32 %v7431_v2, %v7461_v7  ;;  %v2423_v4 = vadd.f32 %v2391_v34, %v2197_v29  ;;  %v3407_v34 = vld [vmem:[%s9235_s10 + $0x48] sm:$0xff]  ;;  %v3410_v29 = vld [vmem:[%s9235_s10 + $0x60] sm:$0xff] }
 0x376   : > { %v3042_v17 = vmul.f32 %v7458_v49, %v2896_v60  ;;  %v2692_v27 = vpop.permute.xlu0 %2691  ;;  %3220 = vst.msk [vmem:[#allocation5 + $0xa0] sm:$0xff] %vm3199_vm7, %v3187_v38  ;;  %v3254_v3 = vld [vmem:[#allocation5 + $0x91] sm:$0xff] }
 0x377   : > { %v2815_v14 = vmul.f32 %v7441_v28, %v2692_v27  ;;  %v3286_v35 = vmax.f32 %v9228_v31, %v3254_v3  ;;  %v3317_v53 = vld [vmem:[#allocation5 + $0x98] sm:$0xff] }
 0x378   : > { %v3074_v41 = vadd.f32 %v3042_v17, %v2848_v13  ;;  %v3316_v13 = vld [vmem:[#allocation5 + $0x90] sm:$0xff]  ;;  %v2650_v17 = vadd.f32 %v2618_v8, %v2424_v18  ;;  %v3403_v18 = vld [vmem:[%s9235_s10 + $0x28] sm:$0xff]  ;;  %v3400_v8 = vld [vmem:[%s9235_s10 + $0x10] sm:$0xff] }
 0x379   : > { %v2847_v48 = vadd.f32 %v2815_v14, %v2651_v16  ;;  %v3350_v27 = vmax.f32 %v3316_v13, %v3254_v3  ;;  %v2881_v14 = vpop.permute.xlu2 %2880  ;;  %v3402_v31 = vld [vmem:[%s9235_s10 + $0x20] sm:$0xff]  ;;  %v3412_v13 = vld [vmem:[%s9235_s10 + $0x70] sm:$0xff] }
 0x37a   : > { %v3138_v45 = vmul.f32 0.01, %v3074_v41  ;;  %vm3106_vm0 = vcmp.ge.f32.partialorder %v3074_v41, 0.0 }
 0x37b   : > { %v3073_v55 = vadd.f32 %v3041_v44, %v2847_v48 }
 0x37c   : > { %v3170_v26 = vsel %vm3106_vm0, %v3074_v41, %v3138_v45 }
 0x37d   : > { %v2688_v20 = vpop.permute.xlu1 %2687  ;;  %v3256_v11 = vld [vmem:[#allocation5 + $0xa1] sm:$0xff]  ;;  %v3255_v1 = vld [vmem:[#allocation5 + $0x99] sm:$0xff]  ;;  %3203 = vst.msk [vmem:[#allocation5 + $0x18] sm:$0xff] %vm3199_vm7, %v3170_v26  ;;  %vm3105_vm1 = vcmp.ge.f32.partialorder %v3073_v55, 0.0  ;;  %v3137_v61 = vmul.f32 0.01, %v3073_v55 }
 0x37e   : > { %v3318_v24 = vld [vmem:[#allocation5 + $0xa0] sm:$0xff]  ;;  %v2459_v43 = vpop.permute.xlu0 %2458  ;;  %v3288_v5 = vmax.f32 %v3187_v38, %v3256_v11  ;;  %v3287_v6 = vmax.f32 %v7485_v40, %v3255_v1  ;;  %v2814_v46 = vmul.f32 %v7441_v28, %v2688_v20  ;;  %v3351_v47 = vmax.f32 %v3317_v53, %v3255_v1  ;;  %v3303_v38 = vld [vmem:[#allocation5 + $0x28] sm:$0xff] }
 0x37f   : > { %v3352_v12 = vmax.f32 %v3318_v24, %v3256_v11  ;;  %v3169_v40 = vsel %vm3105_vm1, %v3073_v55, %v3137_v61  ;;  %v2617_v15 = vmul.f32 %v7431_v2, %v2459_v43  ;;  %v3337_v16 = vmax.f32 %v3303_v38, %v7469_v32  ;;  %v3401_v24 = vld [vmem:[%s9235_s10 + $0x18] sm:$0xff]  ;;  %v3404_v53 = vld [vmem:[%s9235_s10 + $0x30] sm:$0xff]  ;;  %v3415_v38 = vld [vmem:[%s9235_s10 + $0x88] sm:$0xff] }
 0x380   : > { %v3386_v39 = vmax.f32 %v3288_v5, %v3354_v42  ;;  %v3385_v60 = vmax.f32 %v3287_v6, %v3353_v57  ;;  %3202 = vst.msk [vmem:[#allocation5 + $0x10] sm:$0xff] %vm3199_vm7, %v3169_v40  ;;  %v2846_v41 = vadd.f32 %v2814_v46, %v2650_v17  ;;  %v9231_v2 = vmax.f32 %v9229_v21, %v9230_v10  ;;  %v3398_v57 = vld [vmem:[%s9235_s10] sm:$0xff]  ;;  %v3419_v17 = vld [vmem:[%s9235_s10 + $0xa8] sm:$0x3] }
 0x381   : > { %v3384_v7 = vmax.f32 %v3286_v35, %v3352_v12  ;;  %v2649_v48 = vadd.f32 %v2617_v15, %v2423_v4  ;;  %v3382_v32 = vmax.f32 %v9234_v62, %v3350_v27  ;;  %v3039_v55 = vmul.f32 %v7458_v49, %v2881_v14  ;;  %v3405_v12 = vld [vmem:[%s9235_s10 + $0x38] sm:$0xff]  ;;  %v3406_v46 = vld [vmem:[%s9235_s10 + $0x40] sm:$0xff] }
 0x382   : > { %3481 = vmatpush.msra.mxu1 %v3386_v39  ;;  %v3383_v44 = vmax.f32 %v9231_v2, %v3351_v47  ;;  %v3409_v35 = vld [vmem:[%s9235_s10 + $0x58] sm:$0xff]  ;;  %v3408_v47 = vld [vmem:[%s9235_s10 + $0x50] sm:$0xff]  ;;  %v3418_v27 = vld [vmem:[%s9235_s10 + $0xa0] sm:$0x3] }
 0x383   : > { %v3417_v15 = vld [vmem:[%s9235_s10 + $0x98] sm:$0xff] }
 0x384   : > { %3482 = vmatpush.msra.mxu1 %v3385_v60  ;;  %v3239_v56 = vld [vmem:[#allocation5 + $0x19] sm:$0xff]  ;;  %v3413_v60 = vld [vmem:[%s9235_s10 + $0x78] sm:$0xff] }
 0x385   : > { %v2886_v59 = vpop.permute.xlu1 %2885  ;;  %v3271_v51 = vmax.f32 %v3170_v26, %v3239_v56  ;;  %v3301_v19 = vld [vmem:[#allocation5 + $0x18] sm:$0xff] }
 0x386   : > { %v3040_v23 = vmul.f32 %v7458_v49, %v2886_v59  ;;  %3483 = vmatpush.msra.mxu1 %v3384_v7  ;;  %v2684_v54 = vpop.permute.xlu0 %2683  ;;  %v3335_v5 = vmax.f32 %v3301_v19, %v3239_v56  ;;  %v3414_v7 = vld [vmem:[%s9235_s10 + $0x80] sm:$0xff]  ;;  %v3416_v56 = vld [vmem:[%s9235_s10 + $0x90] sm:$0xff] }
 0x387   : > { %v2813_v22 = vmul.f32 %v7441_v28, %v2684_v54  ;;  %v3369_v63 = vmax.f32 %v3271_v51, %v3337_v16  ;;  %v3238_v0 = vld [vmem:[#allocation5 + $0x11] sm:$0xff] }
 0x388   : > { %v3072_v45 = vadd.f32 %v3040_v23, %v2846_v41  ;;  %3484 = vmatpush.msra.mxu1 %v3383_v44  ;;  %v3270_v28 = vmax.f32 %v3169_v40, %v3238_v0  ;;  %v3300_v6 = vld [vmem:[#allocation5 + $0x10] sm:$0xff]  ;;  %v3411_v40 = vld [vmem:[%s9235_s10 + $0x68] sm:$0xff]  ;;  %v3954_v23 = vld [vmem:[%s9236_s24 + $0x80] sm:$0xff] }
 0x389   : > { %v2845_v36 = vadd.f32 %v2813_v22, %v2649_v48  ;;  %3432 = vmatpush.msra.mxu0 %v3369_v63  ;;  %v3334_v61 = vmax.f32 %v3300_v6, %v3238_v0  ;;  %v3955_v41 = vld [vmem:[%s9236_s24 + $0x88] sm:$0xff]  ;;  %v9237_v2 = vld [vmem:[#allocation99_spill] sm:$0xff] }
 0x38a   : > { %v3136_v26 = vmul.f32 0.01, %v3072_v45  ;;  %3485 = vmatpush.msra.mxu1 %v3382_v32  ;;  %vm3104_vm12 = vcmp.ge.f32.partialorder %v3072_v45, 0.0  ;;  %v3368_v11 = vmax.f32 %v3270_v28, %v3336_v37  ;;  %4039 = vmatpush.msra.mxu3 %v3955_v41  ;;  %v3533_v44 = vand.u32 7, %v9237_v2  ;;  %v9240_v62 = vld [vmem:[#allocation11_spill] sm:$0xff] }
 0x38b   : > { %v3071_v20 = vadd.f32 %v3039_v55, %v2845_v36  ;;  %3486 = vmatmul.f32.vlgmr.msra.gmra.mxu1 %v3399_v52  ;;  %v3534_v32 = vand.u32 7, %v9240_v62  ;;  %v9241_v52 = vld [vmem:[#allocation9_spill] sm:$0xff] }
 0x38c   : > { %v3168_v42 = vsel %vm3104_vm12, %v3072_v45, %v3136_v26  ;;  %3433 = vmatpush.msra.mxu0 %v3368_v11  ;;  %4040 = vmatpush.msra.mxu3 %v3954_v23  ;;  %vm7628_vm15 = vcmp.ne.s32.totalorder %v3533_v44, 0  ;;  %v3532_v55 = vand.u32 7, %v9241_v52  ;;  %vm7644_vm4 = vcmp.ne.s32.totalorder %v3533_v44, 7 }
 0x38d   : > { %3201 = vst.msk [vmem:[#allocation5 + $0x8] sm:$0xff] %vm3199_vm7, %v3168_v42  ;;  %vm3103_vm14 = vcmp.ge.f32.partialorder %v3071_v20, 0.0  ;;  %v3135_v1 = vmul.f32 0.01, %v3071_v20  ;;  %vm7648_vm13 = vcmp.ne.s32.totalorder %v3534_v32, 0  ;;  %vm7703_vm8 = vcmp.ne.s32.totalorder %v3534_v32, 7 }
 0x38e   : > { %vm7640_vm10 = vcmp.ne.s32.totalorder %v3532_v55, 7  ;;  %vm7654_vm5 = vcmp.ne.s32.totalorder %v3532_v55, 0  ;;  %v9260_v32 = vld [vmem:[#allocation65_spill] sm:$0xff] }
 0x38f   : > { %v3167_v49 = vsel %vm3103_vm14, %v3071_v20, %v3135_v1  ;;  %v3537_v55 = vand.u32 7, %v9260_v32 }
 0x390   : > { %3200 = vst.msk [vmem:[#allocation5] sm:$0xff] %vm3199_vm7, %v3167_v49 }
 0x391   : > { %vm7747_vm3 = vcmp.ne.s32.totalorder %v3537_v55, 0  ;;  %vm7777_vm0 = vcmp.ne.s32.totalorder %v3537_v55, 7 }
 0x393   : > { %3489 = vmatmul.f32.gmra.mxu1 %v3401_v24 }
 0x394   : > { %v3237_v9 = vld [vmem:[#allocation5 + $0x9] sm:$0xff] }
 0x395   : > { %v3269_v43 = vmax.f32 %v3168_v42, %v3237_v9 }
 0x397   : > { %v3367_v3 = vmax.f32 %v3269_v43, %v3335_v5  ;;  %v3236_v33 = vld [vmem:[#allocation5 + $0x1] sm:$0xff] }
 0x398   : > { %v3268_v50 = vmax.f32 %v3167_v49, %v3236_v33 }
 0x399   : > { %3434 = vmatpush.msra.mxu0 %v3367_v3 }
 0x39a   : > { %v3366_v39 = vmax.f32 %v3268_v50, %v3334_v61  ;;  %v9250_v61 = vld [vmem:[#allocation87_spill] sm:$0xff] }
 0x39b   : > { %3492 = vmatmul.f32.gmra.mxu1 %v3403_v18  ;;  %v3535_v18 = vand.u32 7, %v9250_v61  ;;  %v9263_v61 = vld [vmem:[#allocation15_spill] sm:$0xff] }
 0x39c   : > { %3435 = vmatpush.msra.mxu0 %v3366_v39 }
 0x39d   : > { %3436 = vmatmul.f32.vlgmr.msra.gmra.mxu0 %v3398_v57  ;;  %vm7678_vm6 = vcmp.ne.s32.totalorder %v3535_v18, 0  ;;  %vm7707_vm9 = vcmp.ne.s32.totalorder %v3535_v18, 7  ;;  %v3538_v18 = vand.u32 7, %v9263_v61 }
 0x39f   : > { %vm7767_vm2 = vcmp.ne.s32.totalorder %v3538_v18, 0 }
 0x3a3   : > { %3495 = vmatmul.f32.gmra.mxu1 %v3405_v12 }
 0x3a5   : > { %3439 = vmatmul.f32.gmra.mxu0 %v3400_v8 }
 0x3ab   : > { %3498 = vmatmul.f32.gmra.mxu1 %v3407_v34 }
 0x3ad   : > { %3442 = vmatmul.f32.gmra.mxu0 %v3402_v31 }
 0x3b3   : > { %3501 = vmatmul.f32.gmra.mxu1 %v3409_v35 }
 0x3b5   : > { %3445 = vmatmul.f32.gmra.mxu0 %v3404_v53 }
 0x3bb   : > { %3504 = vmatmul.f32.gmra.mxu1 %v3411_v40 }
 0x3bd   : > { %3448 = vmatmul.f32.gmra.mxu0 %v3406_v46 }
 0x3c3   : > { %3507 = vmatmul.f32.gmra.mxu1 %v3413_v60 }
 0x3c5   : > { %3451 = vmatmul.f32.gmra.mxu0 %v3408_v47 }
 0x3cb   : > { %3510 = vmatmul.f32.gmra.mxu1 %v3415_v38 }
 0x3cd   : > { %3454 = vmatmul.f32.gmra.mxu0 %v3410_v29 }
 0x3d3   : > { %3513 = vmatmul.f32.gmra.mxu1 %v3417_v15 }
 0x3d5   : > { %3457 = vmatmul.f32.gmra.mxu0 %v3412_v13 }
 0x3db   : > { %3516 = vmatmul.f32.gmra.mxu1 %v3419_v17  ;;  %v9253_v17 = vld [vmem:[#allocation10_spill] sm:$0xff] }
 0x3dd   : > { %3460 = vmatmul.f32.gmra.mxu0 %v3414_v7  ;;  %v3536_v7 = vand.u32 7, %v9253_v17 }
 0x3df   : > { %vm7715_vm11 = vcmp.ne.s32.totalorder %v3536_v7, 0  ;;  %vm7790_vm1 = vcmp.ne.s32.totalorder %v3536_v7, 7 }
 0x3e5   : > { %3463 = vmatmul.f32.gmra.mxu0 %v3416_v56 }
 0x3ed   : > { %3466 = vmatmul.f32.gmra.mxu0 %v3418_v27 }
 0x408   : > { %v3487_v4 = vpop.f32.mrf.mxu1 }
 0x410   : > { %v3490_v59 = vpop.f32.mrf.mxu1 }
 0x418   : > { %v3493_v51 = vpop.f32.mrf.mxu1 }
 0x41a   : > { %v3437_v16 = vpop.f32.mrf.mxu0 }
 0x41b   : > { %v3488_v14 = vadd.f32 %v3487_v4, %v3437_v16 }
 0x41d   : > { %3520 = vst.msk [vmem:[#allocation2] sm:$0xff] %vm3199_vm7, %v3488_v14 }
 0x420   : > { %v3496_v21 = vpop.f32.mrf.mxu1 }
 0x422   : > { %v3440_v54 = vpop.f32.mrf.mxu0 }
 0x423   : > { %v3491_v10 = vadd.f32 %v3490_v59, %v3440_v54 }
 0x425   : > { %3521 = vst.msk [vmem:[#allocation2 + $0x8] sm:$0xff] %vm3199_vm7, %v3491_v10 }
 0x428   : > { %v3499_v25 = vpop.f32.mrf.mxu1 }
 0x42a   : > { %v3443_v48 = vpop.f32.mrf.mxu0 }
 0x42b   : > { %v3494_v63 = vadd.f32 %v3493_v51, %v3443_v48 }
 0x42c   : > { %v7632_v45 = vld [vmem:[#allocation2 + $0x8] sm:$0xff] }
 0x42d   : > { %3522 = vst.msk [vmem:[#allocation2 + $0x10] sm:$0xff] %vm3199_vm7, %v3494_v63  ;;  %v3581_v30 = vsel %vm7628_vm15, %v7632_v45, 0.0  ;;  %v3596_v0 = vld [vmem:[#allocation2 + $0x2] sm:$0xff]  ;;  %v3629_v43 = vsel %vm7654_vm5, %v7632_v45, 0.0 }
 0x42e   : > { %v3588_v20 = vld [vmem:[#allocation2 + $0x1] sm:$0xff]  ;;  %v3620_v1 = vsel %vm7640_vm10, %v3596_v0, 0.0 }
 0x430   : > { %v3502_v33 = vpop.f32.mrf.mxu1 }
 0x432   : > { %v3446_v58 = vpop.f32.mrf.mxu0 }
 0x433   : > { %v3497_v37 = vadd.f32 %v3496_v21, %v3446_v58 }
 0x434   : > { %v3589_v11 = vld [vmem:[#allocation2 + $0x9] sm:$0xff] }
 0x435   : > { %v3597_v42 = vld [vmem:[#allocation2 + $0xa] sm:$0xff]  ;;  %3523 = vst.msk [vmem:[#allocation2 + $0x18] sm:$0xff] %vm3199_vm7, %v3497_v37  ;;  %v4945_v19 = vpack.i.bf16 %v3589_v11, %v3588_v20 }
 0x436   : > { %v7658_v24 = vld [vmem:[#allocation2 + $0x10] sm:$0xff]  ;;  %v3621_v9 = vsel %vm7644_vm4, %v3597_v42, 0.0  ;;  %v3639_v35 = vsel %vm7640_vm10, %v3597_v42, 0.0 }
 0x437   : > { %v3630_v5 = vsel %vm7628_vm15, %v7658_v24, 0.0  ;;  %v4950_v6 = vpack.i.bf16 %v3621_v9, %v3620_v1  ;;  %4946 = vrot.lane.b32.xlu0 %v4945_v19, %s5215_s2  ;;  %v3582_v50 = vsel %vm7648_vm13, %v7658_v24, 0.0  ;;  %v3648_v47 = vsel %vm7654_vm5, %v7658_v24, 0.0 }
 0x438   : > { %v4955_v3 = vpack.i.bf16 %v3630_v5, %v3629_v43  ;;  %v3505_v13 = vpop.f32.mrf.mxu1 }
 0x439   : > { %4951 = vrot.lane.b32.xlu1 %v4950_v6, %s8804_s27 }
 0x43a   : > { %4956 = vrot.lane.b32.xlu2 %v4955_v3, %s5217_s28  ;;  %v3449_v39 = vpop.f32.mrf.mxu0 }
 0x43b   : > { %v3500_v57 = vadd.f32 %v3499_v25, %v3449_v39 }
 0x43c   : > { %v3598_v12 = vld [vmem:[#allocation2 + $0x12] sm:$0xff] }
 0x43d   : > { %v3590_v8 = vld [vmem:[#allocation2 + $0x11] sm:$0xff]  ;;  %3524 = vst.msk [vmem:[#allocation2 + $0x20] sm:$0xff] %vm3199_vm7, %v3500_v57  ;;  %v3640_v53 = vsel %vm7644_vm4, %v3598_v12, 0.0  ;;  %v3658_v40 = vsel %vm7640_vm10, %v3598_v12, 0.0  ;;  %v3622_v23 = vsel %vm7703_vm8, %v3598_v12, 0.0  ;;  %vm3530_vm10 = vcmask 123904  }
 0x43e   : > { %v7676_v34 = vld [vmem:[#allocation2 + $0x18] sm:$0xff]  ;;  %v4960_v46 = vpack.i.bf16 %v3590_v8, %v3589_v11  ;;  %4903 = vmatmul.msk.f32.vlgmr.msra.gmra.mxu3 %vm3199_vm7, %v3658_v40  ;;  %v4965_v60 = vpack.i.bf16 %v3640_v53, %v3639_v35 }
 0x43f   : > { %v3649_v38 = vsel %vm7628_vm15, %v7676_v34, 0.0  ;;  %v3583_v15 = vsel %vm7678_vm6, %v7676_v34, 0.0  ;;  %v3631_v48 = vsel %vm7648_vm13, %v7676_v34, 0.0 }
 0x440   : > { %4961 = vrot.lane.b32.xlu0 %v4960_v46, %s8806_s1  ;;  %v4970_v29 = vpack.i.bf16 %v3649_v38, %v3648_v47  ;;  %v3508_v0 = vpop.f32.mrf.mxu1 }
 0x441   : > { %4966 = vrot.lane.b32.xlu1 %v4965_v60, %s5219_s21 }
 0x442   : > { %4971 = vrot.lane.b32.xlu2 %v4970_v29, %s5220_s4  ;;  %v3452_v27 = vpop.f32.mrf.mxu0  ;;  %v9268_v29 = vld [vmem:[#allocation132_spill] sm:$0xff] }
 0x443   : > { %v3503_v59 = vadd.f32 %v3502_v33, %v3452_v27 }
 0x444   : > { %v3599_v51 = vld [vmem:[#allocation2 + $0x1a] sm:$0xff] }
 0x445   : > { %v3591_v16 = vld [vmem:[#allocation2 + $0x19] sm:$0xff]  ;;  %3525 = vst.msk [vmem:[#allocation2 + $0x28] sm:$0xff] %vm3199_vm7, %v3503_v59  ;;  %v3623_v54 = vsel %vm7707_vm9, %v3599_v51, 0.0  ;;  %v3659_v21 = vsel %vm7644_vm4, %v3599_v51, 0.0  ;;  %v3641_v26 = vsel %vm7703_vm8, %v3599_v51, 0.0  ;;  %vm7841_vm4 = vcmp.ne.s32.totalorder %v3538_v18, 7 }
 0x446   : > { %v7711_v14 = vld [vmem:[#allocation2 + $0x20] sm:$0xff]  ;;  %v4975_v10 = vpack.i.bf16 %v3591_v16, %v3590_v8  ;;  %4904 = vmatmul.msk.f32.gmra.mxu3 %vm3199_vm7, %v3659_v21  ;;  %v4985_v44 = vpack.i.bf16 %v3623_v54, %v3622_v23 }
 0x447   : > { %v3632_v63 = vsel %vm7678_vm6, %v7711_v14, 0.0  ;;  %v3584_v62 = vsel %vm7715_vm11, %v7711_v14, 0.0  ;;  %v3650_v42 = vsel %vm7648_vm13, %v7711_v14, 0.0 }
 0x448   : > { %4976 = vrot.lane.b32.xlu0 %v4975_v10, %s5221_s0  ;;  %v4990_v25 = vpack.i.bf16 %v3632_v63, %v3631_v48  ;;  %v3511_v35 = vpop.f32.mrf.mxu1 }
 0x449   : > { %4981 = vrot.lane.b32.xlu1 %v4975_v10, %s5215_s2 }
 0x44a   : > { %4986 = vrot.lane.b32.xlu2 %v4985_v44, %s8804_s27  ;;  %v3455_v36 = vpop.f32.mrf.mxu0 }
 0x44b   : > { %v3506_v58 = vadd.f32 %v3505_v13, %v3455_v36  ;;  %v3539_v13 = vand.u32 7, %v9268_v29 }
 0x44c   : > { %v3600_v37 = vld [vmem:[#allocation2 + $0x22] sm:$0xff] }
 0x44d   : > { %v3592_v20 = vld [vmem:[#allocation2 + $0x21] sm:$0xff]  ;;  %3526 = vst.msk [vmem:[#allocation2 + $0x30] sm:$0xff] %vm3199_vm7, %v3506_v58  ;;  %v3642_v19 = vsel %vm7707_vm9, %v3600_v37, 0.0  ;;  %v3660_v9 = vsel %vm7703_vm8, %v3600_v37, 0.0  ;;  %vm7801_vm12 = vcmp.ne.s32.totalorder %v3539_v13, 0  ;;  %vm7835_vm14 = vcmp.ne.s32.totalorder %v3539_v13, 7 }
 0x44e   : > { %v7742_v11 = vld [vmem:[#allocation2 + $0x28] sm:$0xff]  ;;  %v4995_v43 = vpack.i.bf16 %v3592_v20, %v3591_v16  ;;  %4905 = vmatmul.msk.f32.gmra.mxu3 %vm3199_vm7, %v3660_v9  ;;  %v5000_v6 = vpack.i.bf16 %v3642_v19, %v3641_v26  ;;  %v3624_v16 = vsel %vm7790_vm1, %v3600_v37, 0.0  ;;  %vm3884_vm8 = vcmask 261120  }
 0x44f   : > { %v3651_v5 = vsel %vm7678_vm6, %v7742_v11, 0.0  ;;  %v3585_v33 = vsel %vm7747_vm3, %v7742_v11, 0.0  ;;  %v3633_v10 = vsel %vm7715_vm11, %v7742_v11, 0.0 }
 0x450   : > { %v5005_v3 = vpack.i.bf16 %v3651_v5, %v3650_v42  ;;  %4991 = vrot.lane.b32.xlu0 %v4990_v25, %s5217_s28  ;;  %v3514_v63 = vpop.f32.mrf.mxu1 }
 0x451   : > { %4996 = vrot.lane.b32.xlu1 %v4995_v43, %s8806_s1 }
 0x452   : > { %5001 = vrot.lane.b32.xlu2 %v5000_v6, %s5219_s21  ;;  %v3458_v39 = vpop.f32.mrf.mxu0 }
 0x453   : > { %v3509_v57 = vadd.f32 %v3508_v0, %v3458_v39 }
 0x454   : > { %v3601_v12 = vld [vmem:[#allocation2 + $0x2a] sm:$0xff] }
 0x455   : > { %v3593_v8 = vld [vmem:[#allocation2 + $0x29] sm:$0xff]  ;;  %3527 = vst.msk [vmem:[#allocation2 + $0x38] sm:$0xff] %vm3199_vm7, %v3509_v57  ;;  %v3661_v40 = vsel %vm7707_vm9, %v3601_v12, 0.0  ;;  %v3625_v27 = vsel %vm7777_vm0, %v3601_v12, 0.0  ;;  %v3643_v26 = vsel %vm7790_vm1, %v3601_v12, 0.0  ;;  %v3556_v57 = vld [vmem:[#allocation2] sm:$0xff] }
 0x456   : > { %v5015_v46 = vpack.i.bf16 %v3593_v8, %v3592_v20  ;;  %4906 = vmatmul.msk.f32.gmra.mxu3 %vm3199_vm7, %v3661_v40  ;;  %v7775_v60 = vld [vmem:[#allocation2 + $0x30] sm:$0xff]  ;;  %v5020_v7 = vpack.i.bf16 %v3625_v27, %v3624_v16  ;;  %vm3893_vm9 = vcmask 392192  }
 0x457   : > { %v3586_v38 = vsel %vm7767_vm2, %v7775_v60, 0.0  ;;  %v3634_v51 = vsel %vm7747_vm3, %v7775_v60, 0.0  ;;  %v3652_v9 = vsel %vm7715_vm11, %v7775_v60, 0.0 }
 0x458   : > { %5006 = vrot.lane.b32.xlu0 %v5005_v3, %s5220_s4  ;;  %v5025_v48 = vpack.i.bf16 %v3634_v51, %v3633_v10  ;;  %v3517_v3 = vpop.f32.mrf.mxu1 }
 0x459   : > { %5011 = vrot.lane.b32.xlu1 %v5015_v46, %s5221_s0 }
 0x45a   : > { %5016 = vrot.lane.b32.xlu2 %v5015_v46, %s5215_s2  ;;  %v3461_v4 = vpop.f32.mrf.mxu0 }
 0x45b   : > { %v3512_v59 = vadd.f32 %v3511_v35, %v3461_v4 }
 0x45c   : > { %v3602_v23 = vld [vmem:[#allocation2 + $0x32] sm:$0xff] }
 0x45d   : > { %v3594_v54 = vld [vmem:[#allocation2 + $0x31] sm:$0xff]  ;;  %3528 = vst.msk [vmem:[#allocation2 + $0x40] sm:$0xff] %vm3199_vm7, %v3512_v59  ;;  %v3662_v21 = vsel %vm7790_vm1, %v3602_v23, 0.0  ;;  %v3644_v55 = vsel %vm7777_vm0, %v3602_v23, 0.0  ;;  %v3626_v47 = vsel %vm7841_vm4, %v3602_v23, 0.0  ;;  %vm3920_vm1 = vcmask 785408  }
 0x45e   : > { %v5030_v44 = vpack.i.bf16 %v3594_v54, %v3593_v8  ;;  %4907 = vmatmul.msk.f32.gmra.mxu3 %vm3199_vm7, %v3662_v21  ;;  %v7812_v25 = vld [vmem:[#allocation2 + $0x38] sm:$0xff]  ;;  %v5035_v42 = vpack.i.bf16 %v3644_v55, %v3643_v26  ;;  %v3951_v21 = vld [vmem:[%s9236_s24 + $0x68] sm:$0xff]  ;;  %v3946_v26 = vld [vmem:[%s9236_s24 + $0x40] sm:$0xff] }
 0x45f   : > { %v3587_v32 = vsel %vm7801_vm12, %v7812_v25, 0.0  ;;  %v3653_v58 = vsel %vm7747_vm3, %v7812_v25, 0.0  ;;  %v3635_v40 = vsel %vm7767_vm2, %v7812_v25, 0.0  ;;  %v3953_v23 = vld [vmem:[%s9236_s24 + $0x78] sm:$0xff]  ;;  %vm4099_vm3 = vcmask 253952  }
 0x460   : > { %5021 = vrot.lane.b32.xlu0 %v5020_v7, %s8804_s27  ;;  %v5040_v5 = vpack.i.bf16 %v3653_v58, %v3652_v9  ;;  %3984 = vmatpush.msra.mxu2 %v3953_v23  ;;  %v9277_v58 = vmov 0.0   ;;  %v3941_v9 = vld [vmem:[%s9236_s24 + $0x18] sm:$0xff] }
 0x461   : > { %5026 = vrot.lane.b32.xlu1 %v5025_v48, %s5217_s28  ;;  %v3950_v48 = vld [vmem:[%s9236_s24 + $0x60] sm:$0xff]  ;;  %4098 = vst.msk [vmem:[#allocation6 + $0x40] sm:$0xff] %vm3884_vm8, %v9277_v58 }
 0x462   : > { %5031 = vrot.lane.b32.xlu2 %v5030_v44, %s8806_s1  ;;  %v3464_v36 = vpop.f32.mrf.mxu0  ;;  %4100 = vst.msk [vmem:[#allocation6 + $0x48] sm:$0x1] %vm4099_vm3, %v9277_v58 }
 0x463   : > { %v3515_v0 = vadd.f32 %v3514_v63, %v3464_v36  ;;  %v3949_v63 = vld [vmem:[%s9236_s24 + $0x58] sm:$0xff]  ;;  %v3948_v36 = vld [vmem:[%s9236_s24 + $0x50] sm:$0xff] }
 0x464   : > { %v3603_v37 = vld [vmem:[#allocation2 + $0x3a] sm:$0xff] }
 0x465   : > { %v3595_v20 = vld [vmem:[#allocation2 + $0x39] sm:$0xff]  ;;  %3529 = vst.msk [vmem:[#allocation2 + $0x48] sm:$0xff] %vm3199_vm7, %v3515_v0  ;;  %v3663_v19 = vsel %vm7777_vm0, %v3603_v37, 0.0  ;;  %v3627_v12 = vsel %vm7835_vm14, %v3603_v37, 0.0  ;;  %v3645_v51 = vsel %vm7841_vm4, %v3603_v37, 0.0  ;;  %v3947_v0 = vld [vmem:[%s9236_s24 + $0x48] sm:$0xff] }
 0x466   : > { %v5045_v43 = vpack.i.bf16 %v3595_v20, %v3594_v54  ;;  %4908 = vmatmul.msk.f32.gmra.mxu3 %vm3199_vm7, %v3663_v19  ;;  %v3628_v61 = vld [vmem:[#allocation2 + $0x40] sm:$0xff]  ;;  %v5055_v29 = vpack.i.bf16 %v3627_v12, %v3626_v47  ;;  %v3952_v54 = vld [vmem:[%s9236_s24 + $0x70] sm:$0xff]  ;;  %v3945_v37 = vld [vmem:[%s9236_s24 + $0x38] sm:$0xff]  ;;  %vm3902_vm0 = vcmask 523264  }
 0x467   : > { %v3636_v46 = vsel %vm7801_vm12, %v3628_v61, 0.0  ;;  %v3654_v16 = vsel %vm7767_vm2, %v3628_v61, 0.0  ;;  %3985 = vmatpush.msra.mxu2 %v3952_v54  ;;  %v3942_v19 = vld [vmem:[%s9236_s24 + $0x20] sm:$0xff] }
 0x468   : > { %5036 = vrot.lane.b32.xlu0 %v5035_v42, %s5219_s21  ;;  %v5060_v13 = vpack.i.bf16 %v3636_v46, %v3635_v40  ;;  %v3943_v42 = vld [vmem:[%s9236_s24 + $0x28] sm:$0xff] }
 0x469   : > { %5041 = vrot.lane.b32.xlu1 %v5040_v5, %s5220_s4  ;;  %3986 = vmatpush.msra.mxu2 %v3951_v21  ;;  %v3939_v5 = vld [vmem:[%s9236_s24 + $0x8] sm:$0xff] }
 0x46a   : > { %5046 = vrot.lane.b32.xlu2 %v5045_v43, %s5221_s0  ;;  %v3467_v39 = vpop.f32.mrf.mxu0 }
 0x46b   : > { %v3518_v8 = vadd.f32 %v3517_v3, %v3467_v39  ;;  %3987 = vmatpush.msra.mxu2 %v3950_v48  ;;  %v3938_v3 = vld [vmem:[%s9236_s24] sm:$0xff] }
 0x46c   : > { %v3638_v35 = vld [vmem:[#allocation2 + $0x42] sm:$0xff] }
 0x46d   : > { %3531 = vst.msk [vmem:[#allocation2 + $0x50] sm:$0x3] %vm3530_vm10, %v3518_v8  ;;  %v3664_v18 = vsel %vm7841_vm4, %v3638_v35, 0.0  ;;  %v3637_v56 = vld [vmem:[#allocation2 + $0x41] sm:$0xff]  ;;  %v3646_v10 = vsel %vm7835_vm14, %v3638_v35, 0.0  ;;  %3988 = vmatpush.msra.mxu2 %v3949_v63  ;;  %v3580_v35 = vsel %vm7654_vm5, %v3556_v57, 0.0 }
 0x46e   : > { %4909 = vmatmul.msk.f32.gmra.mxu3 %vm3199_vm7, %v3664_v18  ;;  %v5065_v59 = vpack.i.bf16 %v3637_v56, %v3595_v20  ;;  %v3647_v7 = vld [vmem:[#allocation2 + $0x48] sm:$0xff]  ;;  %v3944_v20 = vld [vmem:[%s9236_s24 + $0x30] sm:$0xff]  ;;  %vm3911_vm5 = vcmask 654336  }
 0x46f   : > { %v3655_v44 = vsel %vm7801_vm12, %v3647_v7, 0.0  ;;  %3989 = vmatpush.msra.mxu2 %v3948_v36 }
 0x470   : > { %5051 = vrot.lane.b32.xlu0 %v5045_v43, %s5215_s2  ;;  %v3940_v43 = vld [vmem:[%s9236_s24 + $0x10] sm:$0xff] }
 0x471   : > { %5056 = vrot.lane.b32.xlu1 %v5055_v29, %s8804_s27  ;;  %3990 = vmatpush.msra.mxu2 %v3947_v0 }
 0x472   : > { %5061 = vrot.lane.b32.xlu2 %v5060_v13, %s5217_s28  ;;  %s9290_s28 = sld [smem:[#allocation142_spill]] }
 0x473   : > { %3991 = vmatpush.msra.mxu2 %v3946_v26 }
 0x474   : > { %v3657_v27 = vld [vmem:[#allocation2 + $0x4a] sm:$0xff] }
 0x475   : > { %v3665_v4 = vsel %vm7835_vm14, %v3657_v27, 0.0  ;;  %v3656_v55 = vld [vmem:[#allocation2 + $0x49] sm:$0xff]  ;;  %3992 = vmatpush.msra.mxu2 %v3945_v37  ;;  %vm3929_vm14 = vcmask 916480  }
 0x476   : > { %4910 = vmatmul.msk.f32.gmra.mxu3 %vm3199_vm7, %v3665_v4 }
 0x477   : > { %3993 = vmatpush.msra.mxu2 %v3944_v20 }
 0x478   : > { %5066 = vrot.lane.b32.xlu0 %v5065_v59, %s8806_s1  ;;  %s692_s5 = scalar_lea.vmem %s9290_s28, %s9296_s30 }
 0x479   : > { %3807 = vrot.lane.b32.xlu1 %v3645_v51, %s5219_s21  ;;  %3994 = vmatpush.msra.mxu2 %v3943_v42 }
 0x47a   : > { %3839 = vrot.lane.b32.xlu2 %v3654_v16, %s5220_s4 }
 0x47b   : > { %3995 = vmatpush.msra.mxu2 %v3942_v19 }
 0x47d   : > { %3996 = vmatpush.msra.mxu2 %v3941_v9 }
 0x47f   : > { %3997 = vmatpush.msra.mxu2 %v3940_v43 }
 0x480   : > { %3864 = vrot.lane.b32.xlu0 %v3637_v56, %s5221_s0 }
 0x481   : > { %3809 = vrot.lane.b32.xlu1 %v3646_v10, %s5219_s21  ;;  %3998 = vmatpush.msra.mxu2 %v3939_v5  ;;  %s9287_s21 = smov 64  }
 0x482   : > { %3841 = vrot.lane.b32.xlu2 %v3655_v44, %s5220_s4 }
 0x483   : > { %3999 = vmatpush.msra.mxu2 %v3938_v3 }
 0x488   : > { %3866 = vrot.lane.b32.xlu0 %v3656_v55, %s5221_s0 }
 0x494   : > { %v4957_v6 = vpop.permute.xlu2 %4956 }
 0x495   : > { %v4958_v13 = vunpack.i.l.bf16 %v4957_v6  ;;  %v4959_v48 = vunpack.i.h.bf16 %v4957_v6 }
 0x49c   : > { %v4972_v61 = vpop.permute.xlu2 %4971 }
 0x49d   : > { %v4973_v7 = vunpack.i.l.bf16 %v4972_v61  ;;  %v4974_v19 = vunpack.i.h.bf16 %v4972_v61 }
 0x4a4   : > { %v4987_v47 = vpop.permute.xlu2 %4986 }
 0x4a5   : > { %v4988_v5 = vunpack.i.l.bf16 %v4987_v47 }
 0x4a9   : > { %v4947_v39 = vpop.permute.xlu0 %4946 }
 0x4aa   : > { %v4948_v12 = vunpack.i.l.bf16 %v4947_v39  ;;  %v4949_v56 = vunpack.i.h.bf16 %v4947_v39 }
 0x4ab   : > { %v4952_v8 = vpop.permute.xlu1 %4951 }
 0x4ac   : > { %v4953_v40 = vunpack.i.l.bf16 %v4952_v8  ;;  %v3876_v46 = vsel %vm3199_vm7, %v3580_v35, %v4948_v12  ;;  %v4954_v16 = vunpack.i.h.bf16 %v4952_v8  ;;  %v3877_v23 = vsel %vm3199_vm7, %v3581_v30, %v4949_v56  ;;  %v5002_v36 = vpop.permute.xlu2 %5001 }
 0x4ae   : > { %v3885_v18 = vsel %vm3884_vm8, %v3876_v46, %v4953_v40  ;;  %v3886_v21 = vsel %vm3884_vm8, %v3877_v23, %v4954_v16 }
 0x4af   : > { %v3894_v59 = vsel %vm3893_vm9, %v3885_v18, %v4958_v13  ;;  %v3895_v22 = vsel %vm3893_vm9, %v3886_v21, %v4959_v48  ;;  %v5003_v18 = vunpack.i.l.bf16 %v5002_v36 }
 0x4b2   : > { %v4962_v29 = vpop.permute.xlu0 %4961 }
 0x4b3   : > { %v4963_v27 = vunpack.i.l.bf16 %v4962_v29  ;;  %v4967_v4 = vpop.permute.xlu1 %4966  ;;  %v4964_v10 = vunpack.i.h.bf16 %v4962_v29 }
 0x4b4   : > { %v4968_v51 = vunpack.i.l.bf16 %v4967_v4  ;;  %v4969_v45 = vunpack.i.h.bf16 %v4967_v4  ;;  %v5017_v40 = vpop.permute.xlu2 %5016 }
 0x4b5   : > { %v3903_v49 = vsel %vm3902_vm0, %v3894_v59, %v4963_v27  ;;  %v3904_v26 = vsel %vm3902_vm0, %v3895_v22, %v4964_v10 }
 0x4b6   : > { %v3912_v54 = vsel %vm3911_vm5, %v3903_v49, %v4968_v51  ;;  %v3913_v42 = vsel %vm3911_vm5, %v3904_v26, %v4969_v45  ;;  %v5004_v49 = vunpack.i.h.bf16 %v5002_v36 }
 0x4b7   : > { %v3921_v0 = vsel %vm3920_vm1, %v3912_v54, %v4973_v7  ;;  %v3922_v57 = vsel %vm3920_vm1, %v3913_v42, %v4974_v19  ;;  %v5018_v54 = vunpack.i.l.bf16 %v5017_v40 }
 0x4ba   : > { %v4977_v44 = vpop.permute.xlu0 %4976 }
 0x4bb   : > { %v4978_v63 = vunpack.i.l.bf16 %v4977_v44  ;;  %v4982_v55 = vpop.permute.xlu1 %4981  ;;  %v4979_v20 = vunpack.i.h.bf16 %v4977_v44 }
 0x4bc   : > { %v4983_v37 = vunpack.i.l.bf16 %v4982_v55  ;;  %v4984_v39 = vunpack.i.h.bf16 %v4982_v55  ;;  %v5032_v23 = vpop.permute.xlu2 %5031  ;;  %v5019_v55 = vunpack.i.h.bf16 %v5017_v40 }
 0x4bd   : > { %v3930_v30 = vsel %vm3929_vm14, %v3921_v0, %v4978_v63  ;;  %v3931_v35 = vsel %vm3929_vm14, %v3922_v57, %v4979_v20  ;;  %v3880_v0 = vsel %vm3199_vm7, %v3584_v62, %v5018_v54  ;;  %v5033_v20 = vunpack.i.l.bf16 %v5032_v23 }
 0x4be   : > { %4000 = vmatmul.f32.vlgmr.msra.gmra.mxu2 %v3930_v30  ;;  %v3878_v9 = vsel %vm3199_vm7, %v3582_v50, %v4983_v37  ;;  %v3879_v28 = vsel %vm3199_vm7, %v3583_v15, %v4984_v39  ;;  %v4989_v50 = vunpack.i.h.bf16 %v4987_v47  ;;  %v3881_v26 = vsel %vm3199_vm7, %v3585_v33, %v5019_v55 }
 0x4bf   : > { %v3887_v12 = vsel %vm3884_vm8, %v3878_v9, %v4988_v5  ;;  %v5034_v33 = vunpack.i.h.bf16 %v5032_v23 }
 0x4c0   : > { %v3888_v13 = vsel %vm3884_vm8, %v3879_v28, %v4989_v50 }
 0x4c2   : > { %v4992_v43 = vpop.permute.xlu0 %4991 }
 0x4c3   : > { %v4993_v6 = vunpack.i.l.bf16 %v4992_v43  ;;  %v4997_v3 = vpop.permute.xlu1 %4996  ;;  %v4994_v24 = vunpack.i.h.bf16 %v4992_v43 }
 0x4c4   : > { %v4998_v8 = vunpack.i.l.bf16 %v4997_v3  ;;  %v4999_v56 = vunpack.i.h.bf16 %v4997_v3  ;;  %v5047_v14 = vpop.permute.xlu2 %5046 }
 0x4c5   : > { %v3896_v61 = vsel %vm3893_vm9, %v3887_v12, %v4993_v6  ;;  %v3897_v59 = vsel %vm3893_vm9, %v3888_v13, %v4994_v24  ;;  %v5048_v6 = vunpack.i.l.bf16 %v5047_v14  ;;  %v5049_v50 = vunpack.i.h.bf16 %v5047_v14 }
 0x4c6   : > { %4003 = vmatmul.f32.gmra.mxu2 %v3931_v35  ;;  %v3905_v46 = vsel %vm3902_vm0, %v3896_v61, %v4998_v8  ;;  %v3906_v47 = vsel %vm3902_vm0, %v3897_v59, %v4999_v56 }
 0x4c7   : > { %v3914_v31 = vsel %vm3911_vm5, %v3905_v46, %v5003_v18  ;;  %v3915_v10 = vsel %vm3911_vm5, %v3906_v47, %v5004_v49 }
 0x4ca   : > { %v5007_v29 = vpop.permute.xlu0 %5006 }
 0x4cb   : > { %v5008_v27 = vunpack.i.l.bf16 %v5007_v29  ;;  %v5012_v4 = vpop.permute.xlu1 %5011  ;;  %v5009_v16 = vunpack.i.h.bf16 %v5007_v29 }
 0x4cc   : > { %v5013_v51 = vunpack.i.l.bf16 %v5012_v4  ;;  %v5014_v7 = vunpack.i.h.bf16 %v5012_v4  ;;  %v5062_v46 = vpop.permute.xlu2 %5061 }
 0x4cd   : > { %v3923_v34 = vsel %vm3920_vm1, %v3914_v31, %v5008_v27  ;;  %v3924_v63 = vsel %vm3920_vm1, %v3915_v10, %v5009_v16  ;;  %v5063_v27 = vunpack.i.l.bf16 %v5062_v46 }
 0x4ce   : > { %v3932_v15 = vsel %vm3929_vm14, %v3923_v34, %v5013_v51  ;;  %v3933_v30 = vsel %vm3929_vm14, %v3924_v63, %v5014_v7  ;;  %v5064_v7 = vunpack.i.h.bf16 %v5062_v46 }
 0x4cf   : > { %4006 = vmatmul.f32.gmra.mxu2 %v3932_v15 }
 0x4d2   : > { %v5022_v21 = vpop.permute.xlu0 %5021 }
 0x4d3   : > { %v5023_v44 = vunpack.i.l.bf16 %v5022_v21  ;;  %v5027_v48 = vpop.permute.xlu1 %5026  ;;  %v5024_v45 = vunpack.i.h.bf16 %v5022_v21 }
 0x4d4   : > { %v5028_v22 = vunpack.i.l.bf16 %v5027_v48  ;;  %v5029_v37 = vunpack.i.h.bf16 %v5027_v48  ;;  %v3840_v53 = vpop.permute.xlu2 %3839 }
 0x4d5   : > { %v3889_v36 = vsel %vm3884_vm8, %v3880_v0, %v5023_v44  ;;  %v3890_v62 = vsel %vm3884_vm8, %v3881_v26, %v5024_v45  ;;  %v4042_v0 = vpop.f32.mrf.mxu3 }
 0x4d6   : > { %v3898_v41 = vsel %vm3893_vm9, %v3889_v36, %v5028_v22  ;;  %v3899_v1 = vsel %vm3893_vm9, %v3890_v62, %v5029_v37  ;;  %v5100_v22 = vld [vmem:[%s9278_s23] ss:$0 sm:$0xff]  ;;  %s9288_s23 = smov 32  }
 0x4d7   : > { %4009 = vmatmul.f32.gmra.mxu2 %v3933_v30  ;;  %v3907_v5 = vsel %vm3902_vm0, %v3898_v41, %v5033_v20  ;;  %v3908_v8 = vsel %vm3902_vm0, %v3899_v1, %v5034_v33 }
 0x4da   : > { %v5037_v42 = vpop.permute.xlu0 %5036 }
 0x4db   : > { %v5038_v19 = vunpack.i.l.bf16 %v5037_v42  ;;  %v5042_v9 = vpop.permute.xlu1 %5041  ;;  %v5039_v3 = vunpack.i.h.bf16 %v5037_v42 }
 0x4dc   : > { %v5043_v43 = vunpack.i.l.bf16 %v5042_v9  ;;  %v5044_v12 = vunpack.i.h.bf16 %v5042_v9 }
 0x4dd   : > { %v3916_v11 = vsel %vm3911_vm5, %v3907_v5, %v5038_v19  ;;  %v3917_v35 = vsel %vm3911_vm5, %v3908_v8, %v5039_v3  ;;  %v4045_v26 = vpop.f32.mrf.mxu3 }
 0x4de   : > { %v3925_v39 = vsel %vm3920_vm1, %v3916_v11, %v5043_v43  ;;  %v3926_v24 = vsel %vm3920_vm1, %v3917_v35, %v5044_v12 }
 0x4df   : > { %v3934_v57 = vsel %vm3929_vm14, %v3925_v39, %v5048_v6  ;;  %v3935_v13 = vsel %vm3929_vm14, %v3926_v24, %v5049_v50 }
 0x4e0   : > { %4012 = vmatmul.f32.gmra.mxu2 %v3934_v57 }
 0x4e2   : > { %v5052_v40 = vpop.permute.xlu0 %5051 }
 0x4e3   : > { %v5053_v61 = vunpack.i.l.bf16 %v5052_v40  ;;  %v5057_v28 = vpop.permute.xlu1 %5056  ;;  %v5054_v59 = vunpack.i.h.bf16 %v5052_v40 }
 0x4e4   : > { %v5058_v18 = vunpack.i.l.bf16 %v5057_v28  ;;  %v5059_v47 = vunpack.i.h.bf16 %v5057_v28 }
 0x4e5   : > { %v3882_v29 = vsel %vm3199_vm7, %v3586_v38, %v5053_v61  ;;  %v3883_v60 = vsel %vm3199_vm7, %v3587_v32, %v5054_v59  ;;  %v3842_v32 = vpop.permute.xlu2 %3841  ;;  %v4048_v19 = vpop.f32.mrf.mxu3 }
 0x4e6   : > { %v3891_v56 = vsel %vm3884_vm8, %v3882_v29, %v5058_v18  ;;  %v3892_v16 = vsel %vm3884_vm8, %v3883_v60, %v5059_v47 }
 0x4e7   : > { %v3900_v34 = vsel %vm3893_vm9, %v3891_v56, %v5063_v27  ;;  %v3901_v44 = vsel %vm3893_vm9, %v3892_v16, %v5064_v7 }
 0x4e8   : > { %4015 = vmatmul.f32.gmra.mxu2 %v3935_v13 }
 0x4ea   : > { %v5067_v4 = vpop.permute.xlu0 %5066 }
 0x4eb   : > { %v5068_v51 = vunpack.i.l.bf16 %v5067_v4  ;;  %v3808_v31 = vpop.permute.xlu1 %3807  ;;  %v5069_v49 = vunpack.i.h.bf16 %v5067_v4 }
 0x4ed   : > { %v3909_v15 = vsel %vm3902_vm0, %v3900_v34, %v5068_v51  ;;  %v3910_v17 = vsel %vm3902_vm0, %v3901_v44, %v5069_v49  ;;  %v4051_v3 = vpop.f32.mrf.mxu3 }
 0x4ee   : > { %v3918_v38 = vsel %vm3911_vm5, %v3909_v15, %v3808_v31 }
 0x4ef   : > { %v3927_v54 = vsel %vm3920_vm1, %v3918_v38, %v3840_v53 }
 0x4f2   : > { %v3865_v23 = vpop.permute.xlu0 %3864 }
 0x4f3   : > { %v3936_v21 = vsel %vm3929_vm14, %v3927_v54, %v3865_v23  ;;  %v3810_v10 = vpop.permute.xlu1 %3809  ;;  %v4124_v23 = vld [vmem:[#allocation6 + $0x40] sm:$0xff] }
 0x4f4   : > { %4018 = vmatmul.f32.gmra.mxu2 %v3936_v21  ;;  %v3919_v25 = vsel %vm3911_vm5, %v3910_v17, %v3810_v10  ;;  %v4125_v54 = vld [vmem:[#allocation6 + $0x41] sm:$0xff] }
 0x4f5   : > { %v3928_v63 = vsel %vm3920_vm1, %v3919_v25, %v3842_v32  ;;  %v4054_v35 = vpop.f32.mrf.mxu3  ;;  %v4133_v7 = vmax.f32 %v4124_v23, %v4125_v54 }
 0x4fa   : > { %v3867_v48 = vpop.permute.xlu0 %3866 }
 0x4fb   : > { %v3937_v55 = vsel %vm3929_vm14, %v3928_v63, %v3867_v48 }
 0x4fc   : > { %4021 = vmatmul.f32.gmra.mxu2 %v3937_v55 }
 0x4fd   : > { %v4057_v29 = vpop.f32.mrf.mxu3 }
 0x505   : > { %v4060_v4 = vpop.f32.mrf.mxu3 }
 0x50d   : > { %v4063_v60 = vpop.f32.mrf.mxu3 }
 0x541   : > { %v4001_v45 = vpop.f32.mrf.mxu2 }
 0x542   : > { %v4002_v36 = vadd.f32 %v5100_v22, %v4001_v45 }
 0x544   : > { %v4043_v30 = vadd.f32 %v4042_v0, %v4002_v36 }
 0x546   : > { %v4074_v37 = vmul.f32 0.01, %v4043_v30  ;;  %vm4066_vm15 = vcmp.ge.f32.partialorder %v4043_v30, 0.0 }
 0x548   : > { %v8017_v41 = vsel %vm4066_vm15, %v4043_v30, %v4074_v37 }
 0x549   : > { %v4004_v20 = vpop.f32.mrf.mxu2  ;;  %4090 = vst.msk [vmem:[#allocation6] sm:$0xff] %vm3884_vm8, %v8017_v41 }
 0x54a   : > { %v4005_v14 = vadd.f32 %v5100_v22, %v4004_v20 }
 0x54c   : > { %v4046_v62 = vadd.f32 %v4045_v26, %v4005_v14 }
 0x54e   : > { %v4075_v42 = vmul.f32 0.01, %v4046_v62  ;;  %vm4067_vm13 = vcmp.ge.f32.partialorder %v4046_v62, 0.0 }
 0x550   : > { %v8021_v9 = vsel %vm4067_vm13, %v4046_v62, %v4075_v42  ;;  %vm4190_vm13 = vcmask 254976  }
 0x551   : > { %4091 = vst.msk [vmem:[#allocation6 + $0x8] sm:$0xff] %vm3884_vm8, %v8021_v9 }
 0x552   : > { %v4007_v43 = vpop.f32.mrf.mxu2 }
 0x553   : > { %v4008_v5 = vadd.f32 %v5100_v22, %v4007_v43 }
 0x555   : > { %v4049_v6 = vadd.f32 %v4048_v19, %v4008_v5 }
 0x557   : > { %v4076_v1 = vmul.f32 0.01, %v4049_v6  ;;  %vm4068_vm6 = vcmp.ge.f32.partialorder %v4049_v6, 0.0 }
 0x559   : > { %v8025_v11 = vsel %vm4068_vm6, %v4049_v6, %v4076_v1  ;;  %vm4415_vm6 = vcmask 520192  }
 0x55a   : > { %v4010_v33 = vpop.f32.mrf.mxu2  ;;  %4092 = vst.msk [vmem:[#allocation6 + $0x10] sm:$0xff] %vm3884_vm8, %v8025_v11 }
 0x55b   : > { %v4011_v39 = vadd.f32 %v5100_v22, %v4010_v33  ;;  %4416 = vst.msk [vmem:[#allocation7 + $0x10] sm:$0x1f] %vm4415_vm6, %v9277_v58 }
 0x55d   : > { %v4052_v57 = vadd.f32 %v4051_v3, %v4011_v39 }
 0x55f   : > { %v4077_v12 = vmul.f32 0.01, %v4052_v57  ;;  %vm4069_vm11 = vcmp.ge.f32.partialorder %v4052_v57, 0.0 }
 0x561   : > { %v8029_v8 = vsel %vm4069_vm11, %v4052_v57, %v4077_v12  ;;  %v4102_v3 = vld [vmem:[#allocation6 + $0x9] sm:$0xff]  ;;  %vm4461_vm11 = vcmask 517120  }
 0x562   : > { %4093 = vst.msk [vmem:[#allocation6 + $0x18] sm:$0xff] %vm3884_vm8, %v8029_v8  ;;  %v4118_v33 = vld [vmem:[#allocation6 + $0x10] sm:$0xff] }
 0x563   : > { %v4013_v40 = vpop.f32.mrf.mxu2 }
 0x564   : > { %v4014_v61 = vadd.f32 %v5100_v22, %v4013_v40  ;;  %v4117_v40 = vld [vmem:[#allocation6 + $0x8] sm:$0xff] }
 0x566   : > { %v4055_v28 = vadd.f32 %v4054_v35, %v4014_v61  ;;  %v4101_v35 = vld [vmem:[#allocation6 + $0x1] sm:$0xff] }
 0x568   : > { %v4078_v24 = vmul.f32 0.01, %v4055_v28  ;;  %vm4070_vm2 = vcmp.ge.f32.partialorder %v4055_v28, 0.0 }
 0x569   : > { %v4103_v19 = vld [vmem:[#allocation6 + $0x11] sm:$0xff] }
 0x56a   : > { %v4086_v50 = vsel %vm4070_vm2, %v4055_v28, %v4078_v24  ;;  %v4119_v43 = vld [vmem:[#allocation6 + $0x18] sm:$0xff]  ;;  %v4111_v57 = vmax.f32 %v8025_v11, %v4103_v19  ;;  %v4127_v12 = vmax.f32 %v4118_v33, %v4103_v19  ;;  %v4110_v28 = vmax.f32 %v8021_v9, %v4102_v3  ;;  %v4143_v11 = vld [vmem:[%s8691_s11 + $0x8] sm:$0xff]  ;;  %v4144_v9 = vld [vmem:[%s8691_s11 + $0x10] sm:$0xff] }
 0x56b   : > { %v4016_v46 = vpop.f32.mrf.mxu2  ;;  %4094 = vst.msk [vmem:[#allocation6 + $0x20] sm:$0xff] %vm3884_vm8, %v4086_v50  ;;  %v4126_v24 = vmax.f32 %v4117_v40, %v4102_v3  ;;  %v4301_v19 = vld [vmem:[%s9289_s26 + $0x48] sm:$0xff]  ;;  %v4298_v33 = vld [vmem:[%s9289_s26 + $0x30] sm:$0xff] }
 0x56c   : > { %v4017_v18 = vadd.f32 %v5100_v22, %v4016_v46  ;;  %v4109_v46 = vmax.f32 %v8017_v41, %v4101_v35  ;;  %v4145_v41 = vld [vmem:[%s8691_s11 + $0x18] sm:$0x3]  ;;  %v4321_v3 = vld [vmem:[%s9289_s26 + $0xe8] sm:$0xff]  ;;  %v4296_v35 = vld [vmem:[%s9289_s26 + $0x20] sm:$0xff] }
 0x56d   : > { %v4318_v40 = vld [vmem:[%s9289_s26 + $0xd0] sm:$0xff] }
 0x56e   : > { %v4058_v13 = vadd.f32 %v4057_v29, %v4017_v18  ;;  %v4142_v18 = vld [vmem:[%s8691_s11] sm:$0xff] }
 0x570   : > { %v4079_v56 = vmul.f32 0.01, %v4058_v13  ;;  %vm4071_vm12 = vcmp.ge.f32.partialorder %v4058_v13, 0.0 }
 0x572   : > { %v4087_v27 = vsel %vm4071_vm12, %v4058_v13, %v4079_v56  ;;  %v4104_v37 = vld [vmem:[#allocation6 + $0x19] sm:$0xff]  ;;  %v4193_v56 = vand.u32 3, %v9237_v2  ;;  %vm4685_vm12 = vcmask 1043456  }
 0x573   : > { %4095 = vst.msk [vmem:[#allocation6 + $0x28] sm:$0xff] %vm3884_vm8, %v4087_v27  ;;  %v4120_v20 = vld [vmem:[#allocation6 + $0x20] sm:$0xff]  ;;  %v4112_v6 = vmax.f32 %v8029_v8, %v4104_v37  ;;  %v4128_v1 = vmax.f32 %v4119_v43, %v4104_v37  ;;  %v4134_v8 = vmax.f32 %v4109_v46, %v4126_v24  ;;  %v4323_v43 = vld [vmem:[%s9289_s26 + $0xf8] sm:$0xff]  ;;  %v4294_v24 = vld [vmem:[%s9289_s26 + $0x10] sm:$0xff] }
 0x574   : > { %vm8062_vm9 = vcmp.ne.s32.totalorder %v4193_v56, 0  ;;  %vm8083_vm15 = vcmp.ne.s32.totalorder %v4193_v56, 3  ;;  %v4731_v37 = vld [vmem:[%s692_s5] sm:$0x1]  ;;  %v4293_v46 = vld [vmem:[%s9289_s26 + $0x8] sm:$0xff] }
 0x575   : > { %v4136_v61 = vmax.f32 %v4111_v57, %v4128_v1  ;;  %v4299_v1 = vld [vmem:[%s9289_s26 + $0x38] sm:$0xff]  ;;  %v4297_v57 = vld [vmem:[%s9289_s26 + $0x28] sm:$0xff] }
 0x576   : > { %v4309_v56 = vld [vmem:[%s9289_s26 + $0x88] sm:$0xff] }
 0x577   : > { %v4019_v59 = vpop.f32.mrf.mxu2 }
 0x578   : > { %v4020_v51 = vadd.f32 %v5100_v22, %v4019_v59 }
 0x57a   : > { %v4061_v31 = vadd.f32 %v4060_v4, %v4020_v51  ;;  %v4121_v45 = vld [vmem:[#allocation6 + $0x28] sm:$0xff] }
 0x57c   : > { %v4080_v34 = vmul.f32 0.01, %v4061_v31  ;;  %vm4072_vm10 = vcmp.ge.f32.partialorder %v4061_v31, 0.0 }
 0x57e   : > { %v4088_v15 = vsel %vm4072_vm10, %v4061_v31, %v4080_v34  ;;  %vm4839_vm10 = vcmask 0  }
 0x57f   : > { %v4022_v47 = vpop.f32.mrf.mxu2  ;;  %4096 = vst.msk [vmem:[#allocation6 + $0x30] sm:$0xff] %vm3884_vm8, %v4088_v15 }
 0x580   : > { %v4023_v53 = vadd.f32 %v5100_v22, %v4022_v47  ;;  %v4105_v22 = vld [vmem:[#allocation6 + $0x21] sm:$0xff] }
 0x581   : > { %v4113_v62 = vmax.f32 %v4086_v50, %v4105_v22  ;;  %v4129_v42 = vmax.f32 %v4120_v20, %v4105_v22  ;;  %v4135_v50 = vmax.f32 %v4110_v28, %v4127_v12  ;;  %v4305_v20 = vld [vmem:[%s9289_s26 + $0x68] sm:$0xff]  ;;  %v4319_v12 = vld [vmem:[%s9289_s26 + $0xd8] sm:$0xff] }
 0x582   : > { %v4064_v38 = vadd.f32 %v4063_v60, %v4023_v53  ;;  %v4317_v28 = vld [vmem:[%s9289_s26 + $0xc8] sm:$0xff] }
 0x583   : > { %v4137_v39 = vmax.f32 %v4112_v6, %v4129_v42  ;;  %v4302_v42 = vld [vmem:[%s9289_s26 + $0x50] sm:$0xff] }
 0x584   : > { %v4081_v16 = vmul.f32 0.01, %v4064_v38  ;;  %vm4073_vm4 = vcmp.ge.f32.partialorder %v4064_v38, 0.0  ;;  %v4322_v6 = vld [vmem:[%s9289_s26 + $0xf0] sm:$0xff] }
 0x586   : > { %v4089_v49 = vsel %vm4073_vm4, %v4064_v38, %v4081_v16  ;;  %v4106_v48 = vld [vmem:[#allocation6 + $0x29] sm:$0xff] }
 0x587   : > { %4097 = vst.msk [vmem:[#allocation6 + $0x38] sm:$0xff] %vm3884_vm8, %v4089_v49  ;;  %v4122_v63 = vld [vmem:[#allocation6 + $0x30] sm:$0xff]  ;;  %v4114_v30 = vmax.f32 %v4087_v27, %v4106_v48  ;;  %v4130_v26 = vmax.f32 %v4121_v45, %v4106_v48  ;;  %v4192_v27 = vand.u32 3, %v9241_v52 }
 0x589   : > { %v4138_v5 = vmax.f32 %v4113_v62, %v4130_v26  ;;  %vm8066_vm5 = vcmp.ne.s32.totalorder %v4192_v27, 0  ;;  %vm8079_vm14 = vcmp.ne.s32.totalorder %v4192_v27, 3  ;;  %v4303_v62 = vld [vmem:[%s9289_s26 + $0x58] sm:$0xff] }
 0x58a   : > { %v4327_v27 = vld [vmem:[%s9289_s26 + $0x118] sm:$0xff] }
 0x58e   : > { %v4108_v21 = vld [vmem:[#allocation6 + $0x39] sm:$0xff]  ;;  %v4107_v10 = vld [vmem:[#allocation6 + $0x31] sm:$0xff] }
 0x58f   : > { %v4123_v44 = vld [vmem:[#allocation6 + $0x38] sm:$0xff]  ;;  %v4116_v17 = vmax.f32 %v4089_v49, %v4108_v21  ;;  %v4115_v25 = vmax.f32 %v4088_v15, %v4107_v10  ;;  %v4131_v0 = vmax.f32 %v4122_v63, %v4107_v10 }
 0x590   : > { %v4132_v32 = vmax.f32 %v4123_v44, %v4108_v21 }
 0x591   : > { %v4141_v55 = vmax.f32 %v4116_v17, %v4133_v7  ;;  %v4139_v14 = vmax.f32 %v4114_v30, %v4131_v0 }
 0x592   : > { %v4140_v36 = vmax.f32 %v4115_v25, %v4132_v32  ;;  %v4307_v25 = vld [vmem:[%s9289_s26 + $0x78] sm:$0xff]  ;;  %v4306_v32 = vld [vmem:[%s9289_s26 + $0x70] sm:$0xff] }
 0x593   : > { %4166 = vmatpush.msrb.mxu3 %v4141_v55  ;;  %4338 = vmatpush.msrb.mxu2 %v4307_v25 }
 0x595   : > { %4167 = vmatpush.msrb.mxu3 %v4140_v36  ;;  %4339 = vmatpush.msrb.mxu2 %v4306_v32 }
 0x597   : > { %4168 = vmatpush.msrb.mxu3 %v4139_v14  ;;  %v4304_v14 = vld [vmem:[%s9289_s26 + $0x60] sm:$0xff]  ;;  %4340 = vmatpush.msrb.mxu2 %v4305_v20 }
 0x599   : > { %4169 = vmatpush.msrb.mxu3 %v4138_v5  ;;  %4341 = vmatpush.msrb.mxu2 %v4304_v14  ;;  %v4300_v5 = vld [vmem:[%s9289_s26 + $0x40] sm:$0xff] }
 0x59b   : > { %4170 = vmatpush.msrb.mxu3 %v4137_v39  ;;  %4342 = vmatpush.msrb.mxu2 %v4303_v62  ;;  %v4320_v39 = vld [vmem:[%s9289_s26 + $0xe0] sm:$0xff] }
 0x59d   : > { %4171 = vmatpush.msrb.mxu3 %v4136_v61  ;;  %4343 = vmatpush.msrb.mxu2 %v4302_v42  ;;  %v4295_v61 = vld [vmem:[%s9289_s26 + $0x18] sm:$0xff] }
 0x59f   : > { %4172 = vmatpush.msrb.mxu3 %v4135_v50  ;;  %4344 = vmatpush.msrb.mxu2 %v4301_v19  ;;  %v4316_v50 = vld [vmem:[%s9289_s26 + $0xc0] sm:$0xff] }
 0x5a1   : > { %4173 = vmatpush.msrb.mxu3 %v4134_v8  ;;  %4345 = vmatpush.msrb.mxu2 %v4300_v5  ;;  %v4315_v8 = vld [vmem:[%s9289_s26 + $0xb8] sm:$0xff] }
 0x5a2   : > { %4911 = vmatmul.msk.f32.vlgmr.msrb.gmra.mxu3 %vm3902_vm0, %v4142_v18  ;;  %v4292_v18 = vld [vmem:[%s9289_s26] sm:$0xff] }
 0x5a3   : > { %4361 = vmatpush.msra.mxu3 %v4323_v43  ;;  %4346 = vmatpush.msrb.mxu2 %v4299_v1 }
 0x5a5   : > { %4362 = vmatpush.msra.mxu3 %v4322_v6  ;;  %4347 = vmatpush.msrb.mxu2 %v4298_v33 }
 0x5a7   : > { %4363 = vmatpush.msra.mxu3 %v4321_v3  ;;  %4348 = vmatpush.msrb.mxu2 %v4297_v57 }
 0x5a9   : > { %4364 = vmatpush.msra.mxu3 %v4320_v39  ;;  %4349 = vmatpush.msrb.mxu2 %v4296_v35 }
 0x5aa   : > { %4912 = vmatmul.msk.f32.gmra.mxu3 %vm3902_vm0, %v4143_v11  ;;  %v4314_v11 = vld [vmem:[%s9289_s26 + $0xb0] sm:$0xff] }
 0x5ab   : > { %4365 = vmatpush.msra.mxu3 %v4319_v12  ;;  %4350 = vmatpush.msrb.mxu2 %v4295_v61 }
 0x5ad   : > { %4366 = vmatpush.msra.mxu3 %v4318_v40  ;;  %4351 = vmatpush.msrb.mxu2 %v4294_v24 }
 0x5af   : > { %4367 = vmatpush.msra.mxu3 %v4317_v28  ;;  %4352 = vmatpush.msrb.mxu2 %v4293_v46 }
 0x5b1   : > { %4368 = vmatpush.msra.mxu3 %v4316_v50  ;;  %4353 = vmatpush.msrb.mxu2 %v4292_v18 }
 0x5b2   : > { %4913 = vmatmul.msk.f32.gmra.mxu3 %vm3902_vm0, %v4144_v9  ;;  %v4313_v9 = vld [vmem:[%s9289_s26 + $0xa8] sm:$0xff] }
 0x5b3   : > { %4369 = vmatpush.msra.mxu3 %v4315_v8  ;;  %4396 = vmatpush.msra.mxu2 %v4327_v27 }
 0x5b5   : > { %4370 = vmatpush.msra.mxu3 %v4314_v11 }
 0x5b7   : > { %4371 = vmatpush.msra.mxu3 %v4313_v9 }
 0x5ba   : > { %4914 = vmatmul.msk.f32.gmra.mxu3 %vm3902_vm0, %v4145_v41  ;;  %v4312_v41 = vld [vmem:[%s9289_s26 + $0xa0] sm:$0xff] }
 0x5bb   : > { %4372 = vmatpush.msra.mxu3 %v4312_v41 }
 0x625   : > { %v4175_v29 = vpop.f32.mrf.mxu3 }
 0x626   : > { %4187 = vst.msk [vmem:[#allocation3] sm:$0xff] %vm3884_vm8, %v4175_v29  ;;  %v4311_v29 = vld [vmem:[%s9289_s26 + $0x98] sm:$0xff] }
 0x627   : > { %4373 = vmatpush.msra.mxu3 %v4311_v29 }
 0x62d   : > { %v4178_v13 = vpop.f32.mrf.mxu3 }
 0x62e   : > { %4188 = vst.msk [vmem:[#allocation3 + $0x8] sm:$0xff] %vm3884_vm8, %v4178_v13  ;;  %v4310_v13 = vld [vmem:[%s9289_s26 + $0x90] sm:$0xff] }
 0x62f   : > { %4374 = vmatpush.msra.mxu3 %v4310_v13 }
 0x631   : > { %4375 = vmatpush.msra.mxu3 %v4309_v56 }
 0x635   : > { %v4181_v59 = vpop.f32.mrf.mxu3  ;;  %v4216_v31 = vld [vmem:[#allocation3 + $0x4] sm:$0xff] }
 0x636   : > { %v8070_v34 = vld [vmem:[#allocation3 + $0x8] sm:$0xff]  ;;  %4189 = vst.msk [vmem:[#allocation3 + $0x10] sm:$0xff] %vm3884_vm8, %v4181_v59  ;;  %v4218_v15 = vsel %vm8066_vm5, %v4216_v31, 0.0  ;;  %v4326_v31 = vld [vmem:[%s9289_s26 + $0x110] sm:$0xff] }
 0x637   : > { %v4205_v2 = vsel %vm8062_vm9, %v8070_v34, 0.0  ;;  %4251 = vrot.lane.b32.xlu0 %v4218_v15, %s5220_s4  ;;  %v4208_v60 = vld [vmem:[#allocation3 + $0x2] sm:$0xff]  ;;  %v4227_v54 = vsel %vm8066_vm5, %v8070_v34, 0.0  ;;  %4397 = vmatpush.msra.mxu2 %v4326_v31  ;;  %v4325_v15 = vld [vmem:[%s9289_s26 + $0x108] sm:$0xff] }
 0x638   : > { %v4206_v38 = vld [vmem:[#allocation3 + $0x1] sm:$0xff]  ;;  %v4214_v21 = vsel %vm8079_vm14, %v4208_v60, 0.0 }
 0x639   : > { %v4222_v55 = vld [vmem:[#allocation3 + $0x6] sm:$0xff]  ;;  %4398 = vmatpush.msra.mxu2 %v4325_v15 }
 0x63a   : > { %v4224_v45 = vsel %vm8079_vm14, %v4222_v55, 0.0  ;;  %v4308_v59 = vld [vmem:[%s9289_s26 + $0x80] sm:$0xff] }
 0x63b   : > { %4376 = vmatpush.msra.mxu3 %v4308_v59  ;;  %v4324_v60 = vld [vmem:[%s9289_s26 + $0x100] sm:$0xff] }
 0x63c   : > { %4399 = vmatpush.msra.mxu2 %v4324_v60  ;;  %v4429_v15 = vld [vmem:[%s8692_s12] sm:$0xff]  ;;  %v4430_v60 = vld [vmem:[%s8692_s12 + $0x8] sm:$0x3] }
 0x63d   : > { %v4207_v16 = vld [vmem:[#allocation3 + $0x9] sm:$0xff]  ;;  %v4184_v23 = vpop.f32.mrf.mxu3 }
 0x63e   : > { %v8087_v49 = vld [vmem:[#allocation3 + $0xa] sm:$0xff]  ;;  %v5070_v7 = vpack.i.bf16 %v4207_v16, %v4206_v38  ;;  %4191 = vst.msk [vmem:[#allocation3 + $0x18] sm:$0x3] %vm4190_vm13, %v4184_v23  ;;  %v4198_v38 = vld [vmem:[#allocation3] sm:$0xff] }
 0x63f   : > { %v4215_v10 = vsel %vm8083_vm15, %v8087_v49, 0.0  ;;  %4267 = vrot.lane.b32.xlu0 %v4227_v54, %s9287_s21  ;;  %v4231_v17 = vsel %vm8079_vm14, %v8087_v49, 0.0  ;;  %v4226_v48 = vld [vmem:[#allocation3 + $0x10] sm:$0xff] }
 0x640   : > { %v5075_v44 = vpack.i.bf16 %v4215_v10, %v4214_v21  ;;  %5071 = vrot.lane.b32.xlu1 %v5070_v7, %s9288_s23  ;;  %v4217_v63 = vld [vmem:[#allocation3 + $0xc] sm:$0xff]  ;;  %v4228_v0 = vsel %vm8062_vm9, %v4226_v48, 0.0  ;;  %v4204_v21 = vsel %vm8066_vm5, %v4198_v38, 0.0  ;;  %v4566_v38 = vld [vmem:[%s8688_s8 + $0x1f8] sm:$0xff] }
 0x641   : > { %v4219_v22 = vsel %vm8062_vm9, %v4217_v63, 0.0  ;;  %v4223_v36 = vld [vmem:[#allocation3 + $0xe] sm:$0xff] }
 0x642   : > { %5076 = vrot.lane.b32.xlu2 %v5075_v44, %s9287_s21  ;;  %v4225_v30 = vsel %vm8083_vm15, %v4223_v36, 0.0 }
 0x645   : > { %v4229_v26 = vld [vmem:[#allocation3 + $0x11] sm:$0xff] }
 0x646   : > { %v4230_v5 = vld [vmem:[#allocation3 + $0x12] sm:$0xff] }
 0x647   : > { %4269 = vrot.lane.b32.xlu0 %v4228_v0, %s9287_s21  ;;  %v4232_v6 = vsel %vm8083_vm15, %v4230_v5, 0.0  ;;  %v4463_v5 = vand.u32 1, %v9241_v52  ;;  %v4556_v52 = vld [vmem:[%s8688_s8 + $0x1a8] sm:$0xff] }
 0x648   : > { %4253 = vrot.lane.b32.xlu1 %v4219_v22, %s5220_s4 }
 0x649   : > { %vm8370_vm3 = vcmp.ne.s32.totalorder %v4463_v5, 0  ;;  %vm8377_vm2 = vcmp.ne.s32.totalorder %v4463_v5, 1 }
 0x64a   : > { %4259 = vrot.lane.b32.xlu2 %v4224_v45, %s9288_s23 }
 0x650   : > { %4274 = vrot.lane.b32.xlu1 %v4207_v16, %s5220_s4 }
 0x652   : > { %4261 = vrot.lane.b32.xlu2 %v4225_v30, %s9288_s23  ;;  %v4220_v30 = vld [vmem:[#allocation3 + $0x5] sm:$0xff] }
 0x658   : > { %4276 = vrot.lane.b32.xlu1 %v4229_v26, %s5220_s4 }
 0x660   : > { %4735 = vperm.xlu1 %4943, %v4731_v37  }
 0x69c   : > { %v5077_v16 = vpop.permute.xlu2 %5076 }
 0x69d   : > { %v5078_v10 = vunpack.i.l.bf16 %v5077_v16  ;;  %v5079_v0 = vunpack.i.h.bf16 %v5077_v16  ;;  %v4565_v16 = vld [vmem:[%s8688_s8 + $0x1f0] sm:$0xff] }
 0x6a4   : > { %v4260_v22 = vpop.permute.xlu2 %4259 }
 0x6a5   : > { %v4286_v26 = vsel %vm3884_vm8, %v4220_v30, %v4260_v22  ;;  %v4533_v22 = vld [vmem:[%s8688_s8 + $0xf0] sm:$0xff]  ;;  %v4532_v30 = vld [vmem:[%s8688_s8 + $0xe8] sm:$0xff] }
 0x6a9   : > { %v4252_v54 = vpop.permute.xlu0 %4251 }
 0x6ac   : > { %v4262_v34 = vpop.permute.xlu2 %4261 }
 0x6b1   : > { %v4268_v51 = vpop.permute.xlu0 %4267 }
 0x6b2   : > { %v5072_v23 = vpop.permute.xlu1 %5071  ;;  %v4288_v37 = vsel %vm3902_vm0, %v4286_v26, %v4268_v51  ;;  %v4545_v51 = vld [vmem:[%s8688_s8 + $0x150] sm:$0xff]  ;;  %v4544_v26 = vld [vmem:[%s8688_s8 + $0x148] sm:$0xff] }
 0x6b3   : > { %v5073_v7 = vunpack.i.l.bf16 %v5072_v23  ;;  %v5074_v32 = vunpack.i.h.bf16 %v5072_v23  ;;  %v4550_v23 = vld [vmem:[%s8688_s8 + $0x178] sm:$0xff] }
 0x6b5   : > { %v4280_v44 = vsel %vm3884_vm8, %v4204_v21, %v5073_v7  ;;  %v4281_v55 = vsel %vm3884_vm8, %v4205_v2, %v5074_v32  ;;  %v4221_v2 = vld [vmem:[#allocation3 + $0xd] sm:$0xff]  ;;  %v4549_v7 = vld [vmem:[%s8688_s8 + $0x170] sm:$0xff]  ;;  %v4534_v32 = vld [vmem:[%s8688_s8 + $0xf8] sm:$0xff] }
 0x6b6   : > { %v4282_v25 = vsel %vm3902_vm0, %v4280_v44, %v5078_v10  ;;  %v4283_v45 = vsel %vm3902_vm0, %v4281_v55, %v5079_v0  ;;  %v4287_v62 = vsel %vm3884_vm8, %v4221_v2, %v4262_v34  ;;  %v4548_v21 = vld [vmem:[%s8688_s8 + $0x168] sm:$0xff]  ;;  %v4563_v10 = vld [vmem:[%s8688_s8 + $0x1e0] sm:$0xff]  ;;  %v4518_v44 = vld [vmem:[%s8688_s8 + $0x78] sm:$0xff]  ;;  %4602 = vmatpush.msrb.mxu1 %v4534_v32 }
 0x6b7   : > { %v4284_v48 = vsel %vm3920_vm1, %v4282_v25, %v4252_v54  ;;  %v4564_v54 = vld [vmem:[%s8688_s8 + $0x1e8] sm:$0xff]  ;;  %v4547_v25 = vld [vmem:[%s8688_s8 + $0x160] sm:$0xff]  ;;  %4582 = vmatpush.msrb.mxu0 %v4518_v44  ;;  %v4517_v55 = vld [vmem:[%s8688_s8 + $0x70] sm:$0xff] }
 0x6b8   : > { %4354 = vmatmul.f32.vlgmr.msrb.gmra.mxu2 %v4284_v48  ;;  %v4562_v48 = vld [vmem:[%s8688_s8 + $0x1d8] sm:$0xff]  ;;  %v4561_v0 = vld [vmem:[%s8688_s8 + $0x1d0] sm:$0xff]  ;;  %4603 = vmatpush.msrb.mxu1 %v4533_v22  ;;  %v4543_v2 = vld [vmem:[%s8688_s8 + $0x140] sm:$0xff] }
 0x6b9   : > { %v4270_v14 = vpop.permute.xlu0 %4269  ;;  %4622 = vmatpush.msrb.mxu2 %v4550_v23  ;;  %4583 = vmatpush.msrb.mxu0 %v4517_v55  ;;  %v4514_v34 = vld [vmem:[%s8688_s8 + $0x58] sm:$0xff]  ;;  %v4527_v23 = vld [vmem:[%s8688_s8 + $0xc0] sm:$0xff]  ;;  %v4509_v44 = vld [vmem:[%s8688_s8 + $0x30] sm:$0xff] }
 0x6ba   : > { %v4254_v63 = vpop.permute.xlu1 %4253  ;;  %v4289_v42 = vsel %vm3902_vm0, %v4287_v62, %v4270_v14  ;;  %4604 = vmatpush.msrb.mxu1 %v4532_v30  ;;  %v4530_v62 = vld [vmem:[%s8688_s8 + $0xd8] sm:$0xff]  ;;  %v4568_v32 = vld [vmem:[%s8688_s8 + $0x208] sm:$0xff]  ;;  %v4567_v55 = vld [vmem:[%s8688_s8 + $0x200] sm:$0xff] }
 0x6bb   : > { %v4285_v36 = vsel %vm3920_vm1, %v4283_v45, %v4254_v63  ;;  %4623 = vmatpush.msrb.mxu2 %v4549_v7  ;;  %v4546_v63 = vld [vmem:[%s8688_s8 + $0x158] sm:$0xff]  ;;  %v4516_v45 = vld [vmem:[%s8688_s8 + $0x68] sm:$0xff]  ;;  %v4523_v22 = vld [vmem:[%s8688_s8 + $0xa0] sm:$0xff] }
 0x6bc   : > { %4584 = vmatpush.msrb.mxu0 %v4516_v45  ;;  %v4510_v7 = vld [vmem:[%s8688_s8 + $0x38] sm:$0xff]  ;;  %v4521_v30 = vld [vmem:[%s8688_s8 + $0x90] sm:$0xff] }
 0x6bd   : > { %4624 = vmatpush.msrb.mxu2 %v4548_v21  ;;  %v4526_v21 = vld [vmem:[%s8688_s8 + $0xb8] sm:$0xff] }
 0x6be   : > { %v4522_v45 = vld [vmem:[%s8688_s8 + $0x98] sm:$0xff] }
 0x6bf   : > { %4625 = vmatpush.msrb.mxu2 %v4547_v25  ;;  %v4525_v25 = vld [vmem:[%s8688_s8 + $0xb0] sm:$0xff] }
 0x6c0   : > { %4357 = vmatmul.f32.gmra.mxu2 %v4285_v36  ;;  %v4560_v36 = vld [vmem:[%s8688_s8 + $0x1c8] sm:$0xff] }
 0x6c1   : > { %4626 = vmatpush.msrb.mxu2 %v4546_v63  ;;  %v4524_v63 = vld [vmem:[%s8688_s8 + $0xa8] sm:$0xff] }
 0x6c2   : > { %v4275_v20 = vpop.permute.xlu1 %4274 }
 0x6c3   : > { %v4290_v4 = vsel %vm3920_vm1, %v4288_v37, %v4275_v20  ;;  %v4515_v37 = vld [vmem:[%s8688_s8 + $0x60] sm:$0xff]  ;;  %4627 = vmatpush.msrb.mxu2 %v4545_v51  ;;  %v4506_v51 = vld [vmem:[%s8688_s8 + $0x18] sm:$0xff] }
 0x6c4   : > { %4377 = vmatmul.f32.vlgmr.msra.gmra.mxu3 %v4290_v4  ;;  %v4531_v20 = vld [vmem:[%s8688_s8 + $0xe0] sm:$0xff]  ;;  %4585 = vmatpush.msrb.mxu0 %v4515_v37  ;;  %v4520_v37 = vld [vmem:[%s8688_s8 + $0x88] sm:$0xff] }
 0x6c5   : > { %v4559_v4 = vld [vmem:[%s8688_s8 + $0x1c0] sm:$0xff]  ;;  %4605 = vmatpush.msrb.mxu1 %v4531_v20  ;;  %4628 = vmatpush.msrb.mxu2 %v4544_v26  ;;  %v4504_v26 = vld [vmem:[%s8688_s8 + $0x8] sm:$0xff] }
 0x6c6   : > { %4586 = vmatpush.msrb.mxu0 %v4514_v34  ;;  %v4503_v20 = vld [vmem:[%s8688_s8] sm:$0xff]  ;;  %v4760_v34 = vld [vmem:[%s8698_s18 + $0x8] sm:$0xff] }
 0x6c7   : > { %4606 = vmatpush.msrb.mxu1 %v4530_v62  ;;  %4629 = vmatpush.msrb.mxu2 %v4543_v2 }
 0x6c8   : > { %4915 = vmatmul.msk.f32.vlgmr.msra.gmra.mxu2 %vm3884_vm8, %v4231_v17  ;;  %v5101_v17 = vld [vmem:[%s8687_s7] ss:$0 sm:$0xff] }
 0x6ca   : > { %v4277_v19 = vpop.permute.xlu1 %4276 }
 0x6cb   : > { %v4291_v43 = vsel %vm3920_vm1, %v4289_v42, %v4277_v19  ;;  %v4558_v42 = vld [vmem:[%s8688_s8 + $0x1b8] sm:$0xff]  ;;  %v4513_v19 = vld [vmem:[%s8688_s8 + $0x50] sm:$0xff] }
 0x6cc   : > { %4380 = vmatmul.f32.gmra.mxu3 %v4291_v43  ;;  %v4529_v43 = vld [vmem:[%s8688_s8 + $0xd0] sm:$0xff]  ;;  %4587 = vmatpush.msrb.mxu0 %v4513_v19 }
 0x6cd   : > { %4607 = vmatpush.msrb.mxu1 %v4529_v43 }
 0x6d0   : > { %4916 = vmatmul.msk.f32.gmra.mxu2 %vm3884_vm8, %v4232_v6  ;;  %v4542_v6 = vld [vmem:[%s8688_s8 + $0x138] sm:$0xff] }
 0x6d1   : > { %4630 = vmatpush.msrb.mxu2 %v4542_v6 }
 0x73b   : > { %v4355_v47 = vpop.f32.mrf.mxu2 }
 0x73c   : > { %v4356_v3 = vadd.f32 %v5101_v17, %v4355_v47  ;;  %v4557_v47 = vld [vmem:[%s8688_s8 + $0x1b0] sm:$0xff] }
 0x743   : > { %v4358_v49 = vpop.f32.mrf.mxu2 }
 0x744   : > { %v4359_v35 = vadd.f32 %v5101_v17, %v4358_v49  ;;  %v4541_v49 = vld [vmem:[%s8688_s8 + $0x130] sm:$0xff]  ;;  %v4708_v17 = vld [vmem:[%s8693_s13 + $0x78] sm:$0xff] }
 0x745   : > { %4631 = vmatpush.msrb.mxu2 %v4541_v49  ;;  %v4736_v49 = vpop.permute.xlu1 %4735 }
 0x747   : > { %v4378_v1 = vpop.f32.mrf.mxu3 }
 0x748   : > { %v4379_v33 = vadd.f32 %v4378_v1, %v4356_v3  ;;  %v4540_v1 = vld [vmem:[%s8688_s8 + $0x128] sm:$0xff] }
 0x749   : > { %4632 = vmatpush.msrb.mxu2 %v4540_v1  ;;  %v4732_v1 = vld [vmem:[%s8695_s15] sm:$0x1]  ;;  %v4706_v3 = vld [vmem:[%s8693_s13 + $0x68] sm:$0xff] }
 0x74b   : > { %v4401_v39 = vpop.f32.mrf.mxu2 }
 0x74c   : > { %v4402_v57 = vadd.f32 %v4401_v39, %v4379_v33  ;;  %v4555_v33 = vld [vmem:[%s8688_s8 + $0x1a0] sm:$0xff] }
 0x74d   : > { %v4539_v39 = vld [vmem:[%s8688_s8 + $0x120] sm:$0xff] }
 0x74e   : > { %vm4407_vm1 = vcmp.ge.f32.partialorder %v4402_v57, 0.0  ;;  %v4409_v12 = vmul.f32 0.01, %v4402_v57  ;;  %4633 = vmatpush.msrb.mxu2 %v4539_v39 }
 0x74f   : > { %v4381_v53 = vpop.f32.mrf.mxu3 }
 0x750   : > { %v4411_v40 = vsel %vm4407_vm1, %v4402_v57, %v4409_v12  ;;  %v4382_v61 = vadd.f32 %v4381_v53, %v4359_v35 }
 0x751   : > { %4413 = vst.msk [vmem:[#allocation7] sm:$0xff] %vm3902_vm0, %v4411_v40 }
 0x753   : > { %v4404_v58 = vpop.f32.mrf.mxu2 }
 0x754   : > { %v4405_v28 = vadd.f32 %v4404_v58, %v4382_v61  ;;  %v4554_v61 = vld [vmem:[%s8688_s8 + $0x198] sm:$0xff] }
 0x756   : > { %vm4408_vm8 = vcmp.ge.f32.partialorder %v4405_v28, 0.0  ;;  %v4410_v24 = vmul.f32 0.01, %v4405_v28 }
 0x758   : > { %v4412_v50 = vsel %vm4408_vm8, %v4405_v28, %v4410_v24  ;;  %v4538_v28 = vld [vmem:[%s8688_s8 + $0x118] sm:$0xff] }
 0x759   : > { %4414 = vst.msk [vmem:[#allocation7 + $0x8] sm:$0xff] %vm3902_vm0, %v4412_v50  ;;  %4634 = vmatpush.msrb.mxu2 %v4538_v28 }
 0x760   : > { %v4418_v46 = vld [vmem:[#allocation7 + $0x9] sm:$0xff]  ;;  %v4417_v41 = vld [vmem:[#allocation7 + $0x1] sm:$0xff] }
 0x761   : > { %v4422_v8 = vld [vmem:[#allocation7 + $0xc] sm:$0xff]  ;;  %v4420_v11 = vmax.f32 %v4412_v50, %v4418_v46  ;;  %v4421_v29 = vld [vmem:[#allocation7 + $0x4] sm:$0xff]  ;;  %v4419_v56 = vmax.f32 %v4411_v40, %v4417_v41 }
 0x762   : > { %v4424_v18 = vld [vmem:[#allocation7 + $0xd] sm:$0xff]  ;;  %v4423_v13 = vld [vmem:[#allocation7 + $0x5] sm:$0xff] }
 0x763   : > { %v4426_v9 = vmax.f32 %v4422_v8, %v4424_v18  ;;  %v4425_v27 = vmax.f32 %v4421_v29, %v4423_v13  ;;  %v4553_v46 = vld [vmem:[%s8688_s8 + $0x190] sm:$0xff]  ;;  %v4552_v18 = vld [vmem:[%s8688_s8 + $0x188] sm:$0xff]  ;;  %v4574_v29 = vld [vmem:[%s8688_s8 + $0x238] sm:$0xff] }
 0x764   : > { %v4537_v8 = vld [vmem:[%s8688_s8 + $0x110] sm:$0xff] }
 0x765   : > { %v4428_v59 = vmax.f32 %v4420_v11, %v4426_v9  ;;  %v4427_v31 = vmax.f32 %v4419_v56, %v4425_v27  ;;  %v4551_v11 = vld [vmem:[%s8688_s8 + $0x180] sm:$0xff]  ;;  %4635 = vmatpush.msrb.mxu2 %v4537_v8  ;;  %v4573_v56 = vld [vmem:[%s8688_s8 + $0x230] sm:$0xff]  ;;  %v4536_v27 = vld [vmem:[%s8688_s8 + $0x108] sm:$0xff] }
 0x766   : > { %v4707_v8 = vld [vmem:[%s8693_s13 + $0x70] sm:$0xff] }
 0x767   : > { %4451 = vmatpush.msrb.mxu3 %v4428_v59  ;;  %v4572_v59 = vld [vmem:[%s8688_s8 + $0x228] sm:$0xff]  ;;  %4636 = vmatpush.msrb.mxu2 %v4536_v27  ;;  %v4696_v27 = vld [vmem:[%s8693_s13 + $0x18] sm:$0xff] }
 0x769   : > { %4452 = vmatpush.msrb.mxu3 %v4427_v31  ;;  %v4512_v31 = vld [vmem:[%s8688_s8 + $0x48] sm:$0xff] }
 0x76a   : > { %4917 = vmatmul.msk.f32.vlgmr.msrb.gmra.mxu3 %vm3199_vm7, %v4429_v15  ;;  %v4528_v15 = vld [vmem:[%s8688_s8 + $0xc8] sm:$0xff]  ;;  %4588 = vmatpush.msrb.mxu0 %v4512_v31 }
 0x76b   : > { %4642 = vmatpush.msra.mxu3 %v4566_v38  ;;  %v4571_v38 = vld [vmem:[%s8688_s8 + $0x220] sm:$0xff]  ;;  %4608 = vmatpush.msrb.mxu1 %v4528_v15  ;;  %v4694_v31 = vld [vmem:[%s8693_s13 + $0x8] sm:$0xff] }
 0x76c   : > { %v4693_v15 = vld [vmem:[%s8693_s13] sm:$0xff] }
 0x76d   : > { %4643 = vmatpush.msra.mxu3 %v4565_v16  ;;  %v4511_v16 = vld [vmem:[%s8688_s8 + $0x40] sm:$0xff]  ;;  %4609 = vmatpush.msrb.mxu1 %v4527_v23  ;;  %v4756_v23 = vld [vmem:[%s8697_s17 + $0x68] sm:$0xff] }
 0x76e   : > { %4589 = vmatpush.msrb.mxu0 %v4511_v16  ;;  %v5102_v16 = vld [vmem:[%s8689_s9] ss:$0 sm:$0xff] }
 0x76f   : > { %4644 = vmatpush.msra.mxu3 %v4564_v54  ;;  %v4570_v54 = vld [vmem:[%s8688_s8 + $0x218] sm:$0xff]  ;;  %4610 = vmatpush.msrb.mxu1 %v4526_v21 }
 0x770   : > { %4590 = vmatpush.msrb.mxu0 %v4510_v7  ;;  %v4755_v7 = vld [vmem:[%s8697_s17 + $0x60] sm:$0xff] }
 0x771   : > { %4645 = vmatpush.msra.mxu3 %v4563_v10  ;;  %v4569_v10 = vld [vmem:[%s8688_s8 + $0x210] sm:$0xff]  ;;  %4611 = vmatpush.msrb.mxu1 %v4525_v25 }
 0x772   : > { %4918 = vmatmul.msk.f32.gmra.mxu3 %vm3199_vm7, %v4430_v60  ;;  %v4535_v60 = vld [vmem:[%s8688_s8 + $0x100] sm:$0xff]  ;;  %4591 = vmatpush.msrb.mxu0 %v4509_v44  ;;  %v4754_v44 = vld [vmem:[%s8697_s17 + $0x58] sm:$0xff] }
 0x773   : > { %4646 = vmatpush.msra.mxu3 %v4562_v48  ;;  %4637 = vmatpush.msrb.mxu2 %v4535_v60  ;;  %v4508_v48 = vld [vmem:[%s8688_s8 + $0x28] sm:$0xff]  ;;  %v4758_v60 = vld [vmem:[%s8697_s17 + $0x78] sm:$0xff] }
 0x774   : > { %4592 = vmatpush.msrb.mxu0 %v4508_v48  ;;  %4612 = vmatpush.msrb.mxu1 %v4524_v63  ;;  %v4753_v48 = vld [vmem:[%s8697_s17 + $0x50] sm:$0xff] }
 0x775   : > { %4647 = vmatpush.msra.mxu3 %v4561_v0  ;;  %v4507_v0 = vld [vmem:[%s8688_s8 + $0x20] sm:$0xff] }
 0x776   : > { %4593 = vmatpush.msrb.mxu0 %v4507_v0  ;;  %4613 = vmatpush.msrb.mxu1 %v4523_v22  ;;  %v4752_v0 = vld [vmem:[%s8697_s17 + $0x48] sm:$0xff] }
 0x777   : > { %4648 = vmatpush.msra.mxu3 %v4560_v36  ;;  %v4505_v36 = vld [vmem:[%s8688_s8 + $0x10] sm:$0xff] }
 0x778   : > { %4594 = vmatpush.msrb.mxu0 %v4506_v51  ;;  %4614 = vmatpush.msrb.mxu1 %v4522_v45  ;;  %v4751_v51 = vld [vmem:[%s8697_s17 + $0x40] sm:$0xff] }
 0x779   : > { %4649 = vmatpush.msra.mxu3 %v4559_v4  ;;  %v4519_v4 = vld [vmem:[%s8688_s8 + $0x80] sm:$0xff] }
 0x77a   : > { %4595 = vmatpush.msrb.mxu0 %v4505_v36  ;;  %4615 = vmatpush.msrb.mxu1 %v4521_v30  ;;  %v4750_v30 = vld [vmem:[%s8697_s17 + $0x38] sm:$0xff] }
 0x77b   : > { %4650 = vmatpush.msra.mxu3 %v4558_v42 }
 0x77c   : > { %4596 = vmatpush.msrb.mxu0 %v4504_v26  ;;  %4616 = vmatpush.msrb.mxu1 %v4520_v37  ;;  %v4749_v37 = vld [vmem:[%s8697_s17 + $0x30] sm:$0xff] }
 0x77d   : > { %4651 = vmatpush.msra.mxu3 %v4557_v47 }
 0x77e   : > { %4597 = vmatpush.msrb.mxu0 %v4503_v20  ;;  %4617 = vmatpush.msrb.mxu1 %v4519_v4  ;;  %v4748_v4 = vld [vmem:[%s8697_s17 + $0x28] sm:$0xff] }
 0x77f   : > { %4652 = vmatpush.msra.mxu3 %v4556_v52  ;;  %v4738_v52 = vperm.slane %v4736_v49, 0  ;;  %v4744_v49 = vld [vmem:[%s8697_s17 + $0x8] sm:$0xff] }
 0x780   : > { %4778 = vmatpush.msra.mxu0 %v4760_v34  ;;  %4710 = vmatpush.msra.mxu1 %v4708_v17 }
 0x781   : > { %4653 = vmatpush.msra.mxu3 %v4555_v33 }
 0x782   : > { %4711 = vmatpush.msra.mxu1 %v4707_v8 }
 0x783   : > { %4654 = vmatpush.msra.mxu3 %v4554_v61  ;;  %v4740_v61 = vld [vmem:[%s8696_s16] sm:$0x1] }
 0x784   : > { %4712 = vmatpush.msra.mxu1 %v4706_v3  ;;  %v4804_v3 = vld [vmem:[%s8699_s19] sm:$0x1] }
 0x785   : > { %4655 = vmatpush.msra.mxu3 %v4553_v46 }
 0x787   : > { %4656 = vmatpush.msra.mxu3 %v4552_v18  ;;  %v4703_v18 = vld [vmem:[%s8693_s13 + $0x50] sm:$0xff] }
 0x789   : > { %4657 = vmatpush.msra.mxu3 %v4551_v11  ;;  %v4702_v11 = vld [vmem:[%s8693_s13 + $0x48] sm:$0xff] }
 0x78b   : > { %4670 = vmatpush.msrb.mxu3 %v4574_v29  ;;  %v4699_v29 = vld [vmem:[%s8693_s13 + $0x30] sm:$0xff] }
 0x78d   : > { %4671 = vmatpush.msrb.mxu3 %v4573_v56  ;;  %v4697_v56 = vld [vmem:[%s8693_s13 + $0x20] sm:$0xff] }
 0x78f   : > { %4672 = vmatpush.msrb.mxu3 %v4572_v59  ;;  %v4695_v59 = vld [vmem:[%s8693_s13 + $0x10] sm:$0xff] }
 0x791   : > { %4673 = vmatpush.msrb.mxu3 %v4571_v38  ;;  %v4757_v38 = vld [vmem:[%s8697_s17 + $0x70] sm:$0xff] }
 0x793   : > { %4674 = vmatpush.msrb.mxu3 %v4570_v54 }
 0x795   : > { %4675 = vmatpush.msrb.mxu3 %v4569_v10 }
 0x797   : > { %4676 = vmatpush.msrb.mxu3 %v4568_v32 }
 0x799   : > { %4677 = vmatpush.msrb.mxu3 %v4567_v55 }
 0x7ed   : > { %v4454_v14 = vpop.f32.mrf.mxu3 }
 0x7ee   : > { %4460 = vst.msk [vmem:[#allocation4] sm:$0xff] %vm3902_vm0, %v4454_v14  ;;  %v4759_v14 = vld [vmem:[%s8698_s18] sm:$0xff] }
 0x7ef   : > { %4779 = vmatpush.msra.mxu0 %v4759_v14 }
 0x7f5   : > { %v4457_v57 = vpop.f32.mrf.mxu3  ;;  %v4470_v12 = vld [vmem:[#allocation4 + $0x1] sm:$0xf] }
 0x7f6   : > { %v8387_v53 = vld [vmem:[#allocation4 + $0x2] sm:$0xf]  ;;  %4462 = vst.msk [vmem:[#allocation4 + $0x8] sm:$0x3] %vm4461_vm11, %v4457_v57 }
 0x7f7   : > { %v8389_v35 = vld [vmem:[#allocation4 + $0x4] sm:$0xf]  ;;  %v4475_v40 = vsel %vm8370_vm3, %v8387_v53, 0.0  ;;  %v4474_v50 = vsel %vm8377_vm2, %v8387_v53, 0.0  ;;  %v4466_v33 = vld [vmem:[#allocation4] sm:$0xf] }
 0x7f8   : > { %v5085_v58 = vpack.i.bf16 %v4475_v40, %v4470_v12  ;;  %v4479_v24 = vsel %vm8370_vm3, %v8389_v35, 0.0  ;;  %v4478_v9 = vsel %vm8377_vm2, %v8389_v35, 0.0  ;;  %v4476_v19 = vld [vmem:[#allocation4 + $0x3] sm:$0xf]  ;;  %v4739_v35 = vmul.f32 %v4738_v52, %v4732_v1  ;;  %v4705_v53 = vld [vmem:[%s8693_s13 + $0x60] sm:$0xff] }
 0x7f9   : > { %v4469_v40 = vsel %vm8370_vm3, %v4466_v33, 0.0  ;;  %4713 = vmatpush.msra.mxu1 %v4705_v53  ;;  %v4743_v52 = vld [vmem:[%s8697_s17] sm:$0xff]  ;;  %v4814_v1 = vld [vmem:[%s8700_s20 + $0x38] sm:$0xff]  ;;  %v4813_v33 = vld [vmem:[%s8700_s20 + $0x30] sm:$0xff] }
 0x7fa   : > { %5086 = vrot.lane.b32.xlu0 %v5085_v58, %s9287_s21  ;;  %4827 = vmatpush.msra.mxu2 %v4814_v1 }
 0x7fc   : > { %4828 = vmatpush.msra.mxu2 %v4813_v33 }
 0x7fd   : > { %v4480_v41 = vld [vmem:[#allocation4 + $0x5] sm:$0xf] }
 0x7fe   : > { %v5080_v13 = vpack.i.bf16 %v4478_v9, %v4480_v41  ;;  %v4481_v6 = vld [vmem:[#allocation4 + $0x6] sm:$0xf] }
 0x7ff   : > { %v4482_v47 = vsel %vm8377_vm2, %v4481_v6, 0.0  ;;  %v4701_v9 = vld [vmem:[%s8693_s13 + $0x40] sm:$0xff]  ;;  %v4700_v41 = vld [vmem:[%s8693_s13 + $0x38] sm:$0xff] }
 0x800   : > { %5081 = vrot.lane.b32.xlu2 %v5080_v13, %s9287_s21  ;;  %v4698_v13 = vld [vmem:[%s8693_s13 + $0x28] sm:$0xff] }
 0x85a   : > { %v5082_v2 = vpop.permute.xlu2 %5081 }
 0x85b   : > { %v5084_v62 = vunpack.i.h.bf16 %v5082_v2  ;;  %v5083_v42 = vunpack.i.l.bf16 %v5082_v2  ;;  %v4747_v2 = vld [vmem:[%s8697_s17 + $0x20] sm:$0xff] }
 0x85d   : > { %v4501_v43 = vsel %vm3902_vm0, %v4476_v19, %v5084_v62  ;;  %v4502_v5 = vsel %vm3902_vm0, %v4479_v24, %v5083_v42  ;;  %v4741_v24 = vadd.f32 %v4740_v61, %v4739_v35  ;;  %v4746_v42 = vld [vmem:[%s8697_s17 + $0x18] sm:$0xff] }
 0x85e   : > { %4638 = vmatmul.f32.vlgmr.msrb.gmra.mxu2 %v4501_v43  ;;  %4658 = vmatmul.f32.vlgmr.msra.gmra.mxu3 %v4502_v5 }
 0x85f   : > { %v4742_v46 = vmax.f32 %v4741_v24, 0.0  ;;  %v4808_v24 = vld [vmem:[%s8700_s20 + $0x8] sm:$0xff] }
 0x866   : > { %4919 = vmatmul.msk.f32.vlgmr.msrb.gmra.mxu3 %vm3902_vm0, %v4482_v47  ;;  %v4745_v47 = vld [vmem:[%s8697_s17 + $0x10] sm:$0xff] }
 0x86c   : > { %v5087_v39 = vpop.permute.xlu0 %5086 }
 0x86d   : > { %v5089_v57 = vunpack.i.h.bf16 %v5087_v39  ;;  %v5088_v12 = vunpack.i.l.bf16 %v5087_v39  ;;  %v4812_v39 = vld [vmem:[%s8700_s20 + $0x28] sm:$0xff] }
 0x86e   : > { %4829 = vmatpush.msra.mxu2 %v4812_v39 }
 0x86f   : > { %v4499_v58 = vsel %vm3902_vm0, %v4469_v40, %v5088_v12  ;;  %v4500_v28 = vsel %vm3902_vm0, %v4474_v50, %v5089_v57  ;;  %v4704_v50 = vld [vmem:[%s8693_s13 + $0x58] sm:$0xff]  ;;  %v4811_v57 = vld [vmem:[%s8700_s20 + $0x20] sm:$0xff] }
 0x870   : > { %4598 = vmatmul.f32.vlgmr.msrb.gmra.mxu0 %v4499_v58  ;;  %4618 = vmatmul.f32.vlgmr.msrb.gmra.mxu1 %v4500_v28  ;;  %v4709_v12 = vld [vmem:[%s8694_s14] sm:$0x1]  ;;  %v4810_v58 = vld [vmem:[%s8700_s20 + $0x18] sm:$0xff]  ;;  %v4809_v28 = vld [vmem:[%s8700_s20 + $0x10] sm:$0xff] }
 0x871   : > { %4714 = vmatpush.msra.mxu1 %v4704_v50  ;;  %4784 = vmatpush.msrb.mxu0 %v4758_v60 }
 0x872   : > { %4830 = vmatpush.msra.mxu2 %v4811_v57 }
 0x873   : > { %4715 = vmatpush.msra.mxu1 %v4703_v18  ;;  %4785 = vmatpush.msrb.mxu0 %v4757_v38 }
 0x874   : > { %4831 = vmatpush.msra.mxu2 %v4810_v58 }
 0x875   : > { %4716 = vmatpush.msra.mxu1 %v4702_v11  ;;  %4786 = vmatpush.msrb.mxu0 %v4756_v23  ;;  %v4815_v11 = vld [vmem:[#allocation8] sm:$0x1] }
 0x876   : > { %4832 = vmatpush.msra.mxu2 %v4809_v28 }
 0x877   : > { %4717 = vmatpush.msra.mxu1 %v4701_v9  ;;  %4787 = vmatpush.msrb.mxu0 %v4755_v7 }
 0x878   : > { %4920 = vmatmul.msk.f32.vlgmr.msra.gmra.mxu0 %vm3199_vm7, %v4742_v46  ;;  %v4807_v46 = vld [vmem:[%s8700_s20] sm:$0xff]  ;;  %4833 = vmatpush.msra.mxu2 %v4808_v24 }
 0x879   : > { %4718 = vmatpush.msra.mxu1 %v4700_v41  ;;  %4788 = vmatpush.msrb.mxu0 %v4754_v44 }
 0x87a   : > { %4834 = vmatpush.msra.mxu2 %v4807_v46 }
 0x87b   : > { %4719 = vmatpush.msra.mxu1 %v4699_v29  ;;  %4789 = vmatpush.msrb.mxu0 %v4753_v48 }
 0x87d   : > { %4720 = vmatpush.msra.mxu1 %v4698_v13  ;;  %4790 = vmatpush.msrb.mxu0 %v4752_v0 }
 0x87f   : > { %4721 = vmatpush.msra.mxu1 %v4697_v56  ;;  %4791 = vmatpush.msrb.mxu0 %v4751_v51 }
 0x881   : > { %4722 = vmatpush.msra.mxu1 %v4696_v27  ;;  %4792 = vmatpush.msrb.mxu0 %v4750_v30 }
 0x883   : > { %4723 = vmatpush.msra.mxu1 %v4695_v59  ;;  %4793 = vmatpush.msrb.mxu0 %v4749_v37 }
 0x885   : > { %4724 = vmatpush.msra.mxu1 %v4694_v31  ;;  %4794 = vmatpush.msrb.mxu0 %v4748_v4 }
 0x887   : > { %4725 = vmatpush.msra.mxu1 %v4693_v15  ;;  %4795 = vmatpush.msrb.mxu0 %v4747_v2 }
 0x889   : > { %4796 = vmatpush.msrb.mxu0 %v4746_v42 }
 0x88b   : > { %4797 = vmatpush.msrb.mxu0 %v4745_v47 }
 0x88d   : > { %4798 = vmatpush.msrb.mxu0 %v4744_v49 }
 0x88f   : > { %4799 = vmatpush.msrb.mxu0 %v4743_v52 }
 0x8e1   : > { %v4659_v54 = vpop.f32.mrf.mxu3  ;;  %v4639_v63 = vpop.f32.mrf.mxu2 }
 0x8e9   : > { %v4679_v45 = vpop.f32.mrf.mxu3 }
 0x8ed   : > { %v4599_v21 = vpop.f32.mrf.mxu0  ;;  %v4619_v25 = vpop.f32.mrf.mxu1 }
 0x8ee   : > { %v4600_v10 = vadd.f32 %v5102_v16, %v4599_v21 }
 0x8f0   : > { %v4620_v32 = vadd.f32 %v4619_v25, %v4600_v10 }
 0x8f2   : > { %v4640_v55 = vadd.f32 %v4639_v63, %v4620_v32 }
 0x8f4   : > { %v4660_v22 = vadd.f32 %v4659_v54, %v4640_v55 }
 0x8f5   : > { %v4781_v17 = vpop.f32.mrf.mxu0 }
 0x8f6   : > { %v4680_v36 = vadd.f32 %v4679_v45, %v4660_v22 }
 0x8f8   : > { %vm4682_vm7 = vcmp.ge.f32.partialorder %v4680_v36, 0.0  ;;  %v4683_v26 = vmul.f32 0.01, %v4680_v36 }
 0x8fa   : > { %v4684_v20 = vsel %vm4682_vm7, %v4680_v36, %v4683_v26 }
 0x8fb   : > { %v4686_v34 = vsel %vm4685_vm12, %v4684_v20, -inf }
 0x8fc   : > { %v4687_v14 = vrot.slane %v4686_v34, 4 }
 0x8fe   : > { %v4688_v62 = vmax.f32 %v4686_v34, %v4687_v14 }
 0x900   : > { %v4689_v19 = vrot.slane %v4688_v62, 2 }
 0x902   : > { %v4690_v43 = vmax.f32 %v4688_v62, %v4689_v19 }
 0x904   : > { %v4691_v5 = vrot.slane %v4690_v43, 1 }
 0x906   : > { %v4692_v6 = vmax.f32 %v4690_v43, %v4691_v5 }
 0x908   : > { %4726 = vmatmul.f32.vlgmr.msra.gmra.mxu1 %v4692_v6 }
 0x985   : > { %v4727_v35 = vpop.f32.mrf.mxu1 }
 0x986   : > { %v4728_v40 = vadd.f32 %v4727_v35, %v4709_v12 }
 0x988   : > { %v4730_v61 = vmax.f32 %v4728_v40, 0.0 }
 0x98a   : > { %4800 = vmatmul.f32.vlgmr.msrb.gmra.mxu0 %v4730_v61 }
 0xa07   : > { %v4801_v8 = vpop.f32.mrf.mxu0 }
 0xa08   : > { %v4802_v53 = vadd.f32 %v4801_v8, %v4781_v17 }
 0xa0a   : > { %v4805_v50 = vadd.f32 %v4804_v3, %v4802_v53 }
 0xa0c   : > { %v4806_v18 = vmax.f32 %v4805_v50, 0.0 }
 0xa0e   : > { %4921 = vmatmul.msk.f32.vlgmr.msra.gmra.mxu2 %vm3902_vm0, %v4806_v18 }
 0xa91   : > { %v4836_v9 = vpop.f32.mrf.mxu2 }
 0xa92   : > { %v4837_v41 = vadd.f32 %v4836_v9, %v4815_v11 }
 0xa94   : > { %4840 = vst.msk [vmem:[%s695_s6] sm:$0x1] %vm4839_vm10, %v4837_v41 }
 0xa95 PF: > { %s34_s29 = sadd.s32 1, %s5211_s29  }
 0xa96   : > { %p31_p4 = scmp.ge.s32.totalorder %s34_s29, 4  }
 0xa98   :  { %33 = sbr.rel (!%p31_p4) target bundleno = 9 (0x9), region = 141 }

</bundles_post_ra>
